<compile_context>
chip_gen: v5e
topology: v5e:2x2
jax: 0.10.0
libtpu: 0.0.40
codegen_flags: <defaults>
</compile_context>

<pallas_src>
import math

import jax
import jax.numpy as jnp
from jax.experimental import pallas as pl
from jax.experimental.pallas import tpu as pltpu

EPS = 1e-5
SLOPE = 0.2  # LeakyReLU negative slope


# ---------------------------------------------------------------------------
# Small helpers
# ---------------------------------------------------------------------------
def _spec2d(shape):
    # grid=(1,): every operand is a single full-array VMEM block.
    return pl.BlockSpec(shape, lambda i: (0, 0))


def _nbytes(*objs):
    total = 0
    for a in objs:
        n = math.prod(a.shape)
        total += n * jnp.dtype(a.dtype).itemsize
    return int(total)


def _mosaic_params(bytes_accessed):
    # Full-array blocks are double-buffered by the pipeline; ~4x the summed
    # operand bytes is a generous explicit budget (<< v7x's 64 MiB VMEM).
    vmem = int(min(32 << 20, max(2 << 20, 4 * bytes_accessed)))
    return pltpu.CompilerParams(dimension_semantics=("arbitrary",),
                                vmem_limit_bytes=vmem)


# ---------------------------------------------------------------------------
# Pallas kernels (one fused kernel per conv layer; layer 4 fused into layer 3)
# ---------------------------------------------------------------------------
def _conv_act_kernel(p_ref, w_ref, o_ref):
    """LeakyReLU(P @ W): bf16 operands, f32 accumulate, bf16 store."""
    y = jnp.dot(p_ref[...], w_ref[...], preferred_element_type=jnp.float32)
    o_ref[...] = jnp.where(y >= 0.0, y, SLOPE * y).astype(o_ref.dtype)


def _make_conv_bn_act_kernel(m_rows):
    inv_m = 1.0 / float(m_rows)

    def kern(p_ref, w_ref, g_ref, b_ref, o_ref):
        y = jnp.dot(p_ref[...], w_ref[...], preferred_element_type=jnp.float32)
        # BatchNorm2d training-mode batch stats over all N*H*W rows,
        # single pass (sum + sum-of-squares), f32.
        s = jnp.sum(y, axis=0, keepdims=True)
        ss = jnp.sum(y * y, axis=0, keepdims=True)
        mean = s * inv_m
        var = jnp.maximum(ss * inv_m - mean * mean, 0.0)
        y = (y - mean) * (g_ref[...] * jax.lax.rsqrt(var + EPS)) + b_ref[...]
        o_ref[...] = jnp.where(y >= 0.0, y, SLOPE * y).astype(o_ref.dtype)

    return kern


def _make_final_kernel(m_rows):
    """Layer 3 (conv + BN + LeakyReLU) fused with layer 4 (4x4 valid conv,
    Cout=1) + Sigmoid.  Layer 4 is expressed as elementwise-mul with the tiled
    final kernel + a tiny selection matmul + lane reduction, so no in-kernel
    reshape is needed and the layer-3 activation never leaves VMEM."""
    inv_m = 1.0 / float(m_rows)

    def kern(p_ref, w_ref, g_ref, b_ref, w4_ref, sel_ref, o_ref):
        y = jnp.dot(p_ref[...], w_ref[...], preferred_element_type=jnp.float32)
        s = jnp.sum(y, axis=0, keepdims=True)
        ss = jnp.sum(y * y, axis=0, keepdims=True)
        mean = s * inv_m
        var = jnp.maximum(ss * inv_m - mean * mean, 0.0)
        y = (y - mean) * (g_ref[...] * jax.lax.rsqrt(var + EPS)) + b_ref[...]
        y = jnp.where(y >= 0.0, y, SLOPE * y)                    # (M, C3) f32
        # logit[n] = sum_{rows r of image n} sum_c y[r, c] * w4_tiled[r, c]
        z = jnp.dot(sel_ref[...], y * w4_ref[...],
                    preferred_element_type=jnp.float32)          # (N, C3)
        o_ref[...] = jax.nn.sigmoid(jnp.sum(z, axis=1, keepdims=True))

    return kern


# ---------------------------------------------------------------------------
# pallas_call wrappers
# ---------------------------------------------------------------------------
def conv_act(patches, w2d):
    M, K = patches.shape
    C = w2d.shape[1]
    out = jax.ShapeDtypeStruct((M, C), jnp.bfloat16)
    ba = _nbytes(patches, w2d, out)
    return pl.pallas_call(
        _conv_act_kernel,
        out_shape=out,
        grid=(1,),
        in_specs=[_spec2d((M, K)), _spec2d((K, C))],
        out_specs=_spec2d((M, C)),
        compiler_params=_mosaic_params(ba),
        cost_estimate=pl.CostEstimate(flops=2 * M * K * C + 2 * M * C,
                                      transcendentals=0, bytes_accessed=ba),
    )(patches, w2d)


def conv_bn_act(patches, w2d, gamma, beta):
    M, K = patches.shape
    C = w2d.shape[1]
    out = jax.ShapeDtypeStruct((M, C), jnp.bfloat16)
    ba = _nbytes(patches, w2d, gamma, beta, out)
    return pl.pallas_call(
        _make_conv_bn_act_kernel(M),
        out_shape=out,
        grid=(1,),
        in_specs=[_spec2d((M, K)), _spec2d((K, C)),
                  _spec2d((1, C)), _spec2d((1, C))],
        out_specs=_spec2d((M, C)),
        compiler_params=_mosaic_params(ba),
        cost_estimate=pl.CostEstimate(flops=2 * M * K * C + 10 * M * C,
                                      transcendentals=C, bytes_accessed=ba),
    )(patches, w2d, gamma, beta)


def conv_bn_act_final(patches, w2d, gamma, beta, w4_tiled, sel):
    M, K = patches.shape
    C = w2d.shape[1]
    N = sel.shape[0]
    out = jax.ShapeDtypeStruct((N, 1), jnp.float32)
    ba = _nbytes(patches, w2d, gamma, beta, w4_tiled, sel, out)
    return pl.pallas_call(
        _make_final_kernel(M),
        out_shape=out,
        grid=(1,),
        in_specs=[_spec2d((M, K)), _spec2d((K, C)),
                  _spec2d((1, C)), _spec2d((1, C)),
                  _spec2d((M, C)), _spec2d((N, M))],
        out_specs=_spec2d((N, 1)),
        compiler_params=_mosaic_params(ba),
        cost_estimate=pl.CostEstimate(
            flops=2 * M * K * C + 2 * N * M * C + 12 * M * C,
            transcendentals=C + N, bytes_accessed=ba),
    )(patches, w2d, gamma, beta, w4_tiled, sel)


# ---------------------------------------------------------------------------
# JAX glue: NHWC im2col (thin; all hot math runs in the fused kernels)
# ---------------------------------------------------------------------------
def im2col_nhwc(x, k, stride, pad):
    """x: NHWC -> patches (N*Hout*Wout, k*k*C), flatten order (kh, kw, C)."""
    N, H, W, C = x.shape
    Hout = (H + 2 * pad - k) // stride + 1
    Wout = (W + 2 * pad - k) // stride + 1
    if pad:
        x = jnp.pad(x, ((0, 0), (pad, pad), (pad, pad), (0, 0)))
    cols = []
    for i in range(k):
        for j in range(k):
            cols.append(x[:, i:i + stride * Hout:stride,
                          j:j + stride * Wout:stride, :])
    patches = jnp.concatenate(cols, axis=-1)      # (N, Hout, Wout, k*k*C)
    return patches.reshape(N * Hout * Wout, k * k * C), Hout, Wout


# ---------------------------------------------------------------------------
# One-time parameter preparation (outside the jitted forward)
# ---------------------------------------------------------------------------
def prepare_params(params):
    """Re-layout conv weights to the (kh, kw, Cin)-flattened GEMM order that
    matches the im2col patch layout, cast to bf16 for the MXU, reshape BN
    affine to (1, C) f32 rows, and lay out the final 1-output conv as a
    (kh*kw, Cin) f32 matrix.  Done once; removes per-forward XLA weight ops."""
    def to_gemm(w):
        cout, cin, k, _ = w.shape
        return (jnp.transpose(w, (2, 3, 1, 0))
                .reshape(k * k * cin, cout).astype(jnp.bfloat16))

    w4 = params["w4"]                                  # (1, Cin, 4, 4)
    k4 = w4.shape[-1]
    w4_mat = (jnp.transpose(w4[0], (1, 2, 0))          # (kh, kw, Cin)
              .reshape(k4 * k4, w4.shape[1]).astype(jnp.float32))

    return {
        "w0": to_gemm(params["w0"]),
        "w1": to_gemm(params["w1"]),
        "g1": params["g1"].astype(jnp.float32)[None, :],
        "b1": params["b1"].astype(jnp.float32)[None, :],
        "w2": to_gemm(params["w2"]),
        "g2": params["g2"].astype(jnp.float32)[None, :],
        "b2": params["b2"].astype(jnp.float32)[None, :],
        "w3": to_gemm(params["w3"]),
        "g3": params["g3"].astype(jnp.float32)[None, :],
        "b3": params["b3"].astype(jnp.float32)[None, :],
        "w4": w4_mat,
    }


def init_params(key, nc, ndf):
    ks = jax.random.split(key, 5)

    def conv_w(k, cout, cin):
        return (0.02 * jax.random.normal(k, (cout, cin, 4, 4))).astype(jnp.float32)

    return {
        "w0": conv_w(ks[0], ndf, nc),
        "w1": conv_w(ks[1], ndf * 2, ndf),
        "g1": jnp.ones((ndf * 2,), jnp.float32), "b1": jnp.zeros((ndf * 2,), jnp.float32),
        "w2": conv_w(ks[2], ndf * 4, ndf * 2),
        "g2": jnp.ones((ndf * 4,), jnp.float32), "b2": jnp.zeros((ndf * 4,), jnp.float32),
        "w3": conv_w(ks[3], ndf * 8, ndf * 4),
        "g3": jnp.ones((ndf * 8,), jnp.float32), "b3": jnp.zeros((ndf * 8,), jnp.float32),
        "w4": conv_w(ks[4], 1, ndf * 8),
    }


# ---------------------------------------------------------------------------
# Forward pass
# ---------------------------------------------------------------------------
def discriminator_forward(x, prep):
    # TODO(synk): ngpu>1 nn.parallel.data_parallel branch is multi-device
    # dispatch, not math; single-device forward implemented.
    N = x.shape[0]
    h = jnp.transpose(x, (0, 2, 3, 1)).astype(jnp.bfloat16)       # NCHW -> NHWC

    p, Ho, Wo = im2col_nhwc(h, 4, 2, 1)
    h = conv_act(p, prep["w0"]).reshape(N, Ho, Wo, -1)

    p, Ho, Wo = im2col_nhwc(h, 4, 2, 1)
    h = conv_bn_act(p, prep["w1"], prep["g1"], prep["b1"]).reshape(N, Ho, Wo, -1)

    p, Ho, Wo = im2col_nhwc(h, 4, 2, 1)
    h = conv_bn_act(p, prep["w2"], prep["g2"], prep["b2"]).reshape(N, Ho, Wo, -1)

    # Layer 3 (conv+BN+LeakyReLU) and layer 4 (4x4 valid conv + Sigmoid) run in
    # one fused kernel; the layer-3 activation never leaves VMEM.
    p, Ho, Wo = im2col_nhwc(h, 4, 2, 1)                           # (N*Ho*Wo, K3)
    hw = Ho * Wo                                                  # 16 (= 4x4)
    assert hw == prep["w4"].shape[0], "final conv expects a 4x4 spatial map"
    w4_tiled = jnp.tile(prep["w4"], (N, 1))                       # (N*hw, C3)
    sel = jnp.repeat(jnp.eye(N, dtype=jnp.float32), hw, axis=1)   # (N, N*hw)
    out = conv_bn_act_final(p, prep["w3"], prep["g3"], prep["b3"],
                            w4_tiled, sel)                        # (N, 1)
    # output.view(-1, 1).squeeze(1)
    return out.reshape(-1)


if __name__ == "__main__":
    config = {"ngpu": 1, "ndf": 8, "nc": 3}
    key = jax.random.PRNGKey(0)
    kx, kp = jax.random.split(key)
    # DCGAN discriminator requires 64x64 spatial input for the final 4x4 valid conv.
    x = jax.random.normal(kx, (2, config["nc"], 64, 64), dtype=jnp.float32)
    params = init_params(kp, config["nc"], config["ndf"])
    prep = prepare_params(params)     # one-time weight re-layout, outside jit

    fwd = jax.jit(discriminator_forward)
    out = jax.block_until_ready(fwd(x, prep))
    assert out.shape == (2,)
    assert bool(jnp.all(jnp.isfinite(out))) and bool(jnp.all((out >= 0) & (out <= 1)))
    print("KERNEL_OK")
</pallas_src>

<mosaic_0001>
module attributes {stable_mosaic.version = 11 : i64} {
  func.func @_conv_act_kernel(%arg0: i32, %arg1: memref<2048x48xbf16, #tpu.memory_space<vmem>>, %arg2: memref<48x8xbf16, #tpu.memory_space<vmem>>, %arg3: memref<2048x8xbf16, #tpu.memory_space<vmem>>) attributes {dimension_semantics = [#tpu.dimension_semantics<arbitrary>], iteration_bounds = array<i64: 1>, scalar_prefetch = 0 : i64, scratch_operands = 0 : i64, tpu.core_type = #tpu.core_type<tc>, window_params = [{pipeline_mode = #tpu.pipeline_mode<synchronous>, transform_indices = @transform_0, window_bounds = array<i64: 2048, 48>}, {pipeline_mode = #tpu.pipeline_mode<synchronous>, transform_indices = @transform_1, window_bounds = array<i64: 48, 8>}, {pipeline_mode = #tpu.pipeline_mode<synchronous>, transform_indices = @transform_2, window_bounds = array<i64: 2048, 8>}]} {
    %c0 = arith.constant 0 : index
    %c0_0 = arith.constant 0 : index
    %0 = vector.load %arg1[%c0, %c0_0] : memref<2048x48xbf16, #tpu.memory_space<vmem>>, vector<2048x48xbf16>
    %c0_1 = arith.constant 0 : index
    %c0_2 = arith.constant 0 : index
    %1 = vector.load %arg2[%c0_1, %c0_2] : memref<48x8xbf16, #tpu.memory_space<vmem>>, vector<48x8xbf16>
    %cst = arith.constant dense<0.000000e+00> : vector<2048x8xf32>
    %2 = tpu.matmul %0, %1, %cst {dimension_numbers = #tpu.dot_dimension_numbers<[1], [0], [0], [1], [0, 0, 1, 1], [], []>} : vector<2048x48xbf16>, vector<48x8xbf16>, vector<2048x8xf32> -> vector<2048x8xf32>
    %cst_3 = arith.constant 0.000000e+00 : f32
    %3 = vector.broadcast %cst_3 : f32 to vector<2048x8xf32>
    %4 = arith.cmpf oge, %2, %3 : vector<2048x8xf32>
    %cst_4 = arith.constant 2.000000e-01 : f32
    %5 = vector.broadcast %cst_4 : f32 to vector<2048x8xf32>
    %6 = arith.mulf %5, %2 : vector<2048x8xf32>
    %7 = arith.select %4, %2, %6 : vector<2048x8xi1>, vector<2048x8xf32>
    %8 = arith.truncf %7 : vector<2048x8xf32> to vector<2048x8xbf16>
    %c0_5 = arith.constant 0 : index
    %c0_6 = arith.constant 0 : index
    %9 = vector.load %arg3[%c0_5, %c0_6] : memref<2048x8xbf16, #tpu.memory_space<vmem>>, vector<2048x8xbf16>
    tpu.vector_store %arg3[%c0_5, %c0_6], %8 {strides = array<i32>} : memref<2048x8xbf16, #tpu.memory_space<vmem>>, vector<2048x8xbf16>,
    return
  }
  func.func @transform_0(%arg0: i32) -> (i32, i32) {
    %c0_i32 = arith.constant 0 : i32
    %c0_i32_0 = arith.constant 0 : i32
    %c0_i32_1 = arith.constant 0 : i32
    return %c0_i32, %c0_i32_0 : i32, i32
  }
  func.func @transform_1(%arg0: i32) -> (i32, i32) {
    %c0_i32 = arith.constant 0 : i32
    %c0_i32_0 = arith.constant 0 : i32
    %c0_i32_1 = arith.constant 0 : i32
    return %c0_i32, %c0_i32_0 : i32, i32
  }
  func.func @transform_2(%arg0: i32) -> (i32, i32) {
    %c0_i32 = arith.constant 0 : i32
    %c0_i32_0 = arith.constant 0 : i32
    %c0_i32_1 = arith.constant 0 : i32
    return %c0_i32, %c0_i32_0 : i32, i32
  }
}

module attributes {stable_mosaic.version = 11 : i64} {
  func.func @kern(%arg0: i32, %arg1: memref<512x128xbf16, #tpu.memory_space<vmem>>, %arg2: memref<128x16xbf16, #tpu.memory_space<vmem>>, %arg3: memref<1x16xf32, #tpu.memory_space<vmem>>, %arg4: memref<1x16xf32, #tpu.memory_space<vmem>>, %arg5: memref<512x16xbf16, #tpu.memory_space<vmem>>) attributes {dimension_semantics = [#tpu.dimension_semantics<arbitrary>], iteration_bounds = array<i64: 1>, scalar_prefetch = 0 : i64, scratch_operands = 0 : i64, tpu.core_type = #tpu.core_type<tc>, window_params = [{pipeline_mode = #tpu.pipeline_mode<synchronous>, transform_indices = @transform_0, window_bounds = array<i64: 512, 128>}, {pipeline_mode = #tpu.pipeline_mode<synchronous>, transform_indices = @transform_1, window_bounds = array<i64: 128, 16>}, {pipeline_mode = #tpu.pipeline_mode<synchronous>, transform_indices = @transform_2, window_bounds = array<i64: 1, 16>}, {pipeline_mode = #tpu.pipeline_mode<synchronous>, transform_indices = @transform_3, window_bounds = array<i64: 1, 16>}, {pipeline_mode = #tpu.pipeline_mode<synchronous>, transform_indices = @transform_4, window_bounds = array<i64: 512, 16>}]} {
    %c0 = arith.constant 0 : index
    %c0_0 = arith.constant 0 : index
    %0 = vector.load %arg1[%c0, %c0_0] : memref<512x128xbf16, #tpu.memory_space<vmem>>, vector<512x128xbf16>
    %c0_1 = arith.constant 0 : index
    %c0_2 = arith.constant 0 : index
    %1 = vector.load %arg2[%c0_1, %c0_2] : memref<128x16xbf16, #tpu.memory_space<vmem>>, vector<128x16xbf16>
    %cst = arith.constant dense<0.000000e+00> : vector<512x16xf32>
    %2 = tpu.matmul %0, %1, %cst {dimension_numbers = #tpu.dot_dimension_numbers<[1], [0], [0], [1], [0, 0, 1, 1], [], []>} : vector<512x128xbf16>, vector<128x16xbf16>, vector<512x16xf32> -> vector<512x16xf32>
    %cst_3 = arith.constant dense<0.000000e+00> : vector<16xf32>
    %3 = vector.multi_reduction <add>, %2, %cst_3 [0] : vector<512x16xf32> to vector<16xf32>
    %4 = vector.shape_cast %3 : vector<16xf32> to vector<1x16xf32>
    %5 = arith.mulf %2, %2 : vector<512x16xf32>
    %cst_4 = arith.constant dense<0.000000e+00> : vector<16xf32>
    %6 = vector.multi_reduction <add>, %5, %cst_4 [0] : vector<512x16xf32> to vector<16xf32>
    %7 = vector.shape_cast %6 : vector<16xf32> to vector<1x16xf32>
    %cst_5 = arith.constant 0.001953125 : f32
    %8 = vector.broadcast %cst_5 : f32 to vector<1x16xf32>
    %9 = arith.mulf %4, %8 : vector<1x16xf32>
    %cst_6 = arith.constant 0.001953125 : f32
    %10 = vector.broadcast %cst_6 : f32 to vector<1x16xf32>
    %11 = arith.mulf %7, %10 : vector<1x16xf32>
    %12 = arith.mulf %9, %9 : vector<1x16xf32>
    %13 = arith.subf %11, %12 : vector<1x16xf32>
    %cst_7 = arith.constant 0.000000e+00 : f32
    %14 = vector.broadcast %cst_7 : f32 to vector<1x16xf32>
    %15 = arith.maximumf %13, %14 : vector<1x16xf32>
    %16 = vector.broadcast %9 : vector<1x16xf32> to vector<512x16xf32>
    %17 = arith.subf %2, %16 : vector<512x16xf32>
    %c0_8 = arith.constant 0 : index
    %c0_9 = arith.constant 0 : index
    %18 = vector.load %arg3[%c0_8, %c0_9] : memref<1x16xf32, #tpu.memory_space<vmem>>, vector<1x16xf32>
    %cst_10 = arith.constant 9.99999974E-6 : f32
    %19 = vector.broadcast %cst_10 : f32 to vector<1x16xf32>
    %20 = arith.addf %15, %19 : vector<1x16xf32>
    %21 = math.rsqrt %20 : vector<1x16xf32>
    %22 = arith.mulf %18, %21 : vector<1x16xf32>
    %23 = vector.broadcast %22 : vector<1x16xf32> to vector<512x16xf32>
    %24 = arith.mulf %17, %23 : vector<512x16xf32>
    %c0_11 = arith.constant 0 : index
    %c0_12 = arith.constant 0 : index
    %25 = vector.load %arg4[%c0_11, %c0_12] : memref<1x16xf32, #tpu.memory_space<vmem>>, vector<1x16xf32>
    %26 = vector.broadcast %25 : vector<1x16xf32> to vector<512x16xf32>
    %27 = arith.addf %24, %26 : vector<512x16xf32>
    %cst_13 = arith.constant 0.000000e+00 : f32
    %28 = vector.broadcast %cst_13 : f32 to vector<512x16xf32>
    %29 = arith.cmpf oge, %27, %28 : vector<512x16xf32>
    %cst_14 = arith.constant 2.000000e-01 : f32
    %30 = vector.broadcast %cst_14 : f32 to vector<512x16xf32>
    %31 = arith.mulf %30, %27 : vector<512x16xf32>
    %32 = arith.select %29, %27, %31 : vector<512x16xi1>, vector<512x16xf32>
    %33 = arith.truncf %32 : vector<512x16xf32> to vector<512x16xbf16>
    %c0_15 = arith.constant 0 : index
    %c0_16 = arith.constant 0 : index
    %34 = vector.load %arg5[%c0_15, %c0_16] : memref<512x16xbf16, #tpu.memory_space<vmem>>, vector<512x16xbf16>
    tpu.vector_store %arg5[%c0_15, %c0_16], %33 {strides = array<i32>} : memref<512x16xbf16, #tpu.memory_space<vmem>>, vector<512x16xbf16>,
    return
  }
  func.func @transform_0(%arg0: i32) -> (i32, i32) {
    %c0_i32 = arith.constant 0 : i32
    %c0_i32_0 = arith.constant 0 : i32
    %c0_i32_1 = arith.constant 0 : i32
    return %c0_i32, %c0_i32_0 : i32, i32
  }
  func.func @transform_1(%arg0: i32) -> (i32, i32) {
    %c0_i32 = arith.constant 0 : i32
    %c0_i32_0 = arith.constant 0 : i32
    %c0_i32_1 = arith.constant 0 : i32
    return %c0_i32, %c0_i32_0 : i32, i32
  }
  func.func @transform_2(%arg0: i32) -> (i32, i32) {
    %c0_i32 = arith.constant 0 : i32
    %c0_i32_0 = arith.constant 0 : i32
    %c0_i32_1 = arith.constant 0 : i32
    return %c0_i32, %c0_i32_0 : i32, i32
  }
  func.func @transform_3(%arg0: i32) -> (i32, i32) {
    %c0_i32 = arith.constant 0 : i32
    %c0_i32_0 = arith.constant 0 : i32
    %c0_i32_1 = arith.constant 0 : i32
    return %c0_i32, %c0_i32_0 : i32, i32
  }
  func.func @transform_4(%arg0: i32) -> (i32, i32) {
    %c0_i32 = arith.constant 0 : i32
    %c0_i32_0 = arith.constant 0 : i32
    %c0_i32_1 = arith.constant 0 : i32
    return %c0_i32, %c0_i32_0 : i32, i32
  }
}

module attributes {stable_mosaic.version = 11 : i64} {
  func.func @kern(%arg0: i32, %arg1: memref<128x256xbf16, #tpu.memory_space<vmem>>, %arg2: memref<256x32xbf16, #tpu.memory_space<vmem>>, %arg3: memref<1x32xf32, #tpu.memory_space<vmem>>, %arg4: memref<1x32xf32, #tpu.memory_space<vmem>>, %arg5: memref<128x32xbf16, #tpu.memory_space<vmem>>) attributes {dimension_semantics = [#tpu.dimension_semantics<arbitrary>], iteration_bounds = array<i64: 1>, scalar_prefetch = 0 : i64, scratch_operands = 0 : i64, tpu.core_type = #tpu.core_type<tc>, window_params = [{pipeline_mode = #tpu.pipeline_mode<synchronous>, transform_indices = @transform_0, window_bounds = array<i64: 128, 256>}, {pipeline_mode = #tpu.pipeline_mode<synchronous>, transform_indices = @transform_1, window_bounds = array<i64: 256, 32>}, {pipeline_mode = #tpu.pipeline_mode<synchronous>, transform_indices = @transform_2, window_bounds = array<i64: 1, 32>}, {pipeline_mode = #tpu.pipeline_mode<synchronous>, transform_indices = @transform_3, window_bounds = array<i64: 1, 32>}, {pipeline_mode = #tpu.pipeline_mode<synchronous>, transform_indices = @transform_4, window_bounds = array<i64: 128, 32>}]} {
    %c0 = arith.constant 0 : index
    %c0_0 = arith.constant 0 : index
    %0 = vector.load %arg1[%c0, %c0_0] : memref<128x256xbf16, #tpu.memory_space<vmem>>, vector<128x256xbf16>
    %c0_1 = arith.constant 0 : index
    %c0_2 = arith.constant 0 : index
    %1 = vector.load %arg2[%c0_1, %c0_2] : memref<256x32xbf16, #tpu.memory_space<vmem>>, vector<256x32xbf16>
    %cst = arith.constant dense<0.000000e+00> : vector<128x32xf32>
    %2 = tpu.matmul %0, %1, %cst {dimension_numbers = #tpu.dot_dimension_numbers<[1], [0], [0], [1], [0, 0, 1, 1], [], []>} : vector<128x256xbf16>, vector<256x32xbf16>, vector<128x32xf32> -> vector<128x32xf32>
    %cst_3 = arith.constant dense<0.000000e+00> : vector<32xf32>
    %3 = vector.multi_reduction <add>, %2, %cst_3 [0] : vector<128x32xf32> to vector<32xf32>
    %4 = vector.shape_cast %3 : vector<32xf32> to vector<1x32xf32>
    %5 = arith.mulf %2, %2 : vector<128x32xf32>
    %cst_4 = arith.constant dense<0.000000e+00> : vector<32xf32>
    %6 = vector.multi_reduction <add>, %5, %cst_4 [0] : vector<128x32xf32> to vector<32xf32>
    %7 = vector.shape_cast %6 : vector<32xf32> to vector<1x32xf32>
    %cst_5 = arith.constant 7.812500e-03 : f32
    %8 = vector.broadcast %cst_5 : f32 to vector<1x32xf32>
    %9 = arith.mulf %4, %8 : vector<1x32xf32>
    %cst_6 = arith.constant 7.812500e-03 : f32
    %10 = vector.broadcast %cst_6 : f32 to vector<1x32xf32>
    %11 = arith.mulf %7, %10 : vector<1x32xf32>
    %12 = arith.mulf %9, %9 : vector<1x32xf32>
    %13 = arith.subf %11, %12 : vector<1x32xf32>
    %cst_7 = arith.constant 0.000000e+00 : f32
    %14 = vector.broadcast %cst_7 : f32 to vector<1x32xf32>
    %15 = arith.maximumf %13, %14 : vector<1x32xf32>
    %16 = vector.broadcast %9 : vector<1x32xf32> to vector<128x32xf32>
    %17 = arith.subf %2, %16 : vector<128x32xf32>
    %c0_8 = arith.constant 0 : index
    %c0_9 = arith.constant 0 : index
    %18 = vector.load %arg3[%c0_8, %c0_9] : memref<1x32xf32, #tpu.memory_space<vmem>>, vector<1x32xf32>
    %cst_10 = arith.constant 9.99999974E-6 : f32
    %19 = vector.broadcast %cst_10 : f32 to vector<1x32xf32>
    %20 = arith.addf %15, %19 : vector<1x32xf32>
    %21 = math.rsqrt %20 : vector<1x32xf32>
    %22 = arith.mulf %18, %21 : vector<1x32xf32>
    %23 = vector.broadcast %22 : vector<1x32xf32> to vector<128x32xf32>
    %24 = arith.mulf %17, %23 : vector<128x32xf32>
    %c0_11 = arith.constant 0 : index
    %c0_12 = arith.constant 0 : index
    %25 = vector.load %arg4[%c0_11, %c0_12] : memref<1x32xf32, #tpu.memory_space<vmem>>, vector<1x32xf32>
    %26 = vector.broadcast %25 : vector<1x32xf32> to vector<128x32xf32>
    %27 = arith.addf %24, %26 : vector<128x32xf32>
    %cst_13 = arith.constant 0.000000e+00 : f32
    %28 = vector.broadcast %cst_13 : f32 to vector<128x32xf32>
    %29 = arith.cmpf oge, %27, %28 : vector<128x32xf32>
    %cst_14 = arith.constant 2.000000e-01 : f32
    %30 = vector.broadcast %cst_14 : f32 to vector<128x32xf32>
    %31 = arith.mulf %30, %27 : vector<128x32xf32>
    %32 = arith.select %29, %27, %31 : vector<128x32xi1>, vector<128x32xf32>
    %33 = arith.truncf %32 : vector<128x32xf32> to vector<128x32xbf16>
    %c0_15 = arith.constant 0 : index
    %c0_16 = arith.constant 0 : index
    %34 = vector.load %arg5[%c0_15, %c0_16] : memref<128x32xbf16, #tpu.memory_space<vmem>>, vector<128x32xbf16>
    tpu.vector_store %arg5[%c0_15, %c0_16], %33 {strides = array<i32>} : memref<128x32xbf16, #tpu.memory_space<vmem>>, vector<128x32xbf16>,
    return
  }
  func.func @transform_0(%arg0: i32) -> (i32, i32) {
    %c0_i32 = arith.constant 0 : i32
    %c0_i32_0 = arith.constant 0 : i32
    %c0_i32_1 = arith.constant 0 : i32
    return %c0_i32, %c0_i32_0 : i32, i32
  }
  func.func @transform_1(%arg0: i32) -> (i32, i32) {
    %c0_i32 = arith.constant 0 : i32
    %c0_i32_0 = arith.constant 0 : i32
    %c0_i32_1 = arith.constant 0 : i32
    return %c0_i32, %c0_i32_0 : i32, i32
  }
  func.func @transform_2(%arg0: i32) -> (i32, i32) {
    %c0_i32 = arith.constant 0 : i32
    %c0_i32_0 = arith.constant 0 : i32
    %c0_i32_1 = arith.constant 0 : i32
    return %c0_i32, %c0_i32_0 : i32, i32
  }
  func.func @transform_3(%arg0: i32) -> (i32, i32) {
    %c0_i32 = arith.constant 0 : i32
    %c0_i32_0 = arith.constant 0 : i32
    %c0_i32_1 = arith.constant 0 : i32
    return %c0_i32, %c0_i32_0 : i32, i32
  }
  func.func @transform_4(%arg0: i32) -> (i32, i32) {
    %c0_i32 = arith.constant 0 : i32
    %c0_i32_0 = arith.constant 0 : i32
    %c0_i32_1 = arith.constant 0 : i32
    return %c0_i32, %c0_i32_0 : i32, i32
  }
}

module attributes {stable_mosaic.version = 11 : i64} {
  func.func @kern(%arg0: i32, %arg1: memref<32x512xbf16, #tpu.memory_space<vmem>>, %arg2: memref<512x64xbf16, #tpu.memory_space<vmem>>, %arg3: memref<1x64xf32, #tpu.memory_space<vmem>>, %arg4: memref<1x64xf32, #tpu.memory_space<vmem>>, %arg5: memref<32x64xf32, #tpu.memory_space<vmem>>, %arg6: memref<2x32xf32, #tpu.memory_space<vmem>>, %arg7: memref<2x1xf32, #tpu.memory_space<vmem>>) attributes {dimension_semantics = [#tpu.dimension_semantics<arbitrary>], iteration_bounds = array<i64: 1>, scalar_prefetch = 0 : i64, scratch_operands = 0 : i64, tpu.core_type = #tpu.core_type<tc>, window_params = [{pipeline_mode = #tpu.pipeline_mode<synchronous>, transform_indices = @transform_0, window_bounds = array<i64: 32, 512>}, {pipeline_mode = #tpu.pipeline_mode<synchronous>, transform_indices = @transform_1, window_bounds = array<i64: 512, 64>}, {pipeline_mode = #tpu.pipeline_mode<synchronous>, transform_indices = @transform_2, window_bounds = array<i64: 1, 64>}, {pipeline_mode = #tpu.pipeline_mode<synchronous>, transform_indices = @transform_3, window_bounds = array<i64: 1, 64>}, {pipeline_mode = #tpu.pipeline_mode<synchronous>, transform_indices = @transform_4, window_bounds = array<i64: 32, 64>}, {pipeline_mode = #tpu.pipeline_mode<synchronous>, transform_indices = @transform_5, window_bounds = array<i64: 2, 32>}, {pipeline_mode = #tpu.pipeline_mode<synchronous>, transform_indices = @transform_6, window_bounds = array<i64: 2, 1>}]} {
    %c0 = arith.constant 0 : index
    %c0_0 = arith.constant 0 : index
    %0 = vector.load %arg1[%c0, %c0_0] : memref<32x512xbf16, #tpu.memory_space<vmem>>, vector<32x512xbf16>
    %c0_1 = arith.constant 0 : index
    %c0_2 = arith.constant 0 : index
    %1 = vector.load %arg2[%c0_1, %c0_2] : memref<512x64xbf16, #tpu.memory_space<vmem>>, vector<512x64xbf16>
    %cst = arith.constant dense<0.000000e+00> : vector<32x64xf32>
    %2 = tpu.matmul %0, %1, %cst {dimension_numbers = #tpu.dot_dimension_numbers<[1], [0], [0], [1], [0, 0, 1, 1], [], []>} : vector<32x512xbf16>, vector<512x64xbf16>, vector<32x64xf32> -> vector<32x64xf32>
    %cst_3 = arith.constant dense<0.000000e+00> : vector<64xf32>
    %3 = vector.multi_reduction <add>, %2, %cst_3 [0] : vector<32x64xf32> to vector<64xf32>
    %4 = vector.shape_cast %3 : vector<64xf32> to vector<1x64xf32>
    %5 = arith.mulf %2, %2 : vector<32x64xf32>
    %cst_4 = arith.constant dense<0.000000e+00> : vector<64xf32>
    %6 = vector.multi_reduction <add>, %5, %cst_4 [0] : vector<32x64xf32> to vector<64xf32>
    %7 = vector.shape_cast %6 : vector<64xf32> to vector<1x64xf32>
    %cst_5 = arith.constant 3.125000e-02 : f32
    %8 = vector.broadcast %cst_5 : f32 to vector<1x64xf32>
    %9 = arith.mulf %4, %8 : vector<1x64xf32>
    %cst_6 = arith.constant 3.125000e-02 : f32
    %10 = vector.broadcast %cst_6 : f32 to vector<1x64xf32>
    %11 = arith.mulf %7, %10 : vector<1x64xf32>
    %12 = arith.mulf %9, %9 : vector<1x64xf32>
    %13 = arith.subf %11, %12 : vector<1x64xf32>
    %cst_7 = arith.constant 0.000000e+00 : f32
    %14 = vector.broadcast %cst_7 : f32 to vector<1x64xf32>
    %15 = arith.maximumf %13, %14 : vector<1x64xf32>
    %16 = vector.broadcast %9 : vector<1x64xf32> to vector<32x64xf32>
    %17 = arith.subf %2, %16 : vector<32x64xf32>
    %c0_8 = arith.constant 0 : index
    %c0_9 = arith.constant 0 : index
    %18 = vector.load %arg3[%c0_8, %c0_9] : memref<1x64xf32, #tpu.memory_space<vmem>>, vector<1x64xf32>
    %cst_10 = arith.constant 9.99999974E-6 : f32
    %19 = vector.broadcast %cst_10 : f32 to vector<1x64xf32>
    %20 = arith.addf %15, %19 : vector<1x64xf32>
    %21 = math.rsqrt %20 : vector<1x64xf32>
    %22 = arith.mulf %18, %21 : vector<1x64xf32>
    %23 = vector.broadcast %22 : vector<1x64xf32> to vector<32x64xf32>
    %24 = arith.mulf %17, %23 : vector<32x64xf32>
    %c0_11 = arith.constant 0 : index
    %c0_12 = arith.constant 0 : index
    %25 = vector.load %arg4[%c0_11, %c0_12] : memref<1x64xf32, #tpu.memory_space<vmem>>, vector<1x64xf32>
    %26 = vector.broadcast %25 : vector<1x64xf32> to vector<32x64xf32>
    %27 = arith.addf %24, %26 : vector<32x64xf32>
    %cst_13 = arith.constant 0.000000e+00 : f32
    %28 = vector.broadcast %cst_13 : f32 to vector<32x64xf32>
    %29 = arith.cmpf oge, %27, %28 : vector<32x64xf32>
    %cst_14 = arith.constant 2.000000e-01 : f32
    %30 = vector.broadcast %cst_14 : f32 to vector<32x64xf32>
    %31 = arith.mulf %30, %27 : vector<32x64xf32>
    %32 = arith.select %29, %27, %31 : vector<32x64xi1>, vector<32x64xf32>
    %c0_15 = arith.constant 0 : index
    %c0_16 = arith.constant 0 : index
    %33 = vector.load %arg6[%c0_15, %c0_16] : memref<2x32xf32, #tpu.memory_space<vmem>>, vector<2x32xf32>
    %c0_17 = arith.constant 0 : index
    %c0_18 = arith.constant 0 : index
    %34 = vector.load %arg5[%c0_17, %c0_18] : memref<32x64xf32, #tpu.memory_space<vmem>>, vector<32x64xf32>
    %35 = arith.mulf %32, %34 : vector<32x64xf32>
    %cst_19 = arith.constant dense<0.000000e+00> : vector<2x64xf32>
    %36 = tpu.matmul %33, %35, %cst_19 {dimension_numbers = #tpu.dot_dimension_numbers<[1], [0], [0], [1], [0, 0, 1, 1], [], []>} : vector<2x32xf32>, vector<32x64xf32>, vector<2x64xf32> -> vector<2x64xf32>
    %cst_20 = arith.constant dense<0.000000e+00> : vector<2xf32>
    %37 = vector.multi_reduction <add>, %36, %cst_20 [1] : vector<2x64xf32> to vector<2xf32>
    %38 = vector.shape_cast %37 : vector<2xf32> to vector<2x1xf32>
    %39 = arith.negf %38 : vector<2x1xf32>
    %40 = math.exp %39 : vector<2x1xf32>
    %cst_21 = arith.constant 1.000000e+00 : f32
    %41 = vector.broadcast %cst_21 : f32 to vector<2x1xf32>
    %42 = arith.addf %41, %40 : vector<2x1xf32>
    %43 = arith.divf %41, %42 : vector<2x1xf32>
    %c0_22 = arith.constant 0 : index
    %c0_23 = arith.constant 0 : index
    %44 = vector.load %arg7[%c0_22, %c0_23] : memref<2x1xf32, #tpu.memory_space<vmem>>, vector<2x1xf32>
    tpu.vector_store %arg7[%c0_22, %c0_23], %43 {strides = array<i32>} : memref<2x1xf32, #tpu.memory_space<vmem>>, vector<2x1xf32>,
    return
  }
  func.func @transform_0(%arg0: i32) -> (i32, i32) {
    %c0_i32 = arith.constant 0 : i32
    %c0_i32_0 = arith.constant 0 : i32
    %c0_i32_1 = arith.constant 0 : i32
    return %c0_i32, %c0_i32_0 : i32, i32
  }
  func.func @transform_1(%arg0: i32) -> (i32, i32) {
    %c0_i32 = arith.constant 0 : i32
    %c0_i32_0 = arith.constant 0 : i32
    %c0_i32_1 = arith.constant 0 : i32
    return %c0_i32, %c0_i32_0 : i32, i32
  }
  func.func @transform_2(%arg0: i32) -> (i32, i32) {
    %c0_i32 = arith.constant 0 : i32
    %c0_i32_0 = arith.constant 0 : i32
    %c0_i32_1 = arith.constant 0 : i32
    return %c0_i32, %c0_i32_0 : i32, i32
  }
  func.func @transform_3(%arg0: i32) -> (i32, i32) {
    %c0_i32 = arith.constant 0 : i32
    %c0_i32_0 = arith.constant 0 : i32
    %c0_i32_1 = arith.constant 0 : i32
    return %c0_i32, %c0_i32_0 : i32, i32
  }
  func.func @transform_4(%arg0: i32) -> (i32, i32) {
    %c0_i32 = arith.constant 0 : i32
    %c0_i32_0 = arith.constant 0 : i32
    %c0_i32_1 = arith.constant 0 : i32
    return %c0_i32, %c0_i32_0 : i32, i32
  }
  func.func @transform_5(%arg0: i32) -> (i32, i32) {
    %c0_i32 = arith.constant 0 : i32
    %c0_i32_0 = arith.constant 0 : i32
    %c0_i32_1 = arith.constant 0 : i32
    return %c0_i32, %c0_i32_0 : i32, i32
  }
  func.func @transform_6(%arg0: i32) -> (i32, i32) {
    %c0_i32 = arith.constant 0 : i32
    %c0_i32_0 = arith.constant 0 : i32
    %c0_i32_1 = arith.constant 0 : i32
    return %c0_i32, %c0_i32_0 : i32, i32
  }
}

</mosaic_0001>

<bundles_post_ra>
// kernel: discriminator_forward.4
= control target key start
LH: loop header
LB: loop body
LE: loop exit
PB: predicated region body
PF: predicated region fallthrough
CT: control target
= control target key end

     0   :  { %vm932_vm0 = vcmask 392192   ;;  %vm2990_vm3 = vcmask 60416   ;;  %s5603_s1 = inlined_call_operand.vmem [shape: bf16[48,8], index: 1, kind: input, shape index: {}]   ;;  %s5604_s0 = inlined_call_operand.vmem [shape: bf16[2048,48], index: 0, kind: input, shape index: {}]   ;;  %s5605_s2 = inlined_call_operand.vmem [shape: bf16[2048,8], index: 2, kind: output, shape index: {}]  }
   0x1   :  { %v4033_v0 = vld [vmem:[%s5603_s1 + $0x10] sm:$0xff]  ;;  %v4032_v1 = vld [vmem:[%s5603_s1 + $0x8] sm:$0xff]  ;;  %v4031_v2 = vld [vmem:[%s5603_s1] sm:$0xff] }
   0x2   :  { %1322 = vmatpush.bf16.msra.mxu0 %v4033_v0  ;;  %4034 = vmatpush.bf16.msra.mxu1 %v4033_v0  ;;  %v3903_v3 = vld [vmem:[%s5604_s0] sm:$0xff]  ;;  %v3904_v7 = vld [vmem:[%s5604_s0 + $0x8] sm:$0xff]  ;;  %v3905_v11 = vld [vmem:[%s5604_s0 + $0x10] sm:$0xff] }
   0x3   :  { %4035 = vmatpush.bf16.msra.mxu2 %v4033_v0  ;;  %4036 = vmatpush.bf16.msra.mxu3 %v4033_v0  ;;  %v3935_v4 = vld [vmem:[%s5604_s0 + $0x100] sm:$0xff]  ;;  %v3936_v8 = vld [vmem:[%s5604_s0 + $0x108] sm:$0xff]  ;;  %v3937_v12 = vld [vmem:[%s5604_s0 + $0x110] sm:$0xff] }
   0x4   :  { %v3967_v5 = vld [vmem:[%s5604_s0 + $0x200] sm:$0xff]  ;;  %v3968_v9 = vld [vmem:[%s5604_s0 + $0x208] sm:$0xff]  ;;  %v3969_v13 = vld [vmem:[%s5604_s0 + $0x210] sm:$0xff] }
   0x5   :  { %v3999_v6 = vld [vmem:[%s5604_s0 + $0x300] sm:$0xff]  ;;  %v4000_v10 = vld [vmem:[%s5604_s0 + $0x308] sm:$0xff]  ;;  %v4001_v14 = vld [vmem:[%s5604_s0 + $0x310] sm:$0xff] }
   0x6   :  { %1323 = vmatpush.bf16.msra.mxu0 %v4032_v1  ;;  %4037 = vmatpush.bf16.msra.mxu1 %v4032_v1  ;;  %v3906_v15 = vld [vmem:[%s5604_s0 + $0x18] sm:$0xff]  ;;  %v3907_v19 = vld [vmem:[%s5604_s0 + $0x20] sm:$0xff]  ;;  %v3908_v23 = vld [vmem:[%s5604_s0 + $0x28] sm:$0xff] }
   0x7   :  { %4038 = vmatpush.bf16.msra.mxu2 %v4032_v1  ;;  %4039 = vmatpush.bf16.msra.mxu3 %v4032_v1  ;;  %v3938_v16 = vld [vmem:[%s5604_s0 + $0x118] sm:$0xff]  ;;  %v3939_v20 = vld [vmem:[%s5604_s0 + $0x120] sm:$0xff]  ;;  %v3940_v24 = vld [vmem:[%s5604_s0 + $0x128] sm:$0xff] }
   0x8   :  { %v3970_v17 = vld [vmem:[%s5604_s0 + $0x218] sm:$0xff]  ;;  %v3971_v21 = vld [vmem:[%s5604_s0 + $0x220] sm:$0xff]  ;;  %v3972_v25 = vld [vmem:[%s5604_s0 + $0x228] sm:$0xff] }
   0x9   :  { %v4002_v18 = vld [vmem:[%s5604_s0 + $0x318] sm:$0xff]  ;;  %v4003_v22 = vld [vmem:[%s5604_s0 + $0x320] sm:$0xff]  ;;  %v4004_v26 = vld [vmem:[%s5604_s0 + $0x328] sm:$0xff] }
   0xa   :  { %1324 = vmatpush.bf16.msra.mxu0 %v4031_v2  ;;  %4040 = vmatpush.bf16.msra.mxu1 %v4031_v2  ;;  %v3909_v27 = vld [vmem:[%s5604_s0 + $0x30] sm:$0xff]  ;;  %v3910_v31 = vld [vmem:[%s5604_s0 + $0x38] sm:$0xff]  ;;  %v3911_v35 = vld [vmem:[%s5604_s0 + $0x40] sm:$0xff] }
   0xb   :  { %4041 = vmatpush.bf16.msra.mxu2 %v4031_v2  ;;  %4042 = vmatpush.bf16.msra.mxu3 %v4031_v2  ;;  %v3941_v28 = vld [vmem:[%s5604_s0 + $0x130] sm:$0xff]  ;;  %v3942_v32 = vld [vmem:[%s5604_s0 + $0x138] sm:$0xff]  ;;  %v3943_v36 = vld [vmem:[%s5604_s0 + $0x140] sm:$0xff] }
   0xc   :  { %v3973_v29 = vld [vmem:[%s5604_s0 + $0x230] sm:$0xff]  ;;  %v3974_v33 = vld [vmem:[%s5604_s0 + $0x238] sm:$0xff]  ;;  %v3975_v39 = vld [vmem:[%s5604_s0 + $0x240] sm:$0xff] }
   0xd   :  { %3775 = vmatmul.msk.bf16.vlgmr.msra.gmra.mxu0 %vm932_vm0, %v3903_v3  ;;  %3807 = vmatmul.msk.bf16.vlgmr.msra.gmra.mxu1 %vm932_vm0, %v3935_v4  ;;  %v4005_v30 = vld [vmem:[%s5604_s0 + $0x330] sm:$0xff]  ;;  %v4006_v34 = vld [vmem:[%s5604_s0 + $0x338] sm:$0xff]  ;;  %v4007_v40 = vld [vmem:[%s5604_s0 + $0x340] sm:$0xff] }
   0xe   :  { %3839 = vmatmul.msk.bf16.vlgmr.msra.gmra.mxu2 %vm932_vm0, %v3967_v5  ;;  %3871 = vmatmul.msk.bf16.vlgmr.msra.gmra.mxu3 %vm932_vm0, %v3999_v6  ;;  %v3912_v63 = vld [vmem:[%s5604_s0 + $0x48] sm:$0xff] }
   0xf   :  { %v3944_v2 = vld [vmem:[%s5604_s0 + $0x148] sm:$0xff] }
  0x10   :  { %v3976_v3 = vld [vmem:[%s5604_s0 + $0x248] sm:$0xff] }
  0x11   :  { %v4008_v4 = vld [vmem:[%s5604_s0 + $0x348] sm:$0xff] }
  0x1d   :  { %3776 = vmatmul.msk.bf16.gmra.mxu0 %vm932_vm0, %v3904_v7  ;;  %3808 = vmatmul.msk.bf16.gmra.mxu1 %vm932_vm0, %v3936_v8 }
  0x1e   :  { %3840 = vmatmul.msk.bf16.gmra.mxu2 %vm932_vm0, %v3968_v9  ;;  %3872 = vmatmul.msk.bf16.gmra.mxu3 %vm932_vm0, %v4000_v10 }
  0x2d   :  { %3777 = vmatmul.msk.bf16.gmra.mxu0 %vm932_vm0, %v3905_v11  ;;  %3809 = vmatmul.msk.bf16.gmra.mxu1 %vm932_vm0, %v3937_v12 }
  0x2e   :  { %3841 = vmatmul.msk.bf16.gmra.mxu2 %vm932_vm0, %v3969_v13  ;;  %3873 = vmatmul.msk.bf16.gmra.mxu3 %vm932_vm0, %v4001_v14 }
  0x3d   :  { %3778 = vmatmul.msk.bf16.gmra.mxu0 %vm932_vm0, %v3906_v15  ;;  %3810 = vmatmul.msk.bf16.gmra.mxu1 %vm932_vm0, %v3938_v16 }
  0x3e   :  { %3842 = vmatmul.msk.bf16.gmra.mxu2 %vm932_vm0, %v3970_v17  ;;  %3874 = vmatmul.msk.bf16.gmra.mxu3 %vm932_vm0, %v4002_v18 }
  0x4d   :  { %3779 = vmatmul.msk.bf16.gmra.mxu0 %vm932_vm0, %v3907_v19  ;;  %3811 = vmatmul.msk.bf16.gmra.mxu1 %vm932_vm0, %v3939_v20 }
  0x4e   :  { %3843 = vmatmul.msk.bf16.gmra.mxu2 %vm932_vm0, %v3971_v21  ;;  %3875 = vmatmul.msk.bf16.gmra.mxu3 %vm932_vm0, %v4003_v22 }
  0x5d   :  { %3780 = vmatmul.msk.bf16.gmra.mxu0 %vm932_vm0, %v3908_v23  ;;  %3812 = vmatmul.msk.bf16.gmra.mxu1 %vm932_vm0, %v3940_v24 }
  0x5e   :  { %3844 = vmatmul.msk.bf16.gmra.mxu2 %vm932_vm0, %v3972_v25  ;;  %3876 = vmatmul.msk.bf16.gmra.mxu3 %vm932_vm0, %v4004_v26 }
  0x6d   :  { %3781 = vmatmul.msk.bf16.gmra.mxu0 %vm932_vm0, %v3909_v27  ;;  %3813 = vmatmul.msk.bf16.gmra.mxu1 %vm932_vm0, %v3941_v28 }
  0x6e   :  { %3845 = vmatmul.msk.bf16.gmra.mxu2 %vm932_vm0, %v3973_v29  ;;  %3877 = vmatmul.msk.bf16.gmra.mxu3 %vm932_vm0, %v4005_v30 }
  0x7d   :  { %3782 = vmatmul.msk.bf16.gmra.mxu0 %vm932_vm0, %v3910_v31  ;;  %3814 = vmatmul.msk.bf16.gmra.mxu1 %vm932_vm0, %v3942_v32 }
  0x7e   :  { %3846 = vmatmul.msk.bf16.gmra.mxu2 %vm932_vm0, %v3974_v33  ;;  %3878 = vmatmul.msk.bf16.gmra.mxu3 %vm932_vm0, %v4006_v34 }
  0x8a   :  { %v1326_v37 = vpop.f32.mrf.mxu0  ;;  %v1486_v38 = vpop.f32.mrf.mxu1 }
  0x8b   :  { %vm1966_vm1 = vcmp.ge.f32.partialorder %v1326_v37, 0.0  ;;  %v2222_v41 = vmul.f32 0.2, %v1326_v37  ;;  %vm2030_vm2 = vcmp.ge.f32.partialorder %v1486_v38, 0.0  ;;  %v2286_v42 = vmul.f32 0.2, %v1486_v38 }
  0x8d   :  { %v2478_v43 = vsel %vm1966_vm1, %v1326_v37, %v2222_v41  ;;  %v2542_v44 = vsel %vm2030_vm2, %v1486_v38, %v2286_v42  ;;  %3783 = vmatmul.msk.bf16.gmra.mxu0 %vm932_vm0, %v3911_v35  ;;  %3815 = vmatmul.msk.bf16.gmra.mxu1 %vm932_vm0, %v3943_v36  ;;  %v3913_v35 = vld [vmem:[%s5604_s0 + $0x50] sm:$0xff] }
  0x8e   :  { %v2734_v45 = vpack.c.bf16 %v2478_v43, %v2478_v43  ;;  %v2798_v46 = vpack.c.bf16 %v2542_v44, %v2542_v44  ;;  %3847 = vmatmul.msk.bf16.gmra.mxu2 %vm932_vm0, %v3975_v39  ;;  %3879 = vmatmul.msk.bf16.gmra.mxu3 %vm932_vm0, %v4007_v40  ;;  %v3945_v38 = vld [vmem:[%s5604_s0 + $0x150] sm:$0xff] }
  0x8f   :  { %v3977_v39 = vld [vmem:[%s5604_s0 + $0x250] sm:$0xff] }
  0x90   :  { %2991 = vst.msk [vmem:[%s5605_s2] sm:$0xf] %vm2990_vm3, %v2734_v45  ;;  %v4009_v40 = vld [vmem:[%s5604_s0 + $0x350] sm:$0xff] }
  0x91   :  { %3055 = vst.msk [vmem:[%s5605_s2 + $0x100] sm:$0xf] %vm2990_vm3, %v2798_v46  ;;  %v1646_v47 = vpop.f32.mrf.mxu2  ;;  %v1806_v48 = vpop.f32.mrf.mxu3 }
  0x92   :  { %vm2094_vm4 = vcmp.ge.f32.partialorder %v1646_v47, 0.0  ;;  %v2350_v49 = vmul.f32 0.2, %v1646_v47  ;;  %vm2158_vm5 = vcmp.ge.f32.partialorder %v1806_v48, 0.0  ;;  %v2414_v50 = vmul.f32 0.2, %v1806_v48  ;;  %v1328_v51 = vpop.f32.mrf.mxu0  ;;  %v1488_v52 = vpop.f32.mrf.mxu1 }
  0x93   :  { %vm1967_vm6 = vcmp.ge.f32.partialorder %v1328_v51, 0.0  ;;  %v2223_v53 = vmul.f32 0.2, %v1328_v51  ;;  %vm2031_vm7 = vcmp.ge.f32.partialorder %v1488_v52, 0.0  ;;  %v2287_v54 = vmul.f32 0.2, %v1488_v52 }
  0x94   :  { %v2606_v55 = vsel %vm2094_vm4, %v1646_v47, %v2350_v49  ;;  %v2670_v56 = vsel %vm2158_vm5, %v1806_v48, %v2414_v50 }
  0x95   :  { %v2862_v57 = vpack.c.bf16 %v2606_v55, %v2606_v55  ;;  %v2926_v58 = vpack.c.bf16 %v2670_v56, %v2670_v56  ;;  %v2479_v59 = vsel %vm1967_vm6, %v1328_v51, %v2223_v53  ;;  %v2543_v60 = vsel %vm2031_vm7, %v1488_v52, %v2287_v54 }
  0x96   :  { %v2735_v61 = vpack.c.bf16 %v2479_v59, %v2479_v59  ;;  %v2799_v62 = vpack.c.bf16 %v2543_v60, %v2543_v60 }
  0x97   :  { %3119 = vst.msk [vmem:[%s5605_s2 + $0x200] sm:$0xf] %vm2990_vm3, %v2862_v57 }
  0x98   :  { %3183 = vst.msk [vmem:[%s5605_s2 + $0x300] sm:$0xf] %vm2990_vm3, %v2926_v58 }
  0x99   :  { %2992 = vst.msk [vmem:[%s5605_s2 + $0x4] sm:$0xf] %vm2990_vm3, %v2735_v61  ;;  %v1648_v0 = vpop.f32.mrf.mxu2  ;;  %v1808_v1 = vpop.f32.mrf.mxu3 }
  0x9a   :  { %3056 = vst.msk [vmem:[%s5605_s2 + $0x104] sm:$0xf] %vm2990_vm3, %v2799_v62  ;;  %vm2095_vm8 = vcmp.ge.f32.partialorder %v1648_v0, 0.0  ;;  %v2351_v5 = vmul.f32 0.2, %v1648_v0  ;;  %vm2159_vm9 = vcmp.ge.f32.partialorder %v1808_v1, 0.0  ;;  %v1331_v6 = vpop.f32.mrf.mxu0  ;;  %v1491_v7 = vpop.f32.mrf.mxu1 }
  0x9b   :  { %v2415_v8 = vmul.f32 0.2, %v1808_v1  ;;  %vm1968_vm10 = vcmp.ge.f32.partialorder %v1331_v6, 0.0  ;;  %v2224_v9 = vmul.f32 0.2, %v1331_v6  ;;  %vm2032_vm11 = vcmp.ge.f32.partialorder %v1491_v7, 0.0 }
  0x9c   :  { %v2607_v10 = vsel %vm2095_vm8, %v1648_v0, %v2351_v5  ;;  %v2288_v11 = vmul.f32 0.2, %v1491_v7 }
  0x9d   :  { %v2863_v12 = vpack.c.bf16 %v2607_v10, %v2607_v10  ;;  %v2671_v13 = vsel %vm2159_vm9, %v1808_v1, %v2415_v8  ;;  %v2480_v14 = vsel %vm1968_vm10, %v1331_v6, %v2224_v9  ;;  %3784 = vmatmul.msk.bf16.gmra.mxu0 %vm932_vm0, %v3912_v63  ;;  %3816 = vmatmul.msk.bf16.gmra.mxu1 %vm932_vm0, %v3944_v2  ;;  %v3946_v10 = vld [vmem:[%s5604_s0 + $0x158] sm:$0xff] }
  0x9e   :  { %v2927_v15 = vpack.c.bf16 %v2671_v13, %v2671_v13  ;;  %v2736_v16 = vpack.c.bf16 %v2480_v14, %v2480_v14  ;;  %v2544_v17 = vsel %vm2032_vm11, %v1491_v7, %v2288_v11  ;;  %3848 = vmatmul.msk.bf16.gmra.mxu2 %vm932_vm0, %v3976_v3  ;;  %3880 = vmatmul.msk.bf16.gmra.mxu3 %vm932_vm0, %v4008_v4  ;;  %v3914_v7 = vld [vmem:[%s5604_s0 + $0x58] sm:$0xff] }
  0x9f   :  { %3120 = vst.msk [vmem:[%s5605_s2 + $0x204] sm:$0xf] %vm2990_vm3, %v2863_v12  ;;  %v2800_v18 = vpack.c.bf16 %v2544_v17, %v2544_v17  ;;  %v3978_v11 = vld [vmem:[%s5604_s0 + $0x258] sm:$0xff] }
  0xa0   :  { %3184 = vst.msk [vmem:[%s5605_s2 + $0x304] sm:$0xf] %vm2990_vm3, %v2927_v15  ;;  %v4010_v12 = vld [vmem:[%s5604_s0 + $0x358] sm:$0xff] }
  0xa1   :  { %2993 = vst.msk [vmem:[%s5605_s2 + $0x8] sm:$0xf] %vm2990_vm3, %v2736_v16  ;;  %v1651_v19 = vpop.f32.mrf.mxu2  ;;  %v1811_v20 = vpop.f32.mrf.mxu3 }
  0xa2   :  { %3057 = vst.msk [vmem:[%s5605_s2 + $0x108] sm:$0xf] %vm2990_vm3, %v2800_v18  ;;  %vm2096_vm12 = vcmp.ge.f32.partialorder %v1651_v19, 0.0  ;;  %v2352_v21 = vmul.f32 0.2, %v1651_v19  ;;  %vm2160_vm13 = vcmp.ge.f32.partialorder %v1811_v20, 0.0  ;;  %v1333_v22 = vpop.f32.mrf.mxu0  ;;  %v1493_v23 = vpop.f32.mrf.mxu1 }
  0xa3   :  { %v2416_v24 = vmul.f32 0.2, %v1811_v20  ;;  %vm1969_vm14 = vcmp.ge.f32.partialorder %v1333_v22, 0.0  ;;  %v2225_v25 = vmul.f32 0.2, %v1333_v22  ;;  %vm2033_vm15 = vcmp.ge.f32.partialorder %v1493_v23, 0.0 }
  0xa4   :  { %v2608_v26 = vsel %vm2096_vm12, %v1651_v19, %v2352_v21  ;;  %v2289_v27 = vmul.f32 0.2, %v1493_v23 }
  0xa5   :  { %v2864_v28 = vpack.c.bf16 %v2608_v26, %v2608_v26  ;;  %v2672_v29 = vsel %vm2160_vm13, %v1811_v20, %v2416_v24  ;;  %v2481_v30 = vsel %vm1969_vm14, %v1333_v22, %v2225_v25 }
  0xa6   :  { %v2928_v31 = vpack.c.bf16 %v2672_v29, %v2672_v29  ;;  %v2737_v32 = vpack.c.bf16 %v2481_v30, %v2481_v30  ;;  %v2545_v33 = vsel %vm2033_vm15, %v1493_v23, %v2289_v27 }
  0xa7   :  { %3121 = vst.msk [vmem:[%s5605_s2 + $0x208] sm:$0xf] %vm2990_vm3, %v2864_v28  ;;  %v2801_v34 = vpack.c.bf16 %v2545_v33, %v2545_v33 }
  0xa8   :  { %3185 = vst.msk [vmem:[%s5605_s2 + $0x308] sm:$0xf] %vm2990_vm3, %v2928_v31 }
  0xa9   :  { %2994 = vst.msk [vmem:[%s5605_s2 + $0xc] sm:$0xf] %vm2990_vm3, %v2737_v32  ;;  %v1653_v36 = vpop.f32.mrf.mxu2  ;;  %v1813_v37 = vpop.f32.mrf.mxu3 }
  0xaa   :  { %3058 = vst.msk [vmem:[%s5605_s2 + $0x10c] sm:$0xf] %vm2990_vm3, %v2801_v34  ;;  %vm2097_vm1 = vcmp.ge.f32.partialorder %v1653_v36, 0.0  ;;  %v2353_v41 = vmul.f32 0.2, %v1653_v36  ;;  %vm2161_vm2 = vcmp.ge.f32.partialorder %v1813_v37, 0.0  ;;  %v1336_v42 = vpop.f32.mrf.mxu0  ;;  %v1496_v43 = vpop.f32.mrf.mxu1 }
  0xab   :  { %v2417_v44 = vmul.f32 0.2, %v1813_v37  ;;  %vm1970_vm4 = vcmp.ge.f32.partialorder %v1336_v42, 0.0  ;;  %v2226_v45 = vmul.f32 0.2, %v1336_v42  ;;  %vm2034_vm5 = vcmp.ge.f32.partialorder %v1496_v43, 0.0 }
  0xac   :  { %v2609_v46 = vsel %vm2097_vm1, %v1653_v36, %v2353_v41  ;;  %v2290_v47 = vmul.f32 0.2, %v1496_v43 }
  0xad   :  { %v2865_v48 = vpack.c.bf16 %v2609_v46, %v2609_v46  ;;  %v2673_v49 = vsel %vm2161_vm2, %v1813_v37, %v2417_v44  ;;  %v2482_v50 = vsel %vm1970_vm4, %v1336_v42, %v2226_v45  ;;  %3785 = vmatmul.msk.bf16.gmra.mxu0 %vm932_vm0, %v3913_v35  ;;  %3817 = vmatmul.msk.bf16.gmra.mxu1 %vm932_vm0, %v3945_v38  ;;  %v3947_v46 = vld [vmem:[%s5604_s0 + $0x160] sm:$0xff] }
  0xae   :  { %v2929_v51 = vpack.c.bf16 %v2673_v49, %v2673_v49  ;;  %v2738_v52 = vpack.c.bf16 %v2482_v50, %v2482_v50  ;;  %v2546_v53 = vsel %vm2034_vm5, %v1496_v43, %v2290_v47  ;;  %3849 = vmatmul.msk.bf16.gmra.mxu2 %vm932_vm0, %v3977_v39  ;;  %3881 = vmatmul.msk.bf16.gmra.mxu3 %vm932_vm0, %v4009_v40  ;;  %v3915_v43 = vld [vmem:[%s5604_s0 + $0x60] sm:$0xff] }
  0xaf   :  { %3122 = vst.msk [vmem:[%s5605_s2 + $0x20c] sm:$0xf] %vm2990_vm3, %v2865_v48  ;;  %v2802_v54 = vpack.c.bf16 %v2546_v53, %v2546_v53  ;;  %v3979_v47 = vld [vmem:[%s5604_s0 + $0x260] sm:$0xff] }
  0xb0   :  { %3186 = vst.msk [vmem:[%s5605_s2 + $0x30c] sm:$0xf] %vm2990_vm3, %v2929_v51  ;;  %v4011_v48 = vld [vmem:[%s5604_s0 + $0x360] sm:$0xff] }
  0xb1   :  { %2995 = vst.msk [vmem:[%s5605_s2 + $0x10] sm:$0xf] %vm2990_vm3, %v2738_v52  ;;  %v1656_v55 = vpop.f32.mrf.mxu2  ;;  %v1816_v56 = vpop.f32.mrf.mxu3 }
  0xb2   :  { %3059 = vst.msk [vmem:[%s5605_s2 + $0x110] sm:$0xf] %vm2990_vm3, %v2802_v54  ;;  %vm2098_vm6 = vcmp.ge.f32.partialorder %v1656_v55, 0.0  ;;  %v2354_v57 = vmul.f32 0.2, %v1656_v55  ;;  %vm2162_vm7 = vcmp.ge.f32.partialorder %v1816_v56, 0.0  ;;  %v1338_v58 = vpop.f32.mrf.mxu0  ;;  %v1498_v59 = vpop.f32.mrf.mxu1 }
  0xb3   :  { %v2418_v60 = vmul.f32 0.2, %v1816_v56  ;;  %vm1971_vm8 = vcmp.ge.f32.partialorder %v1338_v58, 0.0  ;;  %v2227_v61 = vmul.f32 0.2, %v1338_v58  ;;  %vm2035_vm9 = vcmp.ge.f32.partialorder %v1498_v59, 0.0 }
  0xb4   :  { %v2610_v62 = vsel %vm2098_vm6, %v1656_v55, %v2354_v57  ;;  %v2291_v63 = vmul.f32 0.2, %v1498_v59 }
  0xb5   :  { %v2866_v0 = vpack.c.bf16 %v2610_v62, %v2610_v62  ;;  %v2674_v1 = vsel %vm2162_vm7, %v1816_v56, %v2418_v60  ;;  %v2483_v2 = vsel %vm1971_vm8, %v1338_v58, %v2227_v61 }
  0xb6   :  { %v2930_v3 = vpack.c.bf16 %v2674_v1, %v2674_v1  ;;  %v2739_v4 = vpack.c.bf16 %v2483_v2, %v2483_v2  ;;  %v2547_v5 = vsel %vm2035_vm9, %v1498_v59, %v2291_v63 }
  0xb7   :  { %3123 = vst.msk [vmem:[%s5605_s2 + $0x210] sm:$0xf] %vm2990_vm3, %v2866_v0  ;;  %v2803_v6 = vpack.c.bf16 %v2547_v5, %v2547_v5 }
  0xb8   :  { %3187 = vst.msk [vmem:[%s5605_s2 + $0x310] sm:$0xf] %vm2990_vm3, %v2930_v3 }
  0xb9   :  { %2996 = vst.msk [vmem:[%s5605_s2 + $0x14] sm:$0xf] %vm2990_vm3, %v2739_v4  ;;  %v1658_v8 = vpop.f32.mrf.mxu2  ;;  %v1818_v9 = vpop.f32.mrf.mxu3 }
  0xba   :  { %3060 = vst.msk [vmem:[%s5605_s2 + $0x114] sm:$0xf] %vm2990_vm3, %v2803_v6  ;;  %vm2099_vm10 = vcmp.ge.f32.partialorder %v1658_v8, 0.0  ;;  %v2355_v13 = vmul.f32 0.2, %v1658_v8  ;;  %vm2163_vm11 = vcmp.ge.f32.partialorder %v1818_v9, 0.0  ;;  %v1341_v14 = vpop.f32.mrf.mxu0  ;;  %v1501_v15 = vpop.f32.mrf.mxu1 }
  0xbb   :  { %v2419_v16 = vmul.f32 0.2, %v1818_v9  ;;  %vm1972_vm12 = vcmp.ge.f32.partialorder %v1341_v14, 0.0  ;;  %v2228_v17 = vmul.f32 0.2, %v1341_v14  ;;  %vm2036_vm13 = vcmp.ge.f32.partialorder %v1501_v15, 0.0 }
  0xbc   :  { %v2611_v18 = vsel %vm2099_vm10, %v1658_v8, %v2355_v13  ;;  %v2292_v19 = vmul.f32 0.2, %v1501_v15 }
  0xbd   :  { %v2867_v20 = vpack.c.bf16 %v2611_v18, %v2611_v18  ;;  %v2675_v21 = vsel %vm2163_vm11, %v1818_v9, %v2419_v16  ;;  %v2484_v22 = vsel %vm1972_vm12, %v1341_v14, %v2228_v17  ;;  %3786 = vmatmul.msk.bf16.gmra.mxu0 %vm932_vm0, %v3914_v7  ;;  %3818 = vmatmul.msk.bf16.gmra.mxu1 %vm932_vm0, %v3946_v10  ;;  %v3948_v18 = vld [vmem:[%s5604_s0 + $0x168] sm:$0xff] }
  0xbe   :  { %v2931_v23 = vpack.c.bf16 %v2675_v21, %v2675_v21  ;;  %v2740_v24 = vpack.c.bf16 %v2484_v22, %v2484_v22  ;;  %v2548_v25 = vsel %vm2036_vm13, %v1501_v15, %v2292_v19  ;;  %3850 = vmatmul.msk.bf16.gmra.mxu2 %vm932_vm0, %v3978_v11  ;;  %3882 = vmatmul.msk.bf16.gmra.mxu3 %vm932_vm0, %v4010_v12  ;;  %v3916_v15 = vld [vmem:[%s5604_s0 + $0x68] sm:$0xff] }
  0xbf   :  { %3124 = vst.msk [vmem:[%s5605_s2 + $0x214] sm:$0xf] %vm2990_vm3, %v2867_v20  ;;  %v2804_v26 = vpack.c.bf16 %v2548_v25, %v2548_v25  ;;  %v3980_v19 = vld [vmem:[%s5604_s0 + $0x268] sm:$0xff] }
  0xc0   :  { %3188 = vst.msk [vmem:[%s5605_s2 + $0x314] sm:$0xf] %vm2990_vm3, %v2931_v23  ;;  %v4012_v20 = vld [vmem:[%s5604_s0 + $0x368] sm:$0xff] }
  0xc1   :  { %2997 = vst.msk [vmem:[%s5605_s2 + $0x18] sm:$0xf] %vm2990_vm3, %v2740_v24  ;;  %v1661_v27 = vpop.f32.mrf.mxu2  ;;  %v1821_v28 = vpop.f32.mrf.mxu3 }
  0xc2   :  { %3061 = vst.msk [vmem:[%s5605_s2 + $0x118] sm:$0xf] %vm2990_vm3, %v2804_v26  ;;  %vm2100_vm14 = vcmp.ge.f32.partialorder %v1661_v27, 0.0  ;;  %v2356_v29 = vmul.f32 0.2, %v1661_v27  ;;  %vm2164_vm15 = vcmp.ge.f32.partialorder %v1821_v28, 0.0  ;;  %v1343_v30 = vpop.f32.mrf.mxu0  ;;  %v1503_v31 = vpop.f32.mrf.mxu1 }
  0xc3   :  { %v2420_v32 = vmul.f32 0.2, %v1821_v28  ;;  %vm1973_vm1 = vcmp.ge.f32.partialorder %v1343_v30, 0.0  ;;  %v2229_v33 = vmul.f32 0.2, %v1343_v30  ;;  %vm2037_vm2 = vcmp.ge.f32.partialorder %v1503_v31, 0.0 }
  0xc4   :  { %v2612_v34 = vsel %vm2100_vm14, %v1661_v27, %v2356_v29  ;;  %v2293_v35 = vmul.f32 0.2, %v1503_v31 }
  0xc5   :  { %v2868_v36 = vpack.c.bf16 %v2612_v34, %v2612_v34  ;;  %v2676_v37 = vsel %vm2164_vm15, %v1821_v28, %v2420_v32  ;;  %v2485_v38 = vsel %vm1973_vm1, %v1343_v30, %v2229_v33 }
  0xc6   :  { %v2932_v39 = vpack.c.bf16 %v2676_v37, %v2676_v37  ;;  %v2741_v40 = vpack.c.bf16 %v2485_v38, %v2485_v38  ;;  %v2549_v41 = vsel %vm2037_vm2, %v1503_v31, %v2293_v35 }
  0xc7   :  { %3125 = vst.msk [vmem:[%s5605_s2 + $0x218] sm:$0xf] %vm2990_vm3, %v2868_v36  ;;  %v2805_v42 = vpack.c.bf16 %v2549_v41, %v2549_v41 }
  0xc8   :  { %3189 = vst.msk [vmem:[%s5605_s2 + $0x318] sm:$0xf] %vm2990_vm3, %v2932_v39 }
  0xc9   :  { %2998 = vst.msk [vmem:[%s5605_s2 + $0x1c] sm:$0xf] %vm2990_vm3, %v2741_v40  ;;  %v1663_v44 = vpop.f32.mrf.mxu2  ;;  %v1823_v45 = vpop.f32.mrf.mxu3 }
  0xca   :  { %3062 = vst.msk [vmem:[%s5605_s2 + $0x11c] sm:$0xf] %vm2990_vm3, %v2805_v42  ;;  %vm2101_vm4 = vcmp.ge.f32.partialorder %v1663_v44, 0.0  ;;  %v2357_v49 = vmul.f32 0.2, %v1663_v44  ;;  %vm2165_vm5 = vcmp.ge.f32.partialorder %v1823_v45, 0.0  ;;  %v1346_v50 = vpop.f32.mrf.mxu0  ;;  %v1506_v51 = vpop.f32.mrf.mxu1 }
  0xcb   :  { %v2421_v52 = vmul.f32 0.2, %v1823_v45  ;;  %vm1974_vm6 = vcmp.ge.f32.partialorder %v1346_v50, 0.0  ;;  %v2230_v53 = vmul.f32 0.2, %v1346_v50  ;;  %vm2038_vm7 = vcmp.ge.f32.partialorder %v1506_v51, 0.0 }
  0xcc   :  { %v2613_v54 = vsel %vm2101_vm4, %v1663_v44, %v2357_v49  ;;  %v2294_v55 = vmul.f32 0.2, %v1506_v51 }
  0xcd   :  { %v2869_v56 = vpack.c.bf16 %v2613_v54, %v2613_v54  ;;  %v2677_v57 = vsel %vm2165_vm5, %v1823_v45, %v2421_v52  ;;  %v2486_v58 = vsel %vm1974_vm6, %v1346_v50, %v2230_v53  ;;  %3787 = vmatmul.msk.bf16.gmra.mxu0 %vm932_vm0, %v3915_v43  ;;  %3819 = vmatmul.msk.bf16.gmra.mxu1 %vm932_vm0, %v3947_v46  ;;  %v3949_v54 = vld [vmem:[%s5604_s0 + $0x170] sm:$0xff] }
  0xce   :  { %v2933_v59 = vpack.c.bf16 %v2677_v57, %v2677_v57  ;;  %v2742_v60 = vpack.c.bf16 %v2486_v58, %v2486_v58  ;;  %v2550_v61 = vsel %vm2038_vm7, %v1506_v51, %v2294_v55  ;;  %3851 = vmatmul.msk.bf16.gmra.mxu2 %vm932_vm0, %v3979_v47  ;;  %3883 = vmatmul.msk.bf16.gmra.mxu3 %vm932_vm0, %v4011_v48  ;;  %v3917_v51 = vld [vmem:[%s5604_s0 + $0x70] sm:$0xff] }
  0xcf   :  { %3126 = vst.msk [vmem:[%s5605_s2 + $0x21c] sm:$0xf] %vm2990_vm3, %v2869_v56  ;;  %v2806_v62 = vpack.c.bf16 %v2550_v61, %v2550_v61  ;;  %v3981_v55 = vld [vmem:[%s5604_s0 + $0x270] sm:$0xff] }
  0xd0   :  { %3190 = vst.msk [vmem:[%s5605_s2 + $0x31c] sm:$0xf] %vm2990_vm3, %v2933_v59  ;;  %v4013_v56 = vld [vmem:[%s5604_s0 + $0x370] sm:$0xff] }
  0xd1   :  { %2999 = vst.msk [vmem:[%s5605_s2 + $0x20] sm:$0xf] %vm2990_vm3, %v2742_v60  ;;  %v1666_v63 = vpop.f32.mrf.mxu2  ;;  %v1826_v0 = vpop.f32.mrf.mxu3 }
  0xd2   :  { %3063 = vst.msk [vmem:[%s5605_s2 + $0x120] sm:$0xf] %vm2990_vm3, %v2806_v62  ;;  %vm2102_vm8 = vcmp.ge.f32.partialorder %v1666_v63, 0.0  ;;  %v2358_v1 = vmul.f32 0.2, %v1666_v63  ;;  %vm2166_vm9 = vcmp.ge.f32.partialorder %v1826_v0, 0.0  ;;  %v1348_v2 = vpop.f32.mrf.mxu0  ;;  %v1508_v3 = vpop.f32.mrf.mxu1 }
  0xd3   :  { %v2422_v4 = vmul.f32 0.2, %v1826_v0  ;;  %vm1975_vm10 = vcmp.ge.f32.partialorder %v1348_v2, 0.0  ;;  %v2231_v5 = vmul.f32 0.2, %v1348_v2  ;;  %vm2039_vm11 = vcmp.ge.f32.partialorder %v1508_v3, 0.0 }
  0xd4   :  { %v2614_v6 = vsel %vm2102_vm8, %v1666_v63, %v2358_v1  ;;  %v2295_v7 = vmul.f32 0.2, %v1508_v3 }
  0xd5   :  { %v2870_v8 = vpack.c.bf16 %v2614_v6, %v2614_v6  ;;  %v2678_v9 = vsel %vm2166_vm9, %v1826_v0, %v2422_v4  ;;  %v2487_v10 = vsel %vm1975_vm10, %v1348_v2, %v2231_v5 }
  0xd6   :  { %v2934_v11 = vpack.c.bf16 %v2678_v9, %v2678_v9  ;;  %v2743_v12 = vpack.c.bf16 %v2487_v10, %v2487_v10  ;;  %v2551_v13 = vsel %vm2039_vm11, %v1508_v3, %v2295_v7 }
  0xd7   :  { %3127 = vst.msk [vmem:[%s5605_s2 + $0x220] sm:$0xf] %vm2990_vm3, %v2870_v8  ;;  %v2807_v14 = vpack.c.bf16 %v2551_v13, %v2551_v13 }
  0xd8   :  { %3191 = vst.msk [vmem:[%s5605_s2 + $0x320] sm:$0xf] %vm2990_vm3, %v2934_v11 }
  0xd9   :  { %3000 = vst.msk [vmem:[%s5605_s2 + $0x24] sm:$0xf] %vm2990_vm3, %v2743_v12  ;;  %v1668_v16 = vpop.f32.mrf.mxu2  ;;  %v1828_v17 = vpop.f32.mrf.mxu3 }
  0xda   :  { %3064 = vst.msk [vmem:[%s5605_s2 + $0x124] sm:$0xf] %vm2990_vm3, %v2807_v14  ;;  %vm2103_vm12 = vcmp.ge.f32.partialorder %v1668_v16, 0.0  ;;  %v2359_v21 = vmul.f32 0.2, %v1668_v16  ;;  %vm2167_vm13 = vcmp.ge.f32.partialorder %v1828_v17, 0.0  ;;  %v1351_v22 = vpop.f32.mrf.mxu0  ;;  %v1511_v23 = vpop.f32.mrf.mxu1 }
  0xdb   :  { %v2423_v24 = vmul.f32 0.2, %v1828_v17  ;;  %vm1976_vm14 = vcmp.ge.f32.partialorder %v1351_v22, 0.0  ;;  %v2232_v25 = vmul.f32 0.2, %v1351_v22  ;;  %vm2040_vm15 = vcmp.ge.f32.partialorder %v1511_v23, 0.0 }
  0xdc   :  { %v2615_v26 = vsel %vm2103_vm12, %v1668_v16, %v2359_v21  ;;  %v2296_v27 = vmul.f32 0.2, %v1511_v23 }
  0xdd   :  { %v2871_v28 = vpack.c.bf16 %v2615_v26, %v2615_v26  ;;  %v2679_v29 = vsel %vm2167_vm13, %v1828_v17, %v2423_v24  ;;  %v2488_v30 = vsel %vm1976_vm14, %v1351_v22, %v2232_v25  ;;  %3788 = vmatmul.msk.bf16.gmra.mxu0 %vm932_vm0, %v3916_v15  ;;  %3820 = vmatmul.msk.bf16.gmra.mxu1 %vm932_vm0, %v3948_v18  ;;  %v3950_v26 = vld [vmem:[%s5604_s0 + $0x178] sm:$0xff] }
  0xde   :  { %v2935_v31 = vpack.c.bf16 %v2679_v29, %v2679_v29  ;;  %v2744_v32 = vpack.c.bf16 %v2488_v30, %v2488_v30  ;;  %v2552_v33 = vsel %vm2040_vm15, %v1511_v23, %v2296_v27  ;;  %3852 = vmatmul.msk.bf16.gmra.mxu2 %vm932_vm0, %v3980_v19  ;;  %3884 = vmatmul.msk.bf16.gmra.mxu3 %vm932_vm0, %v4012_v20  ;;  %v3918_v23 = vld [vmem:[%s5604_s0 + $0x78] sm:$0xff] }
  0xdf   :  { %3128 = vst.msk [vmem:[%s5605_s2 + $0x224] sm:$0xf] %vm2990_vm3, %v2871_v28  ;;  %v2808_v34 = vpack.c.bf16 %v2552_v33, %v2552_v33  ;;  %v3982_v27 = vld [vmem:[%s5604_s0 + $0x278] sm:$0xff] }
  0xe0   :  { %3192 = vst.msk [vmem:[%s5605_s2 + $0x324] sm:$0xf] %vm2990_vm3, %v2935_v31  ;;  %v4014_v28 = vld [vmem:[%s5604_s0 + $0x378] sm:$0xff] }
  0xe1   :  { %3001 = vst.msk [vmem:[%s5605_s2 + $0x28] sm:$0xf] %vm2990_vm3, %v2744_v32  ;;  %v1671_v35 = vpop.f32.mrf.mxu2  ;;  %v1831_v36 = vpop.f32.mrf.mxu3 }
  0xe2   :  { %3065 = vst.msk [vmem:[%s5605_s2 + $0x128] sm:$0xf] %vm2990_vm3, %v2808_v34  ;;  %vm2104_vm1 = vcmp.ge.f32.partialorder %v1671_v35, 0.0  ;;  %v2360_v37 = vmul.f32 0.2, %v1671_v35  ;;  %vm2168_vm2 = vcmp.ge.f32.partialorder %v1831_v36, 0.0  ;;  %v1353_v38 = vpop.f32.mrf.mxu0  ;;  %v1513_v39 = vpop.f32.mrf.mxu1 }
  0xe3   :  { %v2424_v40 = vmul.f32 0.2, %v1831_v36  ;;  %vm1977_vm4 = vcmp.ge.f32.partialorder %v1353_v38, 0.0  ;;  %v2233_v41 = vmul.f32 0.2, %v1353_v38  ;;  %vm2041_vm5 = vcmp.ge.f32.partialorder %v1513_v39, 0.0 }
  0xe4   :  { %v2616_v42 = vsel %vm2104_vm1, %v1671_v35, %v2360_v37  ;;  %v2297_v43 = vmul.f32 0.2, %v1513_v39 }
  0xe5   :  { %v2872_v44 = vpack.c.bf16 %v2616_v42, %v2616_v42  ;;  %v2680_v45 = vsel %vm2168_vm2, %v1831_v36, %v2424_v40  ;;  %v2489_v46 = vsel %vm1977_vm4, %v1353_v38, %v2233_v41 }
  0xe6   :  { %v2936_v47 = vpack.c.bf16 %v2680_v45, %v2680_v45  ;;  %v2745_v48 = vpack.c.bf16 %v2489_v46, %v2489_v46  ;;  %v2553_v49 = vsel %vm2041_vm5, %v1513_v39, %v2297_v43 }
  0xe7   :  { %3129 = vst.msk [vmem:[%s5605_s2 + $0x228] sm:$0xf] %vm2990_vm3, %v2872_v44  ;;  %v2809_v50 = vpack.c.bf16 %v2553_v49, %v2553_v49 }
  0xe8   :  { %3193 = vst.msk [vmem:[%s5605_s2 + $0x328] sm:$0xf] %vm2990_vm3, %v2936_v47 }
  0xe9   :  { %3002 = vst.msk [vmem:[%s5605_s2 + $0x2c] sm:$0xf] %vm2990_vm3, %v2745_v48  ;;  %v1673_v52 = vpop.f32.mrf.mxu2  ;;  %v1833_v53 = vpop.f32.mrf.mxu3 }
  0xea   :  { %3066 = vst.msk [vmem:[%s5605_s2 + $0x12c] sm:$0xf] %vm2990_vm3, %v2809_v50  ;;  %vm2105_vm6 = vcmp.ge.f32.partialorder %v1673_v52, 0.0  ;;  %v2361_v57 = vmul.f32 0.2, %v1673_v52  ;;  %vm2169_vm7 = vcmp.ge.f32.partialorder %v1833_v53, 0.0  ;;  %v1356_v58 = vpop.f32.mrf.mxu0  ;;  %v1516_v59 = vpop.f32.mrf.mxu1 }
  0xeb   :  { %v2425_v60 = vmul.f32 0.2, %v1833_v53  ;;  %vm1978_vm8 = vcmp.ge.f32.partialorder %v1356_v58, 0.0  ;;  %v2234_v61 = vmul.f32 0.2, %v1356_v58  ;;  %vm2042_vm9 = vcmp.ge.f32.partialorder %v1516_v59, 0.0 }
  0xec   :  { %v2617_v62 = vsel %vm2105_vm6, %v1673_v52, %v2361_v57  ;;  %v2298_v63 = vmul.f32 0.2, %v1516_v59 }
  0xed   :  { %v2873_v0 = vpack.c.bf16 %v2617_v62, %v2617_v62  ;;  %v2681_v1 = vsel %vm2169_vm7, %v1833_v53, %v2425_v60  ;;  %v2490_v2 = vsel %vm1978_vm8, %v1356_v58, %v2234_v61  ;;  %3789 = vmatmul.msk.bf16.gmra.mxu0 %vm932_vm0, %v3917_v51  ;;  %3821 = vmatmul.msk.bf16.gmra.mxu1 %vm932_vm0, %v3949_v54  ;;  %v3951_v62 = vld [vmem:[%s5604_s0 + $0x180] sm:$0xff] }
  0xee   :  { %v2937_v3 = vpack.c.bf16 %v2681_v1, %v2681_v1  ;;  %v2746_v4 = vpack.c.bf16 %v2490_v2, %v2490_v2  ;;  %v2554_v5 = vsel %vm2042_vm9, %v1516_v59, %v2298_v63  ;;  %3853 = vmatmul.msk.bf16.gmra.mxu2 %vm932_vm0, %v3981_v55  ;;  %3885 = vmatmul.msk.bf16.gmra.mxu3 %vm932_vm0, %v4013_v56  ;;  %v3919_v59 = vld [vmem:[%s5604_s0 + $0x80] sm:$0xff] }
  0xef   :  { %3130 = vst.msk [vmem:[%s5605_s2 + $0x22c] sm:$0xf] %vm2990_vm3, %v2873_v0  ;;  %v2810_v6 = vpack.c.bf16 %v2554_v5, %v2554_v5  ;;  %v3983_v63 = vld [vmem:[%s5604_s0 + $0x280] sm:$0xff] }
  0xf0   :  { %3194 = vst.msk [vmem:[%s5605_s2 + $0x32c] sm:$0xf] %vm2990_vm3, %v2937_v3  ;;  %v4015_v0 = vld [vmem:[%s5604_s0 + $0x380] sm:$0xff] }
  0xf1   :  { %3003 = vst.msk [vmem:[%s5605_s2 + $0x30] sm:$0xf] %vm2990_vm3, %v2746_v4  ;;  %v1676_v7 = vpop.f32.mrf.mxu2  ;;  %v1836_v8 = vpop.f32.mrf.mxu3 }
  0xf2   :  { %3067 = vst.msk [vmem:[%s5605_s2 + $0x130] sm:$0xf] %vm2990_vm3, %v2810_v6  ;;  %vm2106_vm10 = vcmp.ge.f32.partialorder %v1676_v7, 0.0  ;;  %v2362_v9 = vmul.f32 0.2, %v1676_v7  ;;  %vm2170_vm11 = vcmp.ge.f32.partialorder %v1836_v8, 0.0  ;;  %v1358_v10 = vpop.f32.mrf.mxu0  ;;  %v1518_v11 = vpop.f32.mrf.mxu1 }
  0xf3   :  { %v2426_v12 = vmul.f32 0.2, %v1836_v8  ;;  %vm1979_vm12 = vcmp.ge.f32.partialorder %v1358_v10, 0.0  ;;  %v2235_v13 = vmul.f32 0.2, %v1358_v10  ;;  %vm2043_vm13 = vcmp.ge.f32.partialorder %v1518_v11, 0.0 }
  0xf4   :  { %v2618_v14 = vsel %vm2106_vm10, %v1676_v7, %v2362_v9  ;;  %v2299_v15 = vmul.f32 0.2, %v1518_v11 }
  0xf5   :  { %v2874_v16 = vpack.c.bf16 %v2618_v14, %v2618_v14  ;;  %v2682_v17 = vsel %vm2170_vm11, %v1836_v8, %v2426_v12  ;;  %v2491_v18 = vsel %vm1979_vm12, %v1358_v10, %v2235_v13 }
  0xf6   :  { %v2938_v19 = vpack.c.bf16 %v2682_v17, %v2682_v17  ;;  %v2747_v20 = vpack.c.bf16 %v2491_v18, %v2491_v18  ;;  %v2555_v21 = vsel %vm2043_vm13, %v1518_v11, %v2299_v15 }
  0xf7   :  { %3131 = vst.msk [vmem:[%s5605_s2 + $0x230] sm:$0xf] %vm2990_vm3, %v2874_v16  ;;  %v2811_v22 = vpack.c.bf16 %v2555_v21, %v2555_v21 }
  0xf8   :  { %3195 = vst.msk [vmem:[%s5605_s2 + $0x330] sm:$0xf] %vm2990_vm3, %v2938_v19 }
  0xf9   :  { %3004 = vst.msk [vmem:[%s5605_s2 + $0x34] sm:$0xf] %vm2990_vm3, %v2747_v20  ;;  %v1678_v24 = vpop.f32.mrf.mxu2  ;;  %v1838_v25 = vpop.f32.mrf.mxu3 }
  0xfa   :  { %3068 = vst.msk [vmem:[%s5605_s2 + $0x134] sm:$0xf] %vm2990_vm3, %v2811_v22  ;;  %vm2107_vm14 = vcmp.ge.f32.partialorder %v1678_v24, 0.0  ;;  %v2363_v29 = vmul.f32 0.2, %v1678_v24  ;;  %vm2171_vm15 = vcmp.ge.f32.partialorder %v1838_v25, 0.0  ;;  %v1361_v30 = vpop.f32.mrf.mxu0  ;;  %v1521_v31 = vpop.f32.mrf.mxu1 }
  0xfb   :  { %v2427_v32 = vmul.f32 0.2, %v1838_v25  ;;  %vm1980_vm1 = vcmp.ge.f32.partialorder %v1361_v30, 0.0  ;;  %v2236_v33 = vmul.f32 0.2, %v1361_v30  ;;  %vm2044_vm2 = vcmp.ge.f32.partialorder %v1521_v31, 0.0 }
  0xfc   :  { %v2619_v34 = vsel %vm2107_vm14, %v1678_v24, %v2363_v29  ;;  %v2300_v35 = vmul.f32 0.2, %v1521_v31 }
  0xfd   :  { %v2875_v36 = vpack.c.bf16 %v2619_v34, %v2619_v34  ;;  %v2683_v37 = vsel %vm2171_vm15, %v1838_v25, %v2427_v32  ;;  %v2492_v38 = vsel %vm1980_vm1, %v1361_v30, %v2236_v33  ;;  %3790 = vmatmul.msk.bf16.gmra.mxu0 %vm932_vm0, %v3918_v23  ;;  %3822 = vmatmul.msk.bf16.gmra.mxu1 %vm932_vm0, %v3950_v26  ;;  %v3952_v34 = vld [vmem:[%s5604_s0 + $0x188] sm:$0xff] }
  0xfe   :  { %v2939_v39 = vpack.c.bf16 %v2683_v37, %v2683_v37  ;;  %v2748_v40 = vpack.c.bf16 %v2492_v38, %v2492_v38  ;;  %v2556_v41 = vsel %vm2044_vm2, %v1521_v31, %v2300_v35  ;;  %3854 = vmatmul.msk.bf16.gmra.mxu2 %vm932_vm0, %v3982_v27  ;;  %3886 = vmatmul.msk.bf16.gmra.mxu3 %vm932_vm0, %v4014_v28  ;;  %v3920_v31 = vld [vmem:[%s5604_s0 + $0x88] sm:$0xff] }
  0xff   :  { %3132 = vst.msk [vmem:[%s5605_s2 + $0x234] sm:$0xf] %vm2990_vm3, %v2875_v36  ;;  %v2812_v42 = vpack.c.bf16 %v2556_v41, %v2556_v41  ;;  %v3984_v35 = vld [vmem:[%s5604_s0 + $0x288] sm:$0xff] }
 0x100   :  { %3196 = vst.msk [vmem:[%s5605_s2 + $0x334] sm:$0xf] %vm2990_vm3, %v2939_v39  ;;  %v4016_v36 = vld [vmem:[%s5604_s0 + $0x388] sm:$0xff] }
 0x101   :  { %3005 = vst.msk [vmem:[%s5605_s2 + $0x38] sm:$0xf] %vm2990_vm3, %v2748_v40  ;;  %v1681_v43 = vpop.f32.mrf.mxu2  ;;  %v1841_v44 = vpop.f32.mrf.mxu3 }
 0x102   :  { %3069 = vst.msk [vmem:[%s5605_s2 + $0x138] sm:$0xf] %vm2990_vm3, %v2812_v42  ;;  %vm2108_vm4 = vcmp.ge.f32.partialorder %v1681_v43, 0.0  ;;  %v2364_v45 = vmul.f32 0.2, %v1681_v43  ;;  %vm2172_vm5 = vcmp.ge.f32.partialorder %v1841_v44, 0.0  ;;  %v1363_v46 = vpop.f32.mrf.mxu0  ;;  %v1523_v47 = vpop.f32.mrf.mxu1 }
 0x103   :  { %v2428_v48 = vmul.f32 0.2, %v1841_v44  ;;  %vm1981_vm6 = vcmp.ge.f32.partialorder %v1363_v46, 0.0  ;;  %v2237_v49 = vmul.f32 0.2, %v1363_v46  ;;  %vm2045_vm7 = vcmp.ge.f32.partialorder %v1523_v47, 0.0 }
 0x104   :  { %v2620_v50 = vsel %vm2108_vm4, %v1681_v43, %v2364_v45  ;;  %v2301_v51 = vmul.f32 0.2, %v1523_v47 }
 0x105   :  { %v2876_v52 = vpack.c.bf16 %v2620_v50, %v2620_v50  ;;  %v2684_v53 = vsel %vm2172_vm5, %v1841_v44, %v2428_v48  ;;  %v2493_v54 = vsel %vm1981_vm6, %v1363_v46, %v2237_v49 }
 0x106   :  { %v2940_v55 = vpack.c.bf16 %v2684_v53, %v2684_v53  ;;  %v2749_v56 = vpack.c.bf16 %v2493_v54, %v2493_v54  ;;  %v2557_v57 = vsel %vm2045_vm7, %v1523_v47, %v2301_v51 }
 0x107   :  { %3133 = vst.msk [vmem:[%s5605_s2 + $0x238] sm:$0xf] %vm2990_vm3, %v2876_v52  ;;  %v2813_v58 = vpack.c.bf16 %v2557_v57, %v2557_v57 }
 0x108   :  { %3197 = vst.msk [vmem:[%s5605_s2 + $0x338] sm:$0xf] %vm2990_vm3, %v2940_v55 }
 0x109   :  { %3006 = vst.msk [vmem:[%s5605_s2 + $0x3c] sm:$0xf] %vm2990_vm3, %v2749_v56  ;;  %v1683_v60 = vpop.f32.mrf.mxu2  ;;  %v1843_v61 = vpop.f32.mrf.mxu3 }
 0x10a   :  { %3070 = vst.msk [vmem:[%s5605_s2 + $0x13c] sm:$0xf] %vm2990_vm3, %v2813_v58  ;;  %vm2109_vm8 = vcmp.ge.f32.partialorder %v1683_v60, 0.0  ;;  %v2365_v1 = vmul.f32 0.2, %v1683_v60  ;;  %vm2173_vm9 = vcmp.ge.f32.partialorder %v1843_v61, 0.0  ;;  %v1366_v2 = vpop.f32.mrf.mxu0  ;;  %v1526_v3 = vpop.f32.mrf.mxu1 }
 0x10b   :  { %v2429_v4 = vmul.f32 0.2, %v1843_v61  ;;  %vm1982_vm10 = vcmp.ge.f32.partialorder %v1366_v2, 0.0  ;;  %v2238_v5 = vmul.f32 0.2, %v1366_v2  ;;  %vm2046_vm11 = vcmp.ge.f32.partialorder %v1526_v3, 0.0 }
 0x10c   :  { %v2621_v6 = vsel %vm2109_vm8, %v1683_v60, %v2365_v1  ;;  %v2302_v7 = vmul.f32 0.2, %v1526_v3 }
 0x10d   :  { %v2877_v8 = vpack.c.bf16 %v2621_v6, %v2621_v6  ;;  %v2685_v9 = vsel %vm2173_vm9, %v1843_v61, %v2429_v4  ;;  %v2494_v10 = vsel %vm1982_vm10, %v1366_v2, %v2238_v5  ;;  %3791 = vmatmul.msk.bf16.gmra.mxu0 %vm932_vm0, %v3919_v59  ;;  %3823 = vmatmul.msk.bf16.gmra.mxu1 %vm932_vm0, %v3951_v62  ;;  %v3953_v6 = vld [vmem:[%s5604_s0 + $0x190] sm:$0xff] }
 0x10e   :  { %v2941_v11 = vpack.c.bf16 %v2685_v9, %v2685_v9  ;;  %v2750_v12 = vpack.c.bf16 %v2494_v10, %v2494_v10  ;;  %v2558_v13 = vsel %vm2046_vm11, %v1526_v3, %v2302_v7  ;;  %3855 = vmatmul.msk.bf16.gmra.mxu2 %vm932_vm0, %v3983_v63  ;;  %3887 = vmatmul.msk.bf16.gmra.mxu3 %vm932_vm0, %v4015_v0  ;;  %v3921_v3 = vld [vmem:[%s5604_s0 + $0x90] sm:$0xff] }
 0x10f   :  { %3134 = vst.msk [vmem:[%s5605_s2 + $0x23c] sm:$0xf] %vm2990_vm3, %v2877_v8  ;;  %v2814_v14 = vpack.c.bf16 %v2558_v13, %v2558_v13  ;;  %v3985_v7 = vld [vmem:[%s5604_s0 + $0x290] sm:$0xff] }
 0x110   :  { %3198 = vst.msk [vmem:[%s5605_s2 + $0x33c] sm:$0xf] %vm2990_vm3, %v2941_v11  ;;  %v4017_v8 = vld [vmem:[%s5604_s0 + $0x390] sm:$0xff] }
 0x111   :  { %3007 = vst.msk [vmem:[%s5605_s2 + $0x40] sm:$0xf] %vm2990_vm3, %v2750_v12  ;;  %v1686_v15 = vpop.f32.mrf.mxu2  ;;  %v1846_v16 = vpop.f32.mrf.mxu3 }
 0x112   :  { %3071 = vst.msk [vmem:[%s5605_s2 + $0x140] sm:$0xf] %vm2990_vm3, %v2814_v14  ;;  %vm2110_vm12 = vcmp.ge.f32.partialorder %v1686_v15, 0.0  ;;  %v2366_v17 = vmul.f32 0.2, %v1686_v15  ;;  %vm2174_vm13 = vcmp.ge.f32.partialorder %v1846_v16, 0.0  ;;  %v1368_v18 = vpop.f32.mrf.mxu0  ;;  %v1528_v19 = vpop.f32.mrf.mxu1 }
 0x113   :  { %v2430_v20 = vmul.f32 0.2, %v1846_v16  ;;  %vm1983_vm14 = vcmp.ge.f32.partialorder %v1368_v18, 0.0  ;;  %v2239_v21 = vmul.f32 0.2, %v1368_v18  ;;  %vm2047_vm15 = vcmp.ge.f32.partialorder %v1528_v19, 0.0 }
 0x114   :  { %v2622_v22 = vsel %vm2110_vm12, %v1686_v15, %v2366_v17  ;;  %v2303_v23 = vmul.f32 0.2, %v1528_v19 }
 0x115   :  { %v2878_v24 = vpack.c.bf16 %v2622_v22, %v2622_v22  ;;  %v2686_v25 = vsel %vm2174_vm13, %v1846_v16, %v2430_v20  ;;  %v2495_v26 = vsel %vm1983_vm14, %v1368_v18, %v2239_v21 }
 0x116   :  { %v2942_v27 = vpack.c.bf16 %v2686_v25, %v2686_v25  ;;  %v2751_v28 = vpack.c.bf16 %v2495_v26, %v2495_v26  ;;  %v2559_v29 = vsel %vm2047_vm15, %v1528_v19, %v2303_v23 }
 0x117   :  { %3135 = vst.msk [vmem:[%s5605_s2 + $0x240] sm:$0xf] %vm2990_vm3, %v2878_v24  ;;  %v2815_v30 = vpack.c.bf16 %v2559_v29, %v2559_v29 }
 0x118   :  { %3199 = vst.msk [vmem:[%s5605_s2 + $0x340] sm:$0xf] %vm2990_vm3, %v2942_v27 }
 0x119   :  { %3008 = vst.msk [vmem:[%s5605_s2 + $0x44] sm:$0xf] %vm2990_vm3, %v2751_v28  ;;  %v1688_v32 = vpop.f32.mrf.mxu2  ;;  %v1848_v33 = vpop.f32.mrf.mxu3 }
 0x11a   :  { %3072 = vst.msk [vmem:[%s5605_s2 + $0x144] sm:$0xf] %vm2990_vm3, %v2815_v30  ;;  %vm2111_vm1 = vcmp.ge.f32.partialorder %v1688_v32, 0.0  ;;  %v2367_v37 = vmul.f32 0.2, %v1688_v32  ;;  %vm2175_vm2 = vcmp.ge.f32.partialorder %v1848_v33, 0.0  ;;  %v1371_v38 = vpop.f32.mrf.mxu0  ;;  %v1531_v39 = vpop.f32.mrf.mxu1 }
 0x11b   :  { %v2431_v40 = vmul.f32 0.2, %v1848_v33  ;;  %vm1984_vm4 = vcmp.ge.f32.partialorder %v1371_v38, 0.0  ;;  %v2240_v41 = vmul.f32 0.2, %v1371_v38  ;;  %vm2048_vm5 = vcmp.ge.f32.partialorder %v1531_v39, 0.0 }
 0x11c   :  { %v2623_v42 = vsel %vm2111_vm1, %v1688_v32, %v2367_v37  ;;  %v2304_v43 = vmul.f32 0.2, %v1531_v39 }
 0x11d   :  { %v2879_v44 = vpack.c.bf16 %v2623_v42, %v2623_v42  ;;  %v2687_v45 = vsel %vm2175_vm2, %v1848_v33, %v2431_v40  ;;  %v2496_v46 = vsel %vm1984_vm4, %v1371_v38, %v2240_v41  ;;  %3792 = vmatmul.msk.bf16.gmra.mxu0 %vm932_vm0, %v3920_v31  ;;  %3824 = vmatmul.msk.bf16.gmra.mxu1 %vm932_vm0, %v3952_v34  ;;  %v3954_v42 = vld [vmem:[%s5604_s0 + $0x198] sm:$0xff] }
 0x11e   :  { %v2943_v47 = vpack.c.bf16 %v2687_v45, %v2687_v45  ;;  %v2752_v48 = vpack.c.bf16 %v2496_v46, %v2496_v46  ;;  %v2560_v49 = vsel %vm2048_vm5, %v1531_v39, %v2304_v43  ;;  %3856 = vmatmul.msk.bf16.gmra.mxu2 %vm932_vm0, %v3984_v35  ;;  %3888 = vmatmul.msk.bf16.gmra.mxu3 %vm932_vm0, %v4016_v36  ;;  %v3922_v39 = vld [vmem:[%s5604_s0 + $0x98] sm:$0xff] }
 0x11f   :  { %3136 = vst.msk [vmem:[%s5605_s2 + $0x244] sm:$0xf] %vm2990_vm3, %v2879_v44  ;;  %v2816_v50 = vpack.c.bf16 %v2560_v49, %v2560_v49  ;;  %v3986_v43 = vld [vmem:[%s5604_s0 + $0x298] sm:$0xff] }
 0x120   :  { %3200 = vst.msk [vmem:[%s5605_s2 + $0x344] sm:$0xf] %vm2990_vm3, %v2943_v47  ;;  %v4018_v44 = vld [vmem:[%s5604_s0 + $0x398] sm:$0xff] }
 0x121   :  { %3009 = vst.msk [vmem:[%s5605_s2 + $0x48] sm:$0xf] %vm2990_vm3, %v2752_v48  ;;  %v1691_v51 = vpop.f32.mrf.mxu2  ;;  %v1851_v52 = vpop.f32.mrf.mxu3 }
 0x122   :  { %3073 = vst.msk [vmem:[%s5605_s2 + $0x148] sm:$0xf] %vm2990_vm3, %v2816_v50  ;;  %vm2112_vm6 = vcmp.ge.f32.partialorder %v1691_v51, 0.0  ;;  %v2368_v53 = vmul.f32 0.2, %v1691_v51  ;;  %vm2176_vm7 = vcmp.ge.f32.partialorder %v1851_v52, 0.0  ;;  %v1373_v54 = vpop.f32.mrf.mxu0  ;;  %v1533_v55 = vpop.f32.mrf.mxu1 }
 0x123   :  { %v2432_v56 = vmul.f32 0.2, %v1851_v52  ;;  %vm1985_vm8 = vcmp.ge.f32.partialorder %v1373_v54, 0.0  ;;  %v2241_v57 = vmul.f32 0.2, %v1373_v54  ;;  %vm2049_vm9 = vcmp.ge.f32.partialorder %v1533_v55, 0.0 }
 0x124   :  { %v2624_v58 = vsel %vm2112_vm6, %v1691_v51, %v2368_v53  ;;  %v2305_v59 = vmul.f32 0.2, %v1533_v55 }
 0x125   :  { %v2880_v60 = vpack.c.bf16 %v2624_v58, %v2624_v58  ;;  %v2688_v61 = vsel %vm2176_vm7, %v1851_v52, %v2432_v56  ;;  %v2497_v62 = vsel %vm1985_vm8, %v1373_v54, %v2241_v57 }
 0x126   :  { %v2944_v63 = vpack.c.bf16 %v2688_v61, %v2688_v61  ;;  %v2753_v0 = vpack.c.bf16 %v2497_v62, %v2497_v62  ;;  %v2561_v1 = vsel %vm2049_vm9, %v1533_v55, %v2305_v59 }
 0x127   :  { %3137 = vst.msk [vmem:[%s5605_s2 + $0x248] sm:$0xf] %vm2990_vm3, %v2880_v60  ;;  %v2817_v2 = vpack.c.bf16 %v2561_v1, %v2561_v1 }
 0x128   :  { %3201 = vst.msk [vmem:[%s5605_s2 + $0x348] sm:$0xf] %vm2990_vm3, %v2944_v63 }
 0x129   :  { %3010 = vst.msk [vmem:[%s5605_s2 + $0x4c] sm:$0xf] %vm2990_vm3, %v2753_v0  ;;  %v1693_v4 = vpop.f32.mrf.mxu2  ;;  %v1853_v5 = vpop.f32.mrf.mxu3 }
 0x12a   :  { %3074 = vst.msk [vmem:[%s5605_s2 + $0x14c] sm:$0xf] %vm2990_vm3, %v2817_v2  ;;  %vm2113_vm10 = vcmp.ge.f32.partialorder %v1693_v4, 0.0  ;;  %v2369_v9 = vmul.f32 0.2, %v1693_v4  ;;  %vm2177_vm11 = vcmp.ge.f32.partialorder %v1853_v5, 0.0  ;;  %v1376_v10 = vpop.f32.mrf.mxu0  ;;  %v1536_v11 = vpop.f32.mrf.mxu1 }
 0x12b   :  { %v2433_v12 = vmul.f32 0.2, %v1853_v5  ;;  %vm1986_vm12 = vcmp.ge.f32.partialorder %v1376_v10, 0.0  ;;  %v2242_v13 = vmul.f32 0.2, %v1376_v10  ;;  %vm2050_vm13 = vcmp.ge.f32.partialorder %v1536_v11, 0.0 }
 0x12c   :  { %v2625_v14 = vsel %vm2113_vm10, %v1693_v4, %v2369_v9  ;;  %v2306_v15 = vmul.f32 0.2, %v1536_v11 }
 0x12d   :  { %v2881_v16 = vpack.c.bf16 %v2625_v14, %v2625_v14  ;;  %v2689_v17 = vsel %vm2177_vm11, %v1853_v5, %v2433_v12  ;;  %v2498_v18 = vsel %vm1986_vm12, %v1376_v10, %v2242_v13  ;;  %3793 = vmatmul.msk.bf16.gmra.mxu0 %vm932_vm0, %v3921_v3  ;;  %3825 = vmatmul.msk.bf16.gmra.mxu1 %vm932_vm0, %v3953_v6  ;;  %v3955_v14 = vld [vmem:[%s5604_s0 + $0x1a0] sm:$0xff] }
 0x12e   :  { %v2945_v19 = vpack.c.bf16 %v2689_v17, %v2689_v17  ;;  %v2754_v20 = vpack.c.bf16 %v2498_v18, %v2498_v18  ;;  %v2562_v21 = vsel %vm2050_vm13, %v1536_v11, %v2306_v15  ;;  %3857 = vmatmul.msk.bf16.gmra.mxu2 %vm932_vm0, %v3985_v7  ;;  %3889 = vmatmul.msk.bf16.gmra.mxu3 %vm932_vm0, %v4017_v8  ;;  %v3923_v11 = vld [vmem:[%s5604_s0 + $0xa0] sm:$0xff] }
 0x12f   :  { %3138 = vst.msk [vmem:[%s5605_s2 + $0x24c] sm:$0xf] %vm2990_vm3, %v2881_v16  ;;  %v2818_v22 = vpack.c.bf16 %v2562_v21, %v2562_v21  ;;  %v3987_v15 = vld [vmem:[%s5604_s0 + $0x2a0] sm:$0xff] }
 0x130   :  { %3202 = vst.msk [vmem:[%s5605_s2 + $0x34c] sm:$0xf] %vm2990_vm3, %v2945_v19  ;;  %v4019_v16 = vld [vmem:[%s5604_s0 + $0x3a0] sm:$0xff] }
 0x131   :  { %3011 = vst.msk [vmem:[%s5605_s2 + $0x50] sm:$0xf] %vm2990_vm3, %v2754_v20  ;;  %v1696_v23 = vpop.f32.mrf.mxu2  ;;  %v1856_v24 = vpop.f32.mrf.mxu3 }
 0x132   :  { %3075 = vst.msk [vmem:[%s5605_s2 + $0x150] sm:$0xf] %vm2990_vm3, %v2818_v22  ;;  %vm2114_vm14 = vcmp.ge.f32.partialorder %v1696_v23, 0.0  ;;  %v2370_v25 = vmul.f32 0.2, %v1696_v23  ;;  %vm2178_vm15 = vcmp.ge.f32.partialorder %v1856_v24, 0.0  ;;  %v1378_v26 = vpop.f32.mrf.mxu0  ;;  %v1538_v27 = vpop.f32.mrf.mxu1 }
 0x133   :  { %v2434_v28 = vmul.f32 0.2, %v1856_v24  ;;  %vm1987_vm1 = vcmp.ge.f32.partialorder %v1378_v26, 0.0  ;;  %v2243_v29 = vmul.f32 0.2, %v1378_v26  ;;  %vm2051_vm2 = vcmp.ge.f32.partialorder %v1538_v27, 0.0 }
 0x134   :  { %v2626_v30 = vsel %vm2114_vm14, %v1696_v23, %v2370_v25  ;;  %v2307_v31 = vmul.f32 0.2, %v1538_v27 }
 0x135   :  { %v2882_v32 = vpack.c.bf16 %v2626_v30, %v2626_v30  ;;  %v2690_v33 = vsel %vm2178_vm15, %v1856_v24, %v2434_v28  ;;  %v2499_v34 = vsel %vm1987_vm1, %v1378_v26, %v2243_v29 }
 0x136   :  { %v2946_v35 = vpack.c.bf16 %v2690_v33, %v2690_v33  ;;  %v2755_v36 = vpack.c.bf16 %v2499_v34, %v2499_v34  ;;  %v2563_v37 = vsel %vm2051_vm2, %v1538_v27, %v2307_v31 }
 0x137   :  { %3139 = vst.msk [vmem:[%s5605_s2 + $0x250] sm:$0xf] %vm2990_vm3, %v2882_v32  ;;  %v2819_v38 = vpack.c.bf16 %v2563_v37, %v2563_v37 }
 0x138   :  { %3203 = vst.msk [vmem:[%s5605_s2 + $0x350] sm:$0xf] %vm2990_vm3, %v2946_v35 }
 0x139   :  { %3012 = vst.msk [vmem:[%s5605_s2 + $0x54] sm:$0xf] %vm2990_vm3, %v2755_v36  ;;  %v1698_v40 = vpop.f32.mrf.mxu2  ;;  %v1858_v41 = vpop.f32.mrf.mxu3 }
 0x13a   :  { %3076 = vst.msk [vmem:[%s5605_s2 + $0x154] sm:$0xf] %vm2990_vm3, %v2819_v38  ;;  %vm2115_vm4 = vcmp.ge.f32.partialorder %v1698_v40, 0.0  ;;  %v2371_v45 = vmul.f32 0.2, %v1698_v40  ;;  %vm2179_vm5 = vcmp.ge.f32.partialorder %v1858_v41, 0.0  ;;  %v1381_v46 = vpop.f32.mrf.mxu0  ;;  %v1541_v47 = vpop.f32.mrf.mxu1 }
 0x13b   :  { %v2435_v48 = vmul.f32 0.2, %v1858_v41  ;;  %vm1988_vm6 = vcmp.ge.f32.partialorder %v1381_v46, 0.0  ;;  %v2244_v49 = vmul.f32 0.2, %v1381_v46  ;;  %vm2052_vm7 = vcmp.ge.f32.partialorder %v1541_v47, 0.0 }
 0x13c   :  { %v2627_v50 = vsel %vm2115_vm4, %v1698_v40, %v2371_v45  ;;  %v2308_v51 = vmul.f32 0.2, %v1541_v47 }
 0x13d   :  { %v2883_v52 = vpack.c.bf16 %v2627_v50, %v2627_v50  ;;  %v2691_v53 = vsel %vm2179_vm5, %v1858_v41, %v2435_v48  ;;  %v2500_v54 = vsel %vm1988_vm6, %v1381_v46, %v2244_v49  ;;  %3794 = vmatmul.msk.bf16.gmra.mxu0 %vm932_vm0, %v3922_v39  ;;  %3826 = vmatmul.msk.bf16.gmra.mxu1 %vm932_vm0, %v3954_v42  ;;  %v3956_v50 = vld [vmem:[%s5604_s0 + $0x1a8] sm:$0xff] }
 0x13e   :  { %v2947_v55 = vpack.c.bf16 %v2691_v53, %v2691_v53  ;;  %v2756_v56 = vpack.c.bf16 %v2500_v54, %v2500_v54  ;;  %v2564_v57 = vsel %vm2052_vm7, %v1541_v47, %v2308_v51  ;;  %3858 = vmatmul.msk.bf16.gmra.mxu2 %vm932_vm0, %v3986_v43  ;;  %3890 = vmatmul.msk.bf16.gmra.mxu3 %vm932_vm0, %v4018_v44  ;;  %v3924_v47 = vld [vmem:[%s5604_s0 + $0xa8] sm:$0xff] }
 0x13f   :  { %3140 = vst.msk [vmem:[%s5605_s2 + $0x254] sm:$0xf] %vm2990_vm3, %v2883_v52  ;;  %v2820_v58 = vpack.c.bf16 %v2564_v57, %v2564_v57  ;;  %v3988_v51 = vld [vmem:[%s5604_s0 + $0x2a8] sm:$0xff] }
 0x140   :  { %3204 = vst.msk [vmem:[%s5605_s2 + $0x354] sm:$0xf] %vm2990_vm3, %v2947_v55  ;;  %v4020_v52 = vld [vmem:[%s5604_s0 + $0x3a8] sm:$0xff] }
 0x141   :  { %3013 = vst.msk [vmem:[%s5605_s2 + $0x58] sm:$0xf] %vm2990_vm3, %v2756_v56  ;;  %v1701_v59 = vpop.f32.mrf.mxu2  ;;  %v1861_v60 = vpop.f32.mrf.mxu3 }
 0x142   :  { %3077 = vst.msk [vmem:[%s5605_s2 + $0x158] sm:$0xf] %vm2990_vm3, %v2820_v58  ;;  %vm2116_vm8 = vcmp.ge.f32.partialorder %v1701_v59, 0.0  ;;  %v2372_v61 = vmul.f32 0.2, %v1701_v59  ;;  %vm2180_vm9 = vcmp.ge.f32.partialorder %v1861_v60, 0.0  ;;  %v1383_v62 = vpop.f32.mrf.mxu0  ;;  %v1543_v63 = vpop.f32.mrf.mxu1 }
 0x143   :  { %v2436_v0 = vmul.f32 0.2, %v1861_v60  ;;  %vm1989_vm10 = vcmp.ge.f32.partialorder %v1383_v62, 0.0  ;;  %v2245_v1 = vmul.f32 0.2, %v1383_v62  ;;  %vm2053_vm11 = vcmp.ge.f32.partialorder %v1543_v63, 0.0 }
 0x144   :  { %v2628_v2 = vsel %vm2116_vm8, %v1701_v59, %v2372_v61  ;;  %v2309_v3 = vmul.f32 0.2, %v1543_v63 }
 0x145   :  { %v2884_v4 = vpack.c.bf16 %v2628_v2, %v2628_v2  ;;  %v2692_v5 = vsel %vm2180_vm9, %v1861_v60, %v2436_v0  ;;  %v2501_v6 = vsel %vm1989_vm10, %v1383_v62, %v2245_v1 }
 0x146   :  { %v2948_v7 = vpack.c.bf16 %v2692_v5, %v2692_v5  ;;  %v2757_v8 = vpack.c.bf16 %v2501_v6, %v2501_v6  ;;  %v2565_v9 = vsel %vm2053_vm11, %v1543_v63, %v2309_v3 }
 0x147   :  { %3141 = vst.msk [vmem:[%s5605_s2 + $0x258] sm:$0xf] %vm2990_vm3, %v2884_v4  ;;  %v2821_v10 = vpack.c.bf16 %v2565_v9, %v2565_v9 }
 0x148   :  { %3205 = vst.msk [vmem:[%s5605_s2 + $0x358] sm:$0xf] %vm2990_vm3, %v2948_v7 }
 0x149   :  { %3014 = vst.msk [vmem:[%s5605_s2 + $0x5c] sm:$0xf] %vm2990_vm3, %v2757_v8  ;;  %v1703_v12 = vpop.f32.mrf.mxu2  ;;  %v1863_v13 = vpop.f32.mrf.mxu3 }
 0x14a   :  { %3078 = vst.msk [vmem:[%s5605_s2 + $0x15c] sm:$0xf] %vm2990_vm3, %v2821_v10  ;;  %vm2117_vm12 = vcmp.ge.f32.partialorder %v1703_v12, 0.0  ;;  %v2373_v17 = vmul.f32 0.2, %v1703_v12  ;;  %vm2181_vm13 = vcmp.ge.f32.partialorder %v1863_v13, 0.0  ;;  %v1386_v18 = vpop.f32.mrf.mxu0  ;;  %v1546_v19 = vpop.f32.mrf.mxu1 }
 0x14b   :  { %v2437_v20 = vmul.f32 0.2, %v1863_v13  ;;  %vm1990_vm14 = vcmp.ge.f32.partialorder %v1386_v18, 0.0  ;;  %v2246_v21 = vmul.f32 0.2, %v1386_v18  ;;  %vm2054_vm15 = vcmp.ge.f32.partialorder %v1546_v19, 0.0 }
 0x14c   :  { %v2629_v22 = vsel %vm2117_vm12, %v1703_v12, %v2373_v17  ;;  %v2310_v23 = vmul.f32 0.2, %v1546_v19 }
 0x14d   :  { %v2885_v24 = vpack.c.bf16 %v2629_v22, %v2629_v22  ;;  %v2693_v25 = vsel %vm2181_vm13, %v1863_v13, %v2437_v20  ;;  %v2502_v26 = vsel %vm1990_vm14, %v1386_v18, %v2246_v21  ;;  %3795 = vmatmul.msk.bf16.gmra.mxu0 %vm932_vm0, %v3923_v11  ;;  %3827 = vmatmul.msk.bf16.gmra.mxu1 %vm932_vm0, %v3955_v14  ;;  %v3957_v22 = vld [vmem:[%s5604_s0 + $0x1b0] sm:$0xff] }
 0x14e   :  { %v2949_v27 = vpack.c.bf16 %v2693_v25, %v2693_v25  ;;  %v2758_v28 = vpack.c.bf16 %v2502_v26, %v2502_v26  ;;  %v2566_v29 = vsel %vm2054_vm15, %v1546_v19, %v2310_v23  ;;  %3859 = vmatmul.msk.bf16.gmra.mxu2 %vm932_vm0, %v3987_v15  ;;  %3891 = vmatmul.msk.bf16.gmra.mxu3 %vm932_vm0, %v4019_v16  ;;  %v3925_v19 = vld [vmem:[%s5604_s0 + $0xb0] sm:$0xff] }
 0x14f   :  { %3142 = vst.msk [vmem:[%s5605_s2 + $0x25c] sm:$0xf] %vm2990_vm3, %v2885_v24  ;;  %v2822_v30 = vpack.c.bf16 %v2566_v29, %v2566_v29  ;;  %v3989_v23 = vld [vmem:[%s5604_s0 + $0x2b0] sm:$0xff] }
 0x150   :  { %3206 = vst.msk [vmem:[%s5605_s2 + $0x35c] sm:$0xf] %vm2990_vm3, %v2949_v27  ;;  %v4021_v24 = vld [vmem:[%s5604_s0 + $0x3b0] sm:$0xff] }
 0x151   :  { %3015 = vst.msk [vmem:[%s5605_s2 + $0x60] sm:$0xf] %vm2990_vm3, %v2758_v28  ;;  %v1706_v31 = vpop.f32.mrf.mxu2  ;;  %v1866_v32 = vpop.f32.mrf.mxu3 }
 0x152   :  { %3079 = vst.msk [vmem:[%s5605_s2 + $0x160] sm:$0xf] %vm2990_vm3, %v2822_v30  ;;  %vm2118_vm1 = vcmp.ge.f32.partialorder %v1706_v31, 0.0  ;;  %v2374_v33 = vmul.f32 0.2, %v1706_v31  ;;  %vm2182_vm2 = vcmp.ge.f32.partialorder %v1866_v32, 0.0  ;;  %v1388_v34 = vpop.f32.mrf.mxu0  ;;  %v1548_v35 = vpop.f32.mrf.mxu1 }
 0x153   :  { %v2438_v36 = vmul.f32 0.2, %v1866_v32  ;;  %vm1991_vm4 = vcmp.ge.f32.partialorder %v1388_v34, 0.0  ;;  %v2247_v37 = vmul.f32 0.2, %v1388_v34  ;;  %vm2055_vm5 = vcmp.ge.f32.partialorder %v1548_v35, 0.0 }
 0x154   :  { %v2630_v38 = vsel %vm2118_vm1, %v1706_v31, %v2374_v33  ;;  %v2311_v39 = vmul.f32 0.2, %v1548_v35 }
 0x155   :  { %v2886_v40 = vpack.c.bf16 %v2630_v38, %v2630_v38  ;;  %v2694_v41 = vsel %vm2182_vm2, %v1866_v32, %v2438_v36  ;;  %v2503_v42 = vsel %vm1991_vm4, %v1388_v34, %v2247_v37 }
 0x156   :  { %v2950_v43 = vpack.c.bf16 %v2694_v41, %v2694_v41  ;;  %v2759_v44 = vpack.c.bf16 %v2503_v42, %v2503_v42  ;;  %v2567_v45 = vsel %vm2055_vm5, %v1548_v35, %v2311_v39 }
 0x157   :  { %3143 = vst.msk [vmem:[%s5605_s2 + $0x260] sm:$0xf] %vm2990_vm3, %v2886_v40  ;;  %v2823_v46 = vpack.c.bf16 %v2567_v45, %v2567_v45 }
 0x158   :  { %3207 = vst.msk [vmem:[%s5605_s2 + $0x360] sm:$0xf] %vm2990_vm3, %v2950_v43 }
 0x159   :  { %3016 = vst.msk [vmem:[%s5605_s2 + $0x64] sm:$0xf] %vm2990_vm3, %v2759_v44  ;;  %v1708_v48 = vpop.f32.mrf.mxu2  ;;  %v1868_v49 = vpop.f32.mrf.mxu3 }
 0x15a   :  { %3080 = vst.msk [vmem:[%s5605_s2 + $0x164] sm:$0xf] %vm2990_vm3, %v2823_v46  ;;  %vm2119_vm6 = vcmp.ge.f32.partialorder %v1708_v48, 0.0  ;;  %v2375_v53 = vmul.f32 0.2, %v1708_v48  ;;  %vm2183_vm7 = vcmp.ge.f32.partialorder %v1868_v49, 0.0  ;;  %v1391_v54 = vpop.f32.mrf.mxu0  ;;  %v1551_v55 = vpop.f32.mrf.mxu1 }
 0x15b   :  { %v2439_v56 = vmul.f32 0.2, %v1868_v49  ;;  %vm1992_vm8 = vcmp.ge.f32.partialorder %v1391_v54, 0.0  ;;  %v2248_v57 = vmul.f32 0.2, %v1391_v54  ;;  %vm2056_vm9 = vcmp.ge.f32.partialorder %v1551_v55, 0.0 }
 0x15c   :  { %v2631_v58 = vsel %vm2119_vm6, %v1708_v48, %v2375_v53  ;;  %v2312_v59 = vmul.f32 0.2, %v1551_v55 }
 0x15d   :  { %v2887_v60 = vpack.c.bf16 %v2631_v58, %v2631_v58  ;;  %v2695_v61 = vsel %vm2183_vm7, %v1868_v49, %v2439_v56  ;;  %v2504_v62 = vsel %vm1992_vm8, %v1391_v54, %v2248_v57  ;;  %3796 = vmatmul.msk.bf16.gmra.mxu0 %vm932_vm0, %v3924_v47  ;;  %3828 = vmatmul.msk.bf16.gmra.mxu1 %vm932_vm0, %v3956_v50  ;;  %v3958_v58 = vld [vmem:[%s5604_s0 + $0x1b8] sm:$0xff] }
 0x15e   :  { %v2951_v63 = vpack.c.bf16 %v2695_v61, %v2695_v61  ;;  %v2760_v0 = vpack.c.bf16 %v2504_v62, %v2504_v62  ;;  %v2568_v1 = vsel %vm2056_vm9, %v1551_v55, %v2312_v59  ;;  %3860 = vmatmul.msk.bf16.gmra.mxu2 %vm932_vm0, %v3988_v51  ;;  %3892 = vmatmul.msk.bf16.gmra.mxu3 %vm932_vm0, %v4020_v52  ;;  %v3926_v55 = vld [vmem:[%s5604_s0 + $0xb8] sm:$0xff] }
 0x15f   :  { %3144 = vst.msk [vmem:[%s5605_s2 + $0x264] sm:$0xf] %vm2990_vm3, %v2887_v60  ;;  %v2824_v2 = vpack.c.bf16 %v2568_v1, %v2568_v1  ;;  %v3990_v59 = vld [vmem:[%s5604_s0 + $0x2b8] sm:$0xff] }
 0x160   :  { %3208 = vst.msk [vmem:[%s5605_s2 + $0x364] sm:$0xf] %vm2990_vm3, %v2951_v63  ;;  %v4022_v60 = vld [vmem:[%s5604_s0 + $0x3b8] sm:$0xff] }
 0x161   :  { %3017 = vst.msk [vmem:[%s5605_s2 + $0x68] sm:$0xf] %vm2990_vm3, %v2760_v0  ;;  %v1711_v3 = vpop.f32.mrf.mxu2  ;;  %v1871_v4 = vpop.f32.mrf.mxu3 }
 0x162   :  { %3081 = vst.msk [vmem:[%s5605_s2 + $0x168] sm:$0xf] %vm2990_vm3, %v2824_v2  ;;  %vm2120_vm10 = vcmp.ge.f32.partialorder %v1711_v3, 0.0  ;;  %v2376_v5 = vmul.f32 0.2, %v1711_v3  ;;  %vm2184_vm11 = vcmp.ge.f32.partialorder %v1871_v4, 0.0  ;;  %v1393_v6 = vpop.f32.mrf.mxu0  ;;  %v1553_v7 = vpop.f32.mrf.mxu1 }
 0x163   :  { %v2440_v8 = vmul.f32 0.2, %v1871_v4  ;;  %vm1993_vm12 = vcmp.ge.f32.partialorder %v1393_v6, 0.0  ;;  %v2249_v9 = vmul.f32 0.2, %v1393_v6  ;;  %vm2057_vm13 = vcmp.ge.f32.partialorder %v1553_v7, 0.0 }
 0x164   :  { %v2632_v10 = vsel %vm2120_vm10, %v1711_v3, %v2376_v5  ;;  %v2313_v11 = vmul.f32 0.2, %v1553_v7 }
 0x165   :  { %v2888_v12 = vpack.c.bf16 %v2632_v10, %v2632_v10  ;;  %v2696_v13 = vsel %vm2184_vm11, %v1871_v4, %v2440_v8  ;;  %v2505_v14 = vsel %vm1993_vm12, %v1393_v6, %v2249_v9 }
 0x166   :  { %v2952_v15 = vpack.c.bf16 %v2696_v13, %v2696_v13  ;;  %v2761_v16 = vpack.c.bf16 %v2505_v14, %v2505_v14  ;;  %v2569_v17 = vsel %vm2057_vm13, %v1553_v7, %v2313_v11 }
 0x167   :  { %3145 = vst.msk [vmem:[%s5605_s2 + $0x268] sm:$0xf] %vm2990_vm3, %v2888_v12  ;;  %v2825_v18 = vpack.c.bf16 %v2569_v17, %v2569_v17 }
 0x168   :  { %3209 = vst.msk [vmem:[%s5605_s2 + $0x368] sm:$0xf] %vm2990_vm3, %v2952_v15 }
 0x169   :  { %3018 = vst.msk [vmem:[%s5605_s2 + $0x6c] sm:$0xf] %vm2990_vm3, %v2761_v16  ;;  %v1713_v20 = vpop.f32.mrf.mxu2  ;;  %v1873_v21 = vpop.f32.mrf.mxu3 }
 0x16a   :  { %3082 = vst.msk [vmem:[%s5605_s2 + $0x16c] sm:$0xf] %vm2990_vm3, %v2825_v18  ;;  %vm2121_vm14 = vcmp.ge.f32.partialorder %v1713_v20, 0.0  ;;  %v2377_v25 = vmul.f32 0.2, %v1713_v20  ;;  %vm2185_vm15 = vcmp.ge.f32.partialorder %v1873_v21, 0.0  ;;  %v1396_v26 = vpop.f32.mrf.mxu0  ;;  %v1556_v27 = vpop.f32.mrf.mxu1 }
 0x16b   :  { %v2441_v28 = vmul.f32 0.2, %v1873_v21  ;;  %vm1994_vm1 = vcmp.ge.f32.partialorder %v1396_v26, 0.0  ;;  %v2250_v29 = vmul.f32 0.2, %v1396_v26  ;;  %vm2058_vm2 = vcmp.ge.f32.partialorder %v1556_v27, 0.0 }
 0x16c   :  { %v2633_v30 = vsel %vm2121_vm14, %v1713_v20, %v2377_v25  ;;  %v2314_v31 = vmul.f32 0.2, %v1556_v27 }
 0x16d   :  { %v2889_v32 = vpack.c.bf16 %v2633_v30, %v2633_v30  ;;  %v2697_v33 = vsel %vm2185_vm15, %v1873_v21, %v2441_v28  ;;  %v2506_v34 = vsel %vm1994_vm1, %v1396_v26, %v2250_v29  ;;  %3797 = vmatmul.msk.bf16.gmra.mxu0 %vm932_vm0, %v3925_v19  ;;  %3829 = vmatmul.msk.bf16.gmra.mxu1 %vm932_vm0, %v3957_v22  ;;  %v3959_v30 = vld [vmem:[%s5604_s0 + $0x1c0] sm:$0xff] }
 0x16e   :  { %v2953_v35 = vpack.c.bf16 %v2697_v33, %v2697_v33  ;;  %v2762_v36 = vpack.c.bf16 %v2506_v34, %v2506_v34  ;;  %v2570_v37 = vsel %vm2058_vm2, %v1556_v27, %v2314_v31  ;;  %3861 = vmatmul.msk.bf16.gmra.mxu2 %vm932_vm0, %v3989_v23  ;;  %3893 = vmatmul.msk.bf16.gmra.mxu3 %vm932_vm0, %v4021_v24  ;;  %v3927_v27 = vld [vmem:[%s5604_s0 + $0xc0] sm:$0xff] }
 0x16f   :  { %3146 = vst.msk [vmem:[%s5605_s2 + $0x26c] sm:$0xf] %vm2990_vm3, %v2889_v32  ;;  %v2826_v38 = vpack.c.bf16 %v2570_v37, %v2570_v37  ;;  %v3991_v31 = vld [vmem:[%s5604_s0 + $0x2c0] sm:$0xff] }
 0x170   :  { %3210 = vst.msk [vmem:[%s5605_s2 + $0x36c] sm:$0xf] %vm2990_vm3, %v2953_v35  ;;  %v4023_v32 = vld [vmem:[%s5604_s0 + $0x3c0] sm:$0xff] }
 0x171   :  { %3019 = vst.msk [vmem:[%s5605_s2 + $0x70] sm:$0xf] %vm2990_vm3, %v2762_v36  ;;  %v1716_v39 = vpop.f32.mrf.mxu2  ;;  %v1876_v40 = vpop.f32.mrf.mxu3 }
 0x172   :  { %3083 = vst.msk [vmem:[%s5605_s2 + $0x170] sm:$0xf] %vm2990_vm3, %v2826_v38  ;;  %vm2122_vm4 = vcmp.ge.f32.partialorder %v1716_v39, 0.0  ;;  %v2378_v41 = vmul.f32 0.2, %v1716_v39  ;;  %vm2186_vm5 = vcmp.ge.f32.partialorder %v1876_v40, 0.0  ;;  %v1398_v42 = vpop.f32.mrf.mxu0  ;;  %v1558_v43 = vpop.f32.mrf.mxu1 }
 0x173   :  { %v2442_v44 = vmul.f32 0.2, %v1876_v40  ;;  %vm1995_vm6 = vcmp.ge.f32.partialorder %v1398_v42, 0.0  ;;  %v2251_v45 = vmul.f32 0.2, %v1398_v42  ;;  %vm2059_vm7 = vcmp.ge.f32.partialorder %v1558_v43, 0.0 }
 0x174   :  { %v2634_v46 = vsel %vm2122_vm4, %v1716_v39, %v2378_v41  ;;  %v2315_v47 = vmul.f32 0.2, %v1558_v43 }
 0x175   :  { %v2890_v48 = vpack.c.bf16 %v2634_v46, %v2634_v46  ;;  %v2698_v49 = vsel %vm2186_vm5, %v1876_v40, %v2442_v44  ;;  %v2507_v50 = vsel %vm1995_vm6, %v1398_v42, %v2251_v45 }
 0x176   :  { %v2954_v51 = vpack.c.bf16 %v2698_v49, %v2698_v49  ;;  %v2763_v52 = vpack.c.bf16 %v2507_v50, %v2507_v50  ;;  %v2571_v53 = vsel %vm2059_vm7, %v1558_v43, %v2315_v47 }
 0x177   :  { %3147 = vst.msk [vmem:[%s5605_s2 + $0x270] sm:$0xf] %vm2990_vm3, %v2890_v48  ;;  %v2827_v54 = vpack.c.bf16 %v2571_v53, %v2571_v53 }
 0x178   :  { %3211 = vst.msk [vmem:[%s5605_s2 + $0x370] sm:$0xf] %vm2990_vm3, %v2954_v51 }
 0x179   :  { %3020 = vst.msk [vmem:[%s5605_s2 + $0x74] sm:$0xf] %vm2990_vm3, %v2763_v52  ;;  %v1718_v56 = vpop.f32.mrf.mxu2  ;;  %v1878_v57 = vpop.f32.mrf.mxu3 }
 0x17a   :  { %3084 = vst.msk [vmem:[%s5605_s2 + $0x174] sm:$0xf] %vm2990_vm3, %v2827_v54  ;;  %vm2123_vm8 = vcmp.ge.f32.partialorder %v1718_v56, 0.0  ;;  %v2379_v61 = vmul.f32 0.2, %v1718_v56  ;;  %vm2187_vm9 = vcmp.ge.f32.partialorder %v1878_v57, 0.0  ;;  %v1401_v62 = vpop.f32.mrf.mxu0  ;;  %v1561_v63 = vpop.f32.mrf.mxu1 }
 0x17b   :  { %v2443_v0 = vmul.f32 0.2, %v1878_v57  ;;  %vm1996_vm10 = vcmp.ge.f32.partialorder %v1401_v62, 0.0  ;;  %v2252_v1 = vmul.f32 0.2, %v1401_v62  ;;  %vm2060_vm11 = vcmp.ge.f32.partialorder %v1561_v63, 0.0 }
 0x17c   :  { %v2635_v2 = vsel %vm2123_vm8, %v1718_v56, %v2379_v61  ;;  %v2316_v3 = vmul.f32 0.2, %v1561_v63 }
 0x17d   :  { %v2891_v4 = vpack.c.bf16 %v2635_v2, %v2635_v2  ;;  %v2699_v5 = vsel %vm2187_vm9, %v1878_v57, %v2443_v0  ;;  %v2508_v6 = vsel %vm1996_vm10, %v1401_v62, %v2252_v1  ;;  %3798 = vmatmul.msk.bf16.gmra.mxu0 %vm932_vm0, %v3926_v55  ;;  %3830 = vmatmul.msk.bf16.gmra.mxu1 %vm932_vm0, %v3958_v58  ;;  %v3960_v2 = vld [vmem:[%s5604_s0 + $0x1c8] sm:$0xff] }
 0x17e   :  { %v2955_v7 = vpack.c.bf16 %v2699_v5, %v2699_v5  ;;  %v2764_v8 = vpack.c.bf16 %v2508_v6, %v2508_v6  ;;  %v2572_v9 = vsel %vm2060_vm11, %v1561_v63, %v2316_v3  ;;  %3862 = vmatmul.msk.bf16.gmra.mxu2 %vm932_vm0, %v3990_v59  ;;  %3894 = vmatmul.msk.bf16.gmra.mxu3 %vm932_vm0, %v4022_v60  ;;  %v3928_v63 = vld [vmem:[%s5604_s0 + $0xc8] sm:$0xff] }
 0x17f   :  { %3148 = vst.msk [vmem:[%s5605_s2 + $0x274] sm:$0xf] %vm2990_vm3, %v2891_v4  ;;  %v2828_v10 = vpack.c.bf16 %v2572_v9, %v2572_v9  ;;  %v3992_v3 = vld [vmem:[%s5604_s0 + $0x2c8] sm:$0xff] }
 0x180   :  { %3212 = vst.msk [vmem:[%s5605_s2 + $0x374] sm:$0xf] %vm2990_vm3, %v2955_v7  ;;  %v4024_v4 = vld [vmem:[%s5604_s0 + $0x3c8] sm:$0xff] }
 0x181   :  { %3021 = vst.msk [vmem:[%s5605_s2 + $0x78] sm:$0xf] %vm2990_vm3, %v2764_v8  ;;  %v1721_v11 = vpop.f32.mrf.mxu2  ;;  %v1881_v12 = vpop.f32.mrf.mxu3 }
 0x182   :  { %3085 = vst.msk [vmem:[%s5605_s2 + $0x178] sm:$0xf] %vm2990_vm3, %v2828_v10  ;;  %vm2124_vm12 = vcmp.ge.f32.partialorder %v1721_v11, 0.0  ;;  %v2380_v13 = vmul.f32 0.2, %v1721_v11  ;;  %vm2188_vm13 = vcmp.ge.f32.partialorder %v1881_v12, 0.0  ;;  %v1403_v14 = vpop.f32.mrf.mxu0  ;;  %v1563_v15 = vpop.f32.mrf.mxu1 }
 0x183   :  { %v2444_v16 = vmul.f32 0.2, %v1881_v12  ;;  %vm1997_vm14 = vcmp.ge.f32.partialorder %v1403_v14, 0.0  ;;  %v2253_v17 = vmul.f32 0.2, %v1403_v14  ;;  %vm2061_vm15 = vcmp.ge.f32.partialorder %v1563_v15, 0.0 }
 0x184   :  { %v2636_v18 = vsel %vm2124_vm12, %v1721_v11, %v2380_v13  ;;  %v2317_v19 = vmul.f32 0.2, %v1563_v15 }
 0x185   :  { %v2892_v20 = vpack.c.bf16 %v2636_v18, %v2636_v18  ;;  %v2700_v21 = vsel %vm2188_vm13, %v1881_v12, %v2444_v16  ;;  %v2509_v22 = vsel %vm1997_vm14, %v1403_v14, %v2253_v17 }
 0x186   :  { %v2956_v23 = vpack.c.bf16 %v2700_v21, %v2700_v21  ;;  %v2765_v24 = vpack.c.bf16 %v2509_v22, %v2509_v22  ;;  %v2573_v25 = vsel %vm2061_vm15, %v1563_v15, %v2317_v19 }
 0x187   :  { %3149 = vst.msk [vmem:[%s5605_s2 + $0x278] sm:$0xf] %vm2990_vm3, %v2892_v20  ;;  %v2829_v26 = vpack.c.bf16 %v2573_v25, %v2573_v25 }
 0x188   :  { %3213 = vst.msk [vmem:[%s5605_s2 + $0x378] sm:$0xf] %vm2990_vm3, %v2956_v23 }
 0x189   :  { %3022 = vst.msk [vmem:[%s5605_s2 + $0x7c] sm:$0xf] %vm2990_vm3, %v2765_v24  ;;  %v1723_v28 = vpop.f32.mrf.mxu2  ;;  %v1883_v29 = vpop.f32.mrf.mxu3 }
 0x18a   :  { %3086 = vst.msk [vmem:[%s5605_s2 + $0x17c] sm:$0xf] %vm2990_vm3, %v2829_v26  ;;  %vm2125_vm1 = vcmp.ge.f32.partialorder %v1723_v28, 0.0  ;;  %v2381_v33 = vmul.f32 0.2, %v1723_v28  ;;  %vm2189_vm2 = vcmp.ge.f32.partialorder %v1883_v29, 0.0  ;;  %v1406_v34 = vpop.f32.mrf.mxu0  ;;  %v1566_v35 = vpop.f32.mrf.mxu1 }
 0x18b   :  { %v2445_v36 = vmul.f32 0.2, %v1883_v29  ;;  %vm1998_vm4 = vcmp.ge.f32.partialorder %v1406_v34, 0.0  ;;  %v2254_v37 = vmul.f32 0.2, %v1406_v34  ;;  %vm2062_vm5 = vcmp.ge.f32.partialorder %v1566_v35, 0.0 }
 0x18c   :  { %v2637_v38 = vsel %vm2125_vm1, %v1723_v28, %v2381_v33  ;;  %v2318_v39 = vmul.f32 0.2, %v1566_v35 }
 0x18d   :  { %v2893_v40 = vpack.c.bf16 %v2637_v38, %v2637_v38  ;;  %v2701_v41 = vsel %vm2189_vm2, %v1883_v29, %v2445_v36  ;;  %v2510_v42 = vsel %vm1998_vm4, %v1406_v34, %v2254_v37  ;;  %3799 = vmatmul.msk.bf16.gmra.mxu0 %vm932_vm0, %v3927_v27  ;;  %3831 = vmatmul.msk.bf16.gmra.mxu1 %vm932_vm0, %v3959_v30  ;;  %v3961_v38 = vld [vmem:[%s5604_s0 + $0x1d0] sm:$0xff] }
 0x18e   :  { %v2957_v43 = vpack.c.bf16 %v2701_v41, %v2701_v41  ;;  %v2766_v44 = vpack.c.bf16 %v2510_v42, %v2510_v42  ;;  %v2574_v45 = vsel %vm2062_vm5, %v1566_v35, %v2318_v39  ;;  %3863 = vmatmul.msk.bf16.gmra.mxu2 %vm932_vm0, %v3991_v31  ;;  %3895 = vmatmul.msk.bf16.gmra.mxu3 %vm932_vm0, %v4023_v32  ;;  %v3929_v35 = vld [vmem:[%s5604_s0 + $0xd0] sm:$0xff] }
 0x18f   :  { %3150 = vst.msk [vmem:[%s5605_s2 + $0x27c] sm:$0xf] %vm2990_vm3, %v2893_v40  ;;  %v2830_v46 = vpack.c.bf16 %v2574_v45, %v2574_v45  ;;  %v3993_v39 = vld [vmem:[%s5604_s0 + $0x2d0] sm:$0xff] }
 0x190   :  { %3214 = vst.msk [vmem:[%s5605_s2 + $0x37c] sm:$0xf] %vm2990_vm3, %v2957_v43  ;;  %v4025_v40 = vld [vmem:[%s5604_s0 + $0x3d0] sm:$0xff] }
 0x191   :  { %3023 = vst.msk [vmem:[%s5605_s2 + $0x80] sm:$0xf] %vm2990_vm3, %v2766_v44  ;;  %v1726_v47 = vpop.f32.mrf.mxu2  ;;  %v1886_v48 = vpop.f32.mrf.mxu3 }
 0x192   :  { %3087 = vst.msk [vmem:[%s5605_s2 + $0x180] sm:$0xf] %vm2990_vm3, %v2830_v46  ;;  %vm2126_vm6 = vcmp.ge.f32.partialorder %v1726_v47, 0.0  ;;  %v2382_v49 = vmul.f32 0.2, %v1726_v47  ;;  %vm2190_vm7 = vcmp.ge.f32.partialorder %v1886_v48, 0.0  ;;  %v1408_v50 = vpop.f32.mrf.mxu0  ;;  %v1568_v51 = vpop.f32.mrf.mxu1 }
 0x193   :  { %v2446_v52 = vmul.f32 0.2, %v1886_v48  ;;  %vm1999_vm8 = vcmp.ge.f32.partialorder %v1408_v50, 0.0  ;;  %v2255_v53 = vmul.f32 0.2, %v1408_v50  ;;  %vm2063_vm9 = vcmp.ge.f32.partialorder %v1568_v51, 0.0 }
 0x194   :  { %v2638_v54 = vsel %vm2126_vm6, %v1726_v47, %v2382_v49  ;;  %v2319_v55 = vmul.f32 0.2, %v1568_v51 }
 0x195   :  { %v2894_v56 = vpack.c.bf16 %v2638_v54, %v2638_v54  ;;  %v2702_v57 = vsel %vm2190_vm7, %v1886_v48, %v2446_v52  ;;  %v2511_v58 = vsel %vm1999_vm8, %v1408_v50, %v2255_v53 }
 0x196   :  { %v2958_v59 = vpack.c.bf16 %v2702_v57, %v2702_v57  ;;  %v2767_v60 = vpack.c.bf16 %v2511_v58, %v2511_v58  ;;  %v2575_v61 = vsel %vm2063_vm9, %v1568_v51, %v2319_v55 }
 0x197   :  { %3151 = vst.msk [vmem:[%s5605_s2 + $0x280] sm:$0xf] %vm2990_vm3, %v2894_v56  ;;  %v2831_v62 = vpack.c.bf16 %v2575_v61, %v2575_v61 }
 0x198   :  { %3215 = vst.msk [vmem:[%s5605_s2 + $0x380] sm:$0xf] %vm2990_vm3, %v2958_v59 }
 0x199   :  { %3024 = vst.msk [vmem:[%s5605_s2 + $0x84] sm:$0xf] %vm2990_vm3, %v2767_v60  ;;  %v1728_v0 = vpop.f32.mrf.mxu2  ;;  %v1888_v1 = vpop.f32.mrf.mxu3 }
 0x19a   :  { %3088 = vst.msk [vmem:[%s5605_s2 + $0x184] sm:$0xf] %vm2990_vm3, %v2831_v62  ;;  %vm2127_vm10 = vcmp.ge.f32.partialorder %v1728_v0, 0.0  ;;  %v2383_v5 = vmul.f32 0.2, %v1728_v0  ;;  %vm2191_vm11 = vcmp.ge.f32.partialorder %v1888_v1, 0.0  ;;  %v1411_v6 = vpop.f32.mrf.mxu0  ;;  %v1571_v7 = vpop.f32.mrf.mxu1 }
 0x19b   :  { %v2447_v8 = vmul.f32 0.2, %v1888_v1  ;;  %vm2000_vm12 = vcmp.ge.f32.partialorder %v1411_v6, 0.0  ;;  %v2256_v9 = vmul.f32 0.2, %v1411_v6  ;;  %vm2064_vm13 = vcmp.ge.f32.partialorder %v1571_v7, 0.0 }
 0x19c   :  { %v2639_v10 = vsel %vm2127_vm10, %v1728_v0, %v2383_v5  ;;  %v2320_v11 = vmul.f32 0.2, %v1571_v7 }
 0x19d   :  { %v2895_v12 = vpack.c.bf16 %v2639_v10, %v2639_v10  ;;  %v2703_v13 = vsel %vm2191_vm11, %v1888_v1, %v2447_v8  ;;  %v2512_v14 = vsel %vm2000_vm12, %v1411_v6, %v2256_v9  ;;  %3800 = vmatmul.msk.bf16.gmra.mxu0 %vm932_vm0, %v3928_v63  ;;  %3832 = vmatmul.msk.bf16.gmra.mxu1 %vm932_vm0, %v3960_v2  ;;  %v3962_v10 = vld [vmem:[%s5604_s0 + $0x1d8] sm:$0xff] }
 0x19e   :  { %v2959_v15 = vpack.c.bf16 %v2703_v13, %v2703_v13  ;;  %v2768_v16 = vpack.c.bf16 %v2512_v14, %v2512_v14  ;;  %v2576_v17 = vsel %vm2064_vm13, %v1571_v7, %v2320_v11  ;;  %3864 = vmatmul.msk.bf16.gmra.mxu2 %vm932_vm0, %v3992_v3  ;;  %3896 = vmatmul.msk.bf16.gmra.mxu3 %vm932_vm0, %v4024_v4  ;;  %v3930_v7 = vld [vmem:[%s5604_s0 + $0xd8] sm:$0xff] }
 0x19f   :  { %3152 = vst.msk [vmem:[%s5605_s2 + $0x284] sm:$0xf] %vm2990_vm3, %v2895_v12  ;;  %v2832_v18 = vpack.c.bf16 %v2576_v17, %v2576_v17  ;;  %v3994_v11 = vld [vmem:[%s5604_s0 + $0x2d8] sm:$0xff] }
 0x1a0   :  { %3216 = vst.msk [vmem:[%s5605_s2 + $0x384] sm:$0xf] %vm2990_vm3, %v2959_v15  ;;  %v4026_v12 = vld [vmem:[%s5604_s0 + $0x3d8] sm:$0xff] }
 0x1a1   :  { %3025 = vst.msk [vmem:[%s5605_s2 + $0x88] sm:$0xf] %vm2990_vm3, %v2768_v16  ;;  %v1731_v19 = vpop.f32.mrf.mxu2  ;;  %v1891_v20 = vpop.f32.mrf.mxu3 }
 0x1a2   :  { %3089 = vst.msk [vmem:[%s5605_s2 + $0x188] sm:$0xf] %vm2990_vm3, %v2832_v18  ;;  %vm2128_vm14 = vcmp.ge.f32.partialorder %v1731_v19, 0.0  ;;  %v2384_v21 = vmul.f32 0.2, %v1731_v19  ;;  %vm2192_vm15 = vcmp.ge.f32.partialorder %v1891_v20, 0.0  ;;  %v1413_v22 = vpop.f32.mrf.mxu0  ;;  %v1573_v23 = vpop.f32.mrf.mxu1 }
 0x1a3   :  { %v2448_v24 = vmul.f32 0.2, %v1891_v20  ;;  %vm2001_vm1 = vcmp.ge.f32.partialorder %v1413_v22, 0.0  ;;  %v2257_v25 = vmul.f32 0.2, %v1413_v22  ;;  %vm2065_vm2 = vcmp.ge.f32.partialorder %v1573_v23, 0.0 }
 0x1a4   :  { %v2640_v26 = vsel %vm2128_vm14, %v1731_v19, %v2384_v21  ;;  %v2321_v27 = vmul.f32 0.2, %v1573_v23 }
 0x1a5   :  { %v2896_v28 = vpack.c.bf16 %v2640_v26, %v2640_v26  ;;  %v2704_v29 = vsel %vm2192_vm15, %v1891_v20, %v2448_v24  ;;  %v2513_v30 = vsel %vm2001_vm1, %v1413_v22, %v2257_v25 }
 0x1a6   :  { %v2960_v31 = vpack.c.bf16 %v2704_v29, %v2704_v29  ;;  %v2769_v32 = vpack.c.bf16 %v2513_v30, %v2513_v30  ;;  %v2577_v33 = vsel %vm2065_vm2, %v1573_v23, %v2321_v27 }
 0x1a7   :  { %3153 = vst.msk [vmem:[%s5605_s2 + $0x288] sm:$0xf] %vm2990_vm3, %v2896_v28  ;;  %v2833_v34 = vpack.c.bf16 %v2577_v33, %v2577_v33 }
 0x1a8   :  { %3217 = vst.msk [vmem:[%s5605_s2 + $0x388] sm:$0xf] %vm2990_vm3, %v2960_v31 }
 0x1a9   :  { %3026 = vst.msk [vmem:[%s5605_s2 + $0x8c] sm:$0xf] %vm2990_vm3, %v2769_v32  ;;  %v1733_v36 = vpop.f32.mrf.mxu2  ;;  %v1893_v37 = vpop.f32.mrf.mxu3 }
 0x1aa   :  { %3090 = vst.msk [vmem:[%s5605_s2 + $0x18c] sm:$0xf] %vm2990_vm3, %v2833_v34  ;;  %vm2129_vm4 = vcmp.ge.f32.partialorder %v1733_v36, 0.0  ;;  %v2385_v41 = vmul.f32 0.2, %v1733_v36  ;;  %vm2193_vm5 = vcmp.ge.f32.partialorder %v1893_v37, 0.0  ;;  %v1416_v42 = vpop.f32.mrf.mxu0  ;;  %v1576_v43 = vpop.f32.mrf.mxu1 }
 0x1ab   :  { %v2449_v44 = vmul.f32 0.2, %v1893_v37  ;;  %vm2002_vm6 = vcmp.ge.f32.partialorder %v1416_v42, 0.0  ;;  %v2258_v45 = vmul.f32 0.2, %v1416_v42  ;;  %vm2066_vm7 = vcmp.ge.f32.partialorder %v1576_v43, 0.0 }
 0x1ac   :  { %v2641_v46 = vsel %vm2129_vm4, %v1733_v36, %v2385_v41  ;;  %v2322_v47 = vmul.f32 0.2, %v1576_v43 }
 0x1ad   :  { %v2897_v48 = vpack.c.bf16 %v2641_v46, %v2641_v46  ;;  %v2705_v49 = vsel %vm2193_vm5, %v1893_v37, %v2449_v44  ;;  %v2514_v50 = vsel %vm2002_vm6, %v1416_v42, %v2258_v45  ;;  %3801 = vmatmul.msk.bf16.gmra.mxu0 %vm932_vm0, %v3929_v35  ;;  %3833 = vmatmul.msk.bf16.gmra.mxu1 %vm932_vm0, %v3961_v38  ;;  %v3963_v46 = vld [vmem:[%s5604_s0 + $0x1e0] sm:$0xff] }
 0x1ae   :  { %v2961_v51 = vpack.c.bf16 %v2705_v49, %v2705_v49  ;;  %v2770_v52 = vpack.c.bf16 %v2514_v50, %v2514_v50  ;;  %v2578_v53 = vsel %vm2066_vm7, %v1576_v43, %v2322_v47  ;;  %3865 = vmatmul.msk.bf16.gmra.mxu2 %vm932_vm0, %v3993_v39  ;;  %3897 = vmatmul.msk.bf16.gmra.mxu3 %vm932_vm0, %v4025_v40  ;;  %v3931_v43 = vld [vmem:[%s5604_s0 + $0xe0] sm:$0xff] }
 0x1af   :  { %3154 = vst.msk [vmem:[%s5605_s2 + $0x28c] sm:$0xf] %vm2990_vm3, %v2897_v48  ;;  %v2834_v54 = vpack.c.bf16 %v2578_v53, %v2578_v53  ;;  %v3995_v47 = vld [vmem:[%s5604_s0 + $0x2e0] sm:$0xff] }
 0x1b0   :  { %3218 = vst.msk [vmem:[%s5605_s2 + $0x38c] sm:$0xf] %vm2990_vm3, %v2961_v51  ;;  %v4027_v48 = vld [vmem:[%s5604_s0 + $0x3e0] sm:$0xff] }
 0x1b1   :  { %3027 = vst.msk [vmem:[%s5605_s2 + $0x90] sm:$0xf] %vm2990_vm3, %v2770_v52  ;;  %v1736_v55 = vpop.f32.mrf.mxu2  ;;  %v1896_v56 = vpop.f32.mrf.mxu3 }
 0x1b2   :  { %3091 = vst.msk [vmem:[%s5605_s2 + $0x190] sm:$0xf] %vm2990_vm3, %v2834_v54  ;;  %vm2130_vm8 = vcmp.ge.f32.partialorder %v1736_v55, 0.0  ;;  %v2386_v57 = vmul.f32 0.2, %v1736_v55  ;;  %vm2194_vm9 = vcmp.ge.f32.partialorder %v1896_v56, 0.0  ;;  %v1418_v58 = vpop.f32.mrf.mxu0  ;;  %v1578_v59 = vpop.f32.mrf.mxu1 }
 0x1b3   :  { %v2450_v60 = vmul.f32 0.2, %v1896_v56  ;;  %vm2003_vm10 = vcmp.ge.f32.partialorder %v1418_v58, 0.0  ;;  %v2259_v61 = vmul.f32 0.2, %v1418_v58  ;;  %vm2067_vm11 = vcmp.ge.f32.partialorder %v1578_v59, 0.0 }
 0x1b4   :  { %v2642_v62 = vsel %vm2130_vm8, %v1736_v55, %v2386_v57  ;;  %v2323_v63 = vmul.f32 0.2, %v1578_v59 }
 0x1b5   :  { %v2898_v0 = vpack.c.bf16 %v2642_v62, %v2642_v62  ;;  %v2706_v1 = vsel %vm2194_vm9, %v1896_v56, %v2450_v60  ;;  %v2515_v2 = vsel %vm2003_vm10, %v1418_v58, %v2259_v61 }
 0x1b6   :  { %v2962_v3 = vpack.c.bf16 %v2706_v1, %v2706_v1  ;;  %v2771_v4 = vpack.c.bf16 %v2515_v2, %v2515_v2  ;;  %v2579_v5 = vsel %vm2067_vm11, %v1578_v59, %v2323_v63 }
 0x1b7   :  { %3155 = vst.msk [vmem:[%s5605_s2 + $0x290] sm:$0xf] %vm2990_vm3, %v2898_v0  ;;  %v2835_v6 = vpack.c.bf16 %v2579_v5, %v2579_v5 }
 0x1b8   :  { %3219 = vst.msk [vmem:[%s5605_s2 + $0x390] sm:$0xf] %vm2990_vm3, %v2962_v3 }
 0x1b9   :  { %3028 = vst.msk [vmem:[%s5605_s2 + $0x94] sm:$0xf] %vm2990_vm3, %v2771_v4  ;;  %v1738_v8 = vpop.f32.mrf.mxu2  ;;  %v1898_v9 = vpop.f32.mrf.mxu3 }
 0x1ba   :  { %3092 = vst.msk [vmem:[%s5605_s2 + $0x194] sm:$0xf] %vm2990_vm3, %v2835_v6  ;;  %vm2131_vm12 = vcmp.ge.f32.partialorder %v1738_v8, 0.0  ;;  %v2387_v13 = vmul.f32 0.2, %v1738_v8  ;;  %vm2195_vm13 = vcmp.ge.f32.partialorder %v1898_v9, 0.0  ;;  %v1421_v14 = vpop.f32.mrf.mxu0  ;;  %v1581_v15 = vpop.f32.mrf.mxu1 }
 0x1bb   :  { %v2451_v16 = vmul.f32 0.2, %v1898_v9  ;;  %vm2004_vm14 = vcmp.ge.f32.partialorder %v1421_v14, 0.0  ;;  %v2260_v17 = vmul.f32 0.2, %v1421_v14  ;;  %vm2068_vm15 = vcmp.ge.f32.partialorder %v1581_v15, 0.0 }
 0x1bc   :  { %v2643_v18 = vsel %vm2131_vm12, %v1738_v8, %v2387_v13  ;;  %v2324_v19 = vmul.f32 0.2, %v1581_v15 }
 0x1bd   :  { %v2899_v20 = vpack.c.bf16 %v2643_v18, %v2643_v18  ;;  %v2707_v21 = vsel %vm2195_vm13, %v1898_v9, %v2451_v16  ;;  %v2516_v22 = vsel %vm2004_vm14, %v1421_v14, %v2260_v17  ;;  %3802 = vmatmul.msk.bf16.gmra.mxu0 %vm932_vm0, %v3930_v7  ;;  %3834 = vmatmul.msk.bf16.gmra.mxu1 %vm932_vm0, %v3962_v10  ;;  %v3964_v18 = vld [vmem:[%s5604_s0 + $0x1e8] sm:$0xff] }
 0x1be   :  { %v2963_v23 = vpack.c.bf16 %v2707_v21, %v2707_v21  ;;  %v2772_v24 = vpack.c.bf16 %v2516_v22, %v2516_v22  ;;  %v2580_v25 = vsel %vm2068_vm15, %v1581_v15, %v2324_v19  ;;  %3866 = vmatmul.msk.bf16.gmra.mxu2 %vm932_vm0, %v3994_v11  ;;  %3898 = vmatmul.msk.bf16.gmra.mxu3 %vm932_vm0, %v4026_v12  ;;  %v3932_v15 = vld [vmem:[%s5604_s0 + $0xe8] sm:$0xff] }
 0x1bf   :  { %3156 = vst.msk [vmem:[%s5605_s2 + $0x294] sm:$0xf] %vm2990_vm3, %v2899_v20  ;;  %v2836_v26 = vpack.c.bf16 %v2580_v25, %v2580_v25  ;;  %v3996_v19 = vld [vmem:[%s5604_s0 + $0x2e8] sm:$0xff] }
 0x1c0   :  { %3220 = vst.msk [vmem:[%s5605_s2 + $0x394] sm:$0xf] %vm2990_vm3, %v2963_v23  ;;  %v4028_v20 = vld [vmem:[%s5604_s0 + $0x3e8] sm:$0xff] }
 0x1c1   :  { %3029 = vst.msk [vmem:[%s5605_s2 + $0x98] sm:$0xf] %vm2990_vm3, %v2772_v24  ;;  %v1741_v27 = vpop.f32.mrf.mxu2  ;;  %v1901_v28 = vpop.f32.mrf.mxu3 }
 0x1c2   :  { %3093 = vst.msk [vmem:[%s5605_s2 + $0x198] sm:$0xf] %vm2990_vm3, %v2836_v26  ;;  %vm2132_vm1 = vcmp.ge.f32.partialorder %v1741_v27, 0.0  ;;  %v2388_v29 = vmul.f32 0.2, %v1741_v27  ;;  %vm2196_vm2 = vcmp.ge.f32.partialorder %v1901_v28, 0.0  ;;  %v1423_v30 = vpop.f32.mrf.mxu0  ;;  %v1583_v31 = vpop.f32.mrf.mxu1 }
 0x1c3   :  { %v2452_v32 = vmul.f32 0.2, %v1901_v28  ;;  %vm2005_vm4 = vcmp.ge.f32.partialorder %v1423_v30, 0.0  ;;  %v2261_v33 = vmul.f32 0.2, %v1423_v30  ;;  %vm2069_vm5 = vcmp.ge.f32.partialorder %v1583_v31, 0.0 }
 0x1c4   :  { %v2644_v34 = vsel %vm2132_vm1, %v1741_v27, %v2388_v29  ;;  %v2325_v35 = vmul.f32 0.2, %v1583_v31 }
 0x1c5   :  { %v2900_v36 = vpack.c.bf16 %v2644_v34, %v2644_v34  ;;  %v2708_v37 = vsel %vm2196_vm2, %v1901_v28, %v2452_v32  ;;  %v2517_v38 = vsel %vm2005_vm4, %v1423_v30, %v2261_v33 }
 0x1c6   :  { %v2964_v39 = vpack.c.bf16 %v2708_v37, %v2708_v37  ;;  %v2773_v40 = vpack.c.bf16 %v2517_v38, %v2517_v38  ;;  %v2581_v41 = vsel %vm2069_vm5, %v1583_v31, %v2325_v35 }
 0x1c7   :  { %3157 = vst.msk [vmem:[%s5605_s2 + $0x298] sm:$0xf] %vm2990_vm3, %v2900_v36  ;;  %v2837_v42 = vpack.c.bf16 %v2581_v41, %v2581_v41 }
 0x1c8   :  { %3221 = vst.msk [vmem:[%s5605_s2 + $0x398] sm:$0xf] %vm2990_vm3, %v2964_v39 }
 0x1c9   :  { %3030 = vst.msk [vmem:[%s5605_s2 + $0x9c] sm:$0xf] %vm2990_vm3, %v2773_v40  ;;  %v1743_v44 = vpop.f32.mrf.mxu2  ;;  %v1903_v45 = vpop.f32.mrf.mxu3 }
 0x1ca   :  { %3094 = vst.msk [vmem:[%s5605_s2 + $0x19c] sm:$0xf] %vm2990_vm3, %v2837_v42  ;;  %vm2133_vm6 = vcmp.ge.f32.partialorder %v1743_v44, 0.0  ;;  %v2389_v49 = vmul.f32 0.2, %v1743_v44  ;;  %vm2197_vm7 = vcmp.ge.f32.partialorder %v1903_v45, 0.0  ;;  %v1426_v50 = vpop.f32.mrf.mxu0  ;;  %v1586_v51 = vpop.f32.mrf.mxu1 }
 0x1cb   :  { %v2453_v52 = vmul.f32 0.2, %v1903_v45  ;;  %vm2006_vm8 = vcmp.ge.f32.partialorder %v1426_v50, 0.0  ;;  %v2262_v53 = vmul.f32 0.2, %v1426_v50  ;;  %vm2070_vm9 = vcmp.ge.f32.partialorder %v1586_v51, 0.0 }
 0x1cc   :  { %v2645_v54 = vsel %vm2133_vm6, %v1743_v44, %v2389_v49  ;;  %v2326_v55 = vmul.f32 0.2, %v1586_v51 }
 0x1cd   :  { %v2901_v56 = vpack.c.bf16 %v2645_v54, %v2645_v54  ;;  %v2709_v57 = vsel %vm2197_vm7, %v1903_v45, %v2453_v52  ;;  %v2518_v58 = vsel %vm2006_vm8, %v1426_v50, %v2262_v53  ;;  %3803 = vmatmul.msk.bf16.gmra.mxu0 %vm932_vm0, %v3931_v43  ;;  %3835 = vmatmul.msk.bf16.gmra.mxu1 %vm932_vm0, %v3963_v46  ;;  %v3965_v54 = vld [vmem:[%s5604_s0 + $0x1f0] sm:$0xff] }
 0x1ce   :  { %v2965_v59 = vpack.c.bf16 %v2709_v57, %v2709_v57  ;;  %v2774_v60 = vpack.c.bf16 %v2518_v58, %v2518_v58  ;;  %v2582_v61 = vsel %vm2070_vm9, %v1586_v51, %v2326_v55  ;;  %3867 = vmatmul.msk.bf16.gmra.mxu2 %vm932_vm0, %v3995_v47  ;;  %3899 = vmatmul.msk.bf16.gmra.mxu3 %vm932_vm0, %v4027_v48  ;;  %v3933_v51 = vld [vmem:[%s5604_s0 + $0xf0] sm:$0xff] }
 0x1cf   :  { %3158 = vst.msk [vmem:[%s5605_s2 + $0x29c] sm:$0xf] %vm2990_vm3, %v2901_v56  ;;  %v2838_v62 = vpack.c.bf16 %v2582_v61, %v2582_v61  ;;  %v3997_v55 = vld [vmem:[%s5604_s0 + $0x2f0] sm:$0xff] }
 0x1d0   :  { %3222 = vst.msk [vmem:[%s5605_s2 + $0x39c] sm:$0xf] %vm2990_vm3, %v2965_v59  ;;  %v4029_v56 = vld [vmem:[%s5604_s0 + $0x3f0] sm:$0xff] }
 0x1d1   :  { %3031 = vst.msk [vmem:[%s5605_s2 + $0xa0] sm:$0xf] %vm2990_vm3, %v2774_v60  ;;  %v1746_v63 = vpop.f32.mrf.mxu2  ;;  %v1906_v0 = vpop.f32.mrf.mxu3 }
 0x1d2   :  { %3095 = vst.msk [vmem:[%s5605_s2 + $0x1a0] sm:$0xf] %vm2990_vm3, %v2838_v62  ;;  %vm2134_vm10 = vcmp.ge.f32.partialorder %v1746_v63, 0.0  ;;  %v2390_v1 = vmul.f32 0.2, %v1746_v63  ;;  %vm2198_vm11 = vcmp.ge.f32.partialorder %v1906_v0, 0.0  ;;  %v1428_v2 = vpop.f32.mrf.mxu0  ;;  %v1588_v3 = vpop.f32.mrf.mxu1 }
 0x1d3   :  { %v2454_v4 = vmul.f32 0.2, %v1906_v0  ;;  %vm2007_vm12 = vcmp.ge.f32.partialorder %v1428_v2, 0.0  ;;  %v2263_v5 = vmul.f32 0.2, %v1428_v2  ;;  %vm2071_vm13 = vcmp.ge.f32.partialorder %v1588_v3, 0.0 }
 0x1d4   :  { %v2646_v6 = vsel %vm2134_vm10, %v1746_v63, %v2390_v1  ;;  %v2327_v7 = vmul.f32 0.2, %v1588_v3 }
 0x1d5   :  { %v2902_v8 = vpack.c.bf16 %v2646_v6, %v2646_v6  ;;  %v2710_v9 = vsel %vm2198_vm11, %v1906_v0, %v2454_v4  ;;  %v2519_v10 = vsel %vm2007_vm12, %v1428_v2, %v2263_v5 }
 0x1d6   :  { %v2966_v11 = vpack.c.bf16 %v2710_v9, %v2710_v9  ;;  %v2775_v12 = vpack.c.bf16 %v2519_v10, %v2519_v10  ;;  %v2583_v13 = vsel %vm2071_vm13, %v1588_v3, %v2327_v7 }
 0x1d7   :  { %3159 = vst.msk [vmem:[%s5605_s2 + $0x2a0] sm:$0xf] %vm2990_vm3, %v2902_v8  ;;  %v2839_v14 = vpack.c.bf16 %v2583_v13, %v2583_v13 }
 0x1d8   :  { %3223 = vst.msk [vmem:[%s5605_s2 + $0x3a0] sm:$0xf] %vm2990_vm3, %v2966_v11 }
 0x1d9   :  { %3032 = vst.msk [vmem:[%s5605_s2 + $0xa4] sm:$0xf] %vm2990_vm3, %v2775_v12  ;;  %v1748_v16 = vpop.f32.mrf.mxu2  ;;  %v1908_v17 = vpop.f32.mrf.mxu3 }
 0x1da   :  { %3096 = vst.msk [vmem:[%s5605_s2 + $0x1a4] sm:$0xf] %vm2990_vm3, %v2839_v14  ;;  %vm2135_vm14 = vcmp.ge.f32.partialorder %v1748_v16, 0.0  ;;  %v2391_v21 = vmul.f32 0.2, %v1748_v16  ;;  %vm2199_vm15 = vcmp.ge.f32.partialorder %v1908_v17, 0.0  ;;  %v1431_v22 = vpop.f32.mrf.mxu0  ;;  %v1591_v23 = vpop.f32.mrf.mxu1 }
 0x1db   :  { %v2455_v24 = vmul.f32 0.2, %v1908_v17  ;;  %vm2008_vm1 = vcmp.ge.f32.partialorder %v1431_v22, 0.0  ;;  %v2264_v25 = vmul.f32 0.2, %v1431_v22  ;;  %vm2072_vm2 = vcmp.ge.f32.partialorder %v1591_v23, 0.0 }
 0x1dc   :  { %v2647_v26 = vsel %vm2135_vm14, %v1748_v16, %v2391_v21  ;;  %v2328_v27 = vmul.f32 0.2, %v1591_v23 }
 0x1dd   :  { %v2903_v28 = vpack.c.bf16 %v2647_v26, %v2647_v26  ;;  %v2711_v29 = vsel %vm2199_vm15, %v1908_v17, %v2455_v24  ;;  %v2520_v30 = vsel %vm2008_vm1, %v1431_v22, %v2264_v25  ;;  %3804 = vmatmul.msk.bf16.gmra.mxu0 %vm932_vm0, %v3932_v15  ;;  %3836 = vmatmul.msk.bf16.gmra.mxu1 %vm932_vm0, %v3964_v18  ;;  %v3966_v26 = vld [vmem:[%s5604_s0 + $0x1f8] sm:$0xff] }
 0x1de   :  { %v2967_v31 = vpack.c.bf16 %v2711_v29, %v2711_v29  ;;  %v2776_v32 = vpack.c.bf16 %v2520_v30, %v2520_v30  ;;  %v2584_v33 = vsel %vm2072_vm2, %v1591_v23, %v2328_v27  ;;  %3868 = vmatmul.msk.bf16.gmra.mxu2 %vm932_vm0, %v3996_v19  ;;  %3900 = vmatmul.msk.bf16.gmra.mxu3 %vm932_vm0, %v4028_v20  ;;  %v3934_v23 = vld [vmem:[%s5604_s0 + $0xf8] sm:$0xff] }
 0x1df   :  { %3160 = vst.msk [vmem:[%s5605_s2 + $0x2a4] sm:$0xf] %vm2990_vm3, %v2903_v28  ;;  %v2840_v34 = vpack.c.bf16 %v2584_v33, %v2584_v33  ;;  %v3998_v27 = vld [vmem:[%s5604_s0 + $0x2f8] sm:$0xff] }
 0x1e0   :  { %3224 = vst.msk [vmem:[%s5605_s2 + $0x3a4] sm:$0xf] %vm2990_vm3, %v2967_v31  ;;  %v4030_v28 = vld [vmem:[%s5604_s0 + $0x3f8] sm:$0xff] }
 0x1e1   :  { %3033 = vst.msk [vmem:[%s5605_s2 + $0xa8] sm:$0xf] %vm2990_vm3, %v2776_v32  ;;  %v1751_v35 = vpop.f32.mrf.mxu2  ;;  %v1911_v36 = vpop.f32.mrf.mxu3 }
 0x1e2   :  { %3097 = vst.msk [vmem:[%s5605_s2 + $0x1a8] sm:$0xf] %vm2990_vm3, %v2840_v34  ;;  %vm2136_vm4 = vcmp.ge.f32.partialorder %v1751_v35, 0.0  ;;  %v2392_v37 = vmul.f32 0.2, %v1751_v35  ;;  %vm2200_vm5 = vcmp.ge.f32.partialorder %v1911_v36, 0.0  ;;  %v1433_v38 = vpop.f32.mrf.mxu0  ;;  %v1593_v39 = vpop.f32.mrf.mxu1 }
 0x1e3   :  { %v2456_v40 = vmul.f32 0.2, %v1911_v36  ;;  %vm2009_vm6 = vcmp.ge.f32.partialorder %v1433_v38, 0.0  ;;  %v2265_v41 = vmul.f32 0.2, %v1433_v38  ;;  %vm2073_vm7 = vcmp.ge.f32.partialorder %v1593_v39, 0.0 }
 0x1e4   :  { %v2648_v42 = vsel %vm2136_vm4, %v1751_v35, %v2392_v37  ;;  %v2329_v43 = vmul.f32 0.2, %v1593_v39 }
 0x1e5   :  { %v2904_v44 = vpack.c.bf16 %v2648_v42, %v2648_v42  ;;  %v2712_v45 = vsel %vm2200_vm5, %v1911_v36, %v2456_v40  ;;  %v2521_v46 = vsel %vm2009_vm6, %v1433_v38, %v2265_v41 }
 0x1e6   :  { %v2968_v47 = vpack.c.bf16 %v2712_v45, %v2712_v45  ;;  %v2777_v48 = vpack.c.bf16 %v2521_v46, %v2521_v46  ;;  %v2585_v49 = vsel %vm2073_vm7, %v1593_v39, %v2329_v43 }
 0x1e7   :  { %3161 = vst.msk [vmem:[%s5605_s2 + $0x2a8] sm:$0xf] %vm2990_vm3, %v2904_v44  ;;  %v2841_v50 = vpack.c.bf16 %v2585_v49, %v2585_v49 }
 0x1e8   :  { %3225 = vst.msk [vmem:[%s5605_s2 + $0x3a8] sm:$0xf] %vm2990_vm3, %v2968_v47 }
 0x1e9   :  { %3034 = vst.msk [vmem:[%s5605_s2 + $0xac] sm:$0xf] %vm2990_vm3, %v2777_v48  ;;  %v1753_v52 = vpop.f32.mrf.mxu2  ;;  %v1913_v53 = vpop.f32.mrf.mxu3 }
 0x1ea   :  { %3098 = vst.msk [vmem:[%s5605_s2 + $0x1ac] sm:$0xf] %vm2990_vm3, %v2841_v50  ;;  %vm2137_vm8 = vcmp.ge.f32.partialorder %v1753_v52, 0.0  ;;  %v2393_v57 = vmul.f32 0.2, %v1753_v52  ;;  %vm2201_vm9 = vcmp.ge.f32.partialorder %v1913_v53, 0.0  ;;  %v1436_v58 = vpop.f32.mrf.mxu0  ;;  %v1596_v59 = vpop.f32.mrf.mxu1 }
 0x1eb   :  { %v2457_v60 = vmul.f32 0.2, %v1913_v53  ;;  %vm2010_vm10 = vcmp.ge.f32.partialorder %v1436_v58, 0.0  ;;  %v2266_v61 = vmul.f32 0.2, %v1436_v58  ;;  %vm2074_vm11 = vcmp.ge.f32.partialorder %v1596_v59, 0.0 }
 0x1ec   :  { %v2649_v62 = vsel %vm2137_vm8, %v1753_v52, %v2393_v57  ;;  %v2330_v63 = vmul.f32 0.2, %v1596_v59 }
 0x1ed   :  { %v2905_v0 = vpack.c.bf16 %v2649_v62, %v2649_v62  ;;  %v2713_v1 = vsel %vm2201_vm9, %v1913_v53, %v2457_v60  ;;  %v2522_v2 = vsel %vm2010_vm10, %v1436_v58, %v2266_v61  ;;  %3805 = vmatmul.msk.bf16.gmra.mxu0 %vm932_vm0, %v3933_v51  ;;  %3837 = vmatmul.msk.bf16.gmra.mxu1 %vm932_vm0, %v3965_v54 }
 0x1ee   :  { %v2969_v3 = vpack.c.bf16 %v2713_v1, %v2713_v1  ;;  %v2778_v4 = vpack.c.bf16 %v2522_v2, %v2522_v2  ;;  %v2586_v5 = vsel %vm2074_vm11, %v1596_v59, %v2330_v63  ;;  %3869 = vmatmul.msk.bf16.gmra.mxu2 %vm932_vm0, %v3997_v55  ;;  %3901 = vmatmul.msk.bf16.gmra.mxu3 %vm932_vm0, %v4029_v56 }
 0x1ef   :  { %3162 = vst.msk [vmem:[%s5605_s2 + $0x2ac] sm:$0xf] %vm2990_vm3, %v2905_v0  ;;  %v2842_v6 = vpack.c.bf16 %v2586_v5, %v2586_v5 }
 0x1f0   :  { %3226 = vst.msk [vmem:[%s5605_s2 + $0x3ac] sm:$0xf] %vm2990_vm3, %v2969_v3 }
 0x1f1   :  { %3035 = vst.msk [vmem:[%s5605_s2 + $0xb0] sm:$0xf] %vm2990_vm3, %v2778_v4  ;;  %v1756_v7 = vpop.f32.mrf.mxu2  ;;  %v1916_v8 = vpop.f32.mrf.mxu3 }
 0x1f2   :  { %3099 = vst.msk [vmem:[%s5605_s2 + $0x1b0] sm:$0xf] %vm2990_vm3, %v2842_v6  ;;  %vm2138_vm12 = vcmp.ge.f32.partialorder %v1756_v7, 0.0  ;;  %v2394_v9 = vmul.f32 0.2, %v1756_v7  ;;  %vm2202_vm13 = vcmp.ge.f32.partialorder %v1916_v8, 0.0  ;;  %v1438_v10 = vpop.f32.mrf.mxu0  ;;  %v1598_v11 = vpop.f32.mrf.mxu1 }
 0x1f3   :  { %v2458_v12 = vmul.f32 0.2, %v1916_v8  ;;  %vm2011_vm14 = vcmp.ge.f32.partialorder %v1438_v10, 0.0  ;;  %v2267_v13 = vmul.f32 0.2, %v1438_v10  ;;  %vm2075_vm15 = vcmp.ge.f32.partialorder %v1598_v11, 0.0 }
 0x1f4   :  { %v2650_v14 = vsel %vm2138_vm12, %v1756_v7, %v2394_v9  ;;  %v2331_v15 = vmul.f32 0.2, %v1598_v11 }
 0x1f5   :  { %v2906_v16 = vpack.c.bf16 %v2650_v14, %v2650_v14  ;;  %v2714_v17 = vsel %vm2202_vm13, %v1916_v8, %v2458_v12  ;;  %v2523_v18 = vsel %vm2011_vm14, %v1438_v10, %v2267_v13 }
 0x1f6   :  { %v2970_v19 = vpack.c.bf16 %v2714_v17, %v2714_v17  ;;  %v2779_v20 = vpack.c.bf16 %v2523_v18, %v2523_v18  ;;  %v2587_v21 = vsel %vm2075_vm15, %v1598_v11, %v2331_v15 }
 0x1f7   :  { %3163 = vst.msk [vmem:[%s5605_s2 + $0x2b0] sm:$0xf] %vm2990_vm3, %v2906_v16  ;;  %v2843_v22 = vpack.c.bf16 %v2587_v21, %v2587_v21 }
 0x1f8   :  { %3227 = vst.msk [vmem:[%s5605_s2 + $0x3b0] sm:$0xf] %vm2990_vm3, %v2970_v19 }
 0x1f9   :  { %3036 = vst.msk [vmem:[%s5605_s2 + $0xb4] sm:$0xf] %vm2990_vm3, %v2779_v20  ;;  %v1758_v24 = vpop.f32.mrf.mxu2  ;;  %v1918_v25 = vpop.f32.mrf.mxu3 }
 0x1fa   :  { %3100 = vst.msk [vmem:[%s5605_s2 + $0x1b4] sm:$0xf] %vm2990_vm3, %v2843_v22  ;;  %vm2139_vm1 = vcmp.ge.f32.partialorder %v1758_v24, 0.0  ;;  %v2395_v29 = vmul.f32 0.2, %v1758_v24  ;;  %vm2203_vm2 = vcmp.ge.f32.partialorder %v1918_v25, 0.0  ;;  %v1441_v30 = vpop.f32.mrf.mxu0  ;;  %v1601_v31 = vpop.f32.mrf.mxu1 }
 0x1fb   :  { %v2459_v32 = vmul.f32 0.2, %v1918_v25  ;;  %vm2012_vm4 = vcmp.ge.f32.partialorder %v1441_v30, 0.0  ;;  %v2268_v33 = vmul.f32 0.2, %v1441_v30  ;;  %vm2076_vm5 = vcmp.ge.f32.partialorder %v1601_v31, 0.0 }
 0x1fc   :  { %v2651_v34 = vsel %vm2139_vm1, %v1758_v24, %v2395_v29  ;;  %v2332_v35 = vmul.f32 0.2, %v1601_v31 }
 0x1fd   :  { %v2907_v36 = vpack.c.bf16 %v2651_v34, %v2651_v34  ;;  %v2715_v37 = vsel %vm2203_vm2, %v1918_v25, %v2459_v32  ;;  %v2524_v38 = vsel %vm2012_vm4, %v1441_v30, %v2268_v33  ;;  %3806 = vmatmul.msk.bf16.gmra.mxu0 %vm932_vm0, %v3934_v23  ;;  %3838 = vmatmul.msk.bf16.gmra.mxu1 %vm932_vm0, %v3966_v26 }
 0x1fe   :  { %v2971_v39 = vpack.c.bf16 %v2715_v37, %v2715_v37  ;;  %v2780_v40 = vpack.c.bf16 %v2524_v38, %v2524_v38  ;;  %v2588_v41 = vsel %vm2076_vm5, %v1601_v31, %v2332_v35  ;;  %3870 = vmatmul.msk.bf16.gmra.mxu2 %vm932_vm0, %v3998_v27  ;;  %3902 = vmatmul.msk.bf16.gmra.mxu3 %vm932_vm0, %v4030_v28 }
 0x1ff   :  { %3164 = vst.msk [vmem:[%s5605_s2 + $0x2b4] sm:$0xf] %vm2990_vm3, %v2907_v36  ;;  %v2844_v42 = vpack.c.bf16 %v2588_v41, %v2588_v41 }
 0x200   :  { %3228 = vst.msk [vmem:[%s5605_s2 + $0x3b4] sm:$0xf] %vm2990_vm3, %v2971_v39 }
 0x201   :  { %3037 = vst.msk [vmem:[%s5605_s2 + $0xb8] sm:$0xf] %vm2990_vm3, %v2780_v40  ;;  %v1761_v43 = vpop.f32.mrf.mxu2  ;;  %v1921_v44 = vpop.f32.mrf.mxu3 }
 0x202   :  { %3101 = vst.msk [vmem:[%s5605_s2 + $0x1b8] sm:$0xf] %vm2990_vm3, %v2844_v42  ;;  %vm2140_vm0 = vcmp.ge.f32.partialorder %v1761_v43, 0.0  ;;  %v2396_v45 = vmul.f32 0.2, %v1761_v43  ;;  %vm2204_vm6 = vcmp.ge.f32.partialorder %v1921_v44, 0.0  ;;  %v1443_v46 = vpop.f32.mrf.mxu0  ;;  %v1603_v47 = vpop.f32.mrf.mxu1 }
 0x203   :  { %v2460_v48 = vmul.f32 0.2, %v1921_v44  ;;  %vm2013_vm7 = vcmp.ge.f32.partialorder %v1443_v46, 0.0  ;;  %v2269_v49 = vmul.f32 0.2, %v1443_v46  ;;  %vm2077_vm8 = vcmp.ge.f32.partialorder %v1603_v47, 0.0 }
 0x204   :  { %v2652_v50 = vsel %vm2140_vm0, %v1761_v43, %v2396_v45  ;;  %v2333_v51 = vmul.f32 0.2, %v1603_v47 }
 0x205   :  { %v2908_v52 = vpack.c.bf16 %v2652_v50, %v2652_v50  ;;  %v2716_v53 = vsel %vm2204_vm6, %v1921_v44, %v2460_v48  ;;  %v2525_v54 = vsel %vm2013_vm7, %v1443_v46, %v2269_v49 }
 0x206   :  { %v2972_v55 = vpack.c.bf16 %v2716_v53, %v2716_v53  ;;  %v2781_v56 = vpack.c.bf16 %v2525_v54, %v2525_v54  ;;  %v2589_v57 = vsel %vm2077_vm8, %v1603_v47, %v2333_v51 }
 0x207   :  { %3165 = vst.msk [vmem:[%s5605_s2 + $0x2b8] sm:$0xf] %vm2990_vm3, %v2908_v52  ;;  %v2845_v58 = vpack.c.bf16 %v2589_v57, %v2589_v57 }
 0x208   :  { %3229 = vst.msk [vmem:[%s5605_s2 + $0x3b8] sm:$0xf] %vm2990_vm3, %v2972_v55 }
 0x209   :  { %3038 = vst.msk [vmem:[%s5605_s2 + $0xbc] sm:$0xf] %vm2990_vm3, %v2781_v56  ;;  %v1763_v59 = vpop.f32.mrf.mxu2  ;;  %v1923_v60 = vpop.f32.mrf.mxu3 }
 0x20a   :  { %3102 = vst.msk [vmem:[%s5605_s2 + $0x1bc] sm:$0xf] %vm2990_vm3, %v2845_v58  ;;  %vm2141_vm9 = vcmp.ge.f32.partialorder %v1763_v59, 0.0  ;;  %v2397_v61 = vmul.f32 0.2, %v1763_v59  ;;  %vm2205_vm10 = vcmp.ge.f32.partialorder %v1923_v60, 0.0  ;;  %v1446_v62 = vpop.f32.mrf.mxu0  ;;  %v1606_v63 = vpop.f32.mrf.mxu1 }
 0x20b   :  { %v2461_v0 = vmul.f32 0.2, %v1923_v60  ;;  %vm2014_vm11 = vcmp.ge.f32.partialorder %v1446_v62, 0.0  ;;  %v2270_v1 = vmul.f32 0.2, %v1446_v62  ;;  %vm2078_vm12 = vcmp.ge.f32.partialorder %v1606_v63, 0.0 }
 0x20c   :  { %v2653_v2 = vsel %vm2141_vm9, %v1763_v59, %v2397_v61  ;;  %v2334_v3 = vmul.f32 0.2, %v1606_v63 }
 0x20d   :  { %v2909_v4 = vpack.c.bf16 %v2653_v2, %v2653_v2  ;;  %v2717_v5 = vsel %vm2205_vm10, %v1923_v60, %v2461_v0  ;;  %v2526_v6 = vsel %vm2014_vm11, %v1446_v62, %v2270_v1 }
 0x20e   :  { %v2973_v7 = vpack.c.bf16 %v2717_v5, %v2717_v5  ;;  %v2782_v8 = vpack.c.bf16 %v2526_v6, %v2526_v6  ;;  %v2590_v9 = vsel %vm2078_vm12, %v1606_v63, %v2334_v3 }
 0x20f   :  { %3166 = vst.msk [vmem:[%s5605_s2 + $0x2bc] sm:$0xf] %vm2990_vm3, %v2909_v4  ;;  %v2846_v10 = vpack.c.bf16 %v2590_v9, %v2590_v9 }
 0x210   :  { %3230 = vst.msk [vmem:[%s5605_s2 + $0x3bc] sm:$0xf] %vm2990_vm3, %v2973_v7 }
 0x211   :  { %3039 = vst.msk [vmem:[%s5605_s2 + $0xc0] sm:$0xf] %vm2990_vm3, %v2782_v8  ;;  %v1766_v11 = vpop.f32.mrf.mxu2  ;;  %v1926_v12 = vpop.f32.mrf.mxu3 }
 0x212   :  { %3103 = vst.msk [vmem:[%s5605_s2 + $0x1c0] sm:$0xf] %vm2990_vm3, %v2846_v10  ;;  %vm2142_vm13 = vcmp.ge.f32.partialorder %v1766_v11, 0.0  ;;  %v2398_v13 = vmul.f32 0.2, %v1766_v11  ;;  %vm2206_vm14 = vcmp.ge.f32.partialorder %v1926_v12, 0.0  ;;  %v1448_v14 = vpop.f32.mrf.mxu0  ;;  %v1608_v15 = vpop.f32.mrf.mxu1 }
 0x213   :  { %v2462_v16 = vmul.f32 0.2, %v1926_v12  ;;  %vm2015_vm15 = vcmp.ge.f32.partialorder %v1448_v14, 0.0  ;;  %v2271_v17 = vmul.f32 0.2, %v1448_v14  ;;  %vm2079_vm1 = vcmp.ge.f32.partialorder %v1608_v15, 0.0 }
 0x214   :  { %v2654_v18 = vsel %vm2142_vm13, %v1766_v11, %v2398_v13  ;;  %v2335_v19 = vmul.f32 0.2, %v1608_v15 }
 0x215   :  { %v2910_v20 = vpack.c.bf16 %v2654_v18, %v2654_v18  ;;  %v2718_v21 = vsel %vm2206_vm14, %v1926_v12, %v2462_v16  ;;  %v2527_v22 = vsel %vm2015_vm15, %v1448_v14, %v2271_v17 }
 0x216   :  { %v2974_v23 = vpack.c.bf16 %v2718_v21, %v2718_v21  ;;  %v2783_v24 = vpack.c.bf16 %v2527_v22, %v2527_v22  ;;  %v2591_v25 = vsel %vm2079_vm1, %v1608_v15, %v2335_v19 }
 0x217   :  { %3167 = vst.msk [vmem:[%s5605_s2 + $0x2c0] sm:$0xf] %vm2990_vm3, %v2910_v20  ;;  %v2847_v26 = vpack.c.bf16 %v2591_v25, %v2591_v25 }
 0x218   :  { %3231 = vst.msk [vmem:[%s5605_s2 + $0x3c0] sm:$0xf] %vm2990_vm3, %v2974_v23 }
 0x219   :  { %3040 = vst.msk [vmem:[%s5605_s2 + $0xc4] sm:$0xf] %vm2990_vm3, %v2783_v24  ;;  %v1768_v27 = vpop.f32.mrf.mxu2  ;;  %v1928_v28 = vpop.f32.mrf.mxu3 }
 0x21a   :  { %3104 = vst.msk [vmem:[%s5605_s2 + $0x1c4] sm:$0xf] %vm2990_vm3, %v2847_v26  ;;  %vm2143_vm2 = vcmp.ge.f32.partialorder %v1768_v27, 0.0  ;;  %v2399_v29 = vmul.f32 0.2, %v1768_v27  ;;  %vm2207_vm4 = vcmp.ge.f32.partialorder %v1928_v28, 0.0  ;;  %v1451_v30 = vpop.f32.mrf.mxu0  ;;  %v1611_v31 = vpop.f32.mrf.mxu1 }
 0x21b   :  { %v2463_v32 = vmul.f32 0.2, %v1928_v28  ;;  %vm2016_vm5 = vcmp.ge.f32.partialorder %v1451_v30, 0.0  ;;  %v2272_v33 = vmul.f32 0.2, %v1451_v30  ;;  %vm2080_vm0 = vcmp.ge.f32.partialorder %v1611_v31, 0.0 }
 0x21c   :  { %v2655_v34 = vsel %vm2143_vm2, %v1768_v27, %v2399_v29  ;;  %v2336_v35 = vmul.f32 0.2, %v1611_v31 }
 0x21d   :  { %v2911_v36 = vpack.c.bf16 %v2655_v34, %v2655_v34  ;;  %v2719_v37 = vsel %vm2207_vm4, %v1928_v28, %v2463_v32  ;;  %v2528_v38 = vsel %vm2016_vm5, %v1451_v30, %v2272_v33 }
 0x21e   :  { %v2975_v39 = vpack.c.bf16 %v2719_v37, %v2719_v37  ;;  %v2784_v40 = vpack.c.bf16 %v2528_v38, %v2528_v38  ;;  %v2592_v41 = vsel %vm2080_vm0, %v1611_v31, %v2336_v35 }
 0x21f   :  { %3168 = vst.msk [vmem:[%s5605_s2 + $0x2c4] sm:$0xf] %vm2990_vm3, %v2911_v36  ;;  %v2848_v42 = vpack.c.bf16 %v2592_v41, %v2592_v41 }
 0x220   :  { %3232 = vst.msk [vmem:[%s5605_s2 + $0x3c4] sm:$0xf] %vm2990_vm3, %v2975_v39 }
 0x221   :  { %3041 = vst.msk [vmem:[%s5605_s2 + $0xc8] sm:$0xf] %vm2990_vm3, %v2784_v40  ;;  %v1771_v43 = vpop.f32.mrf.mxu2  ;;  %v1931_v44 = vpop.f32.mrf.mxu3 }
 0x222   :  { %3105 = vst.msk [vmem:[%s5605_s2 + $0x1c8] sm:$0xf] %vm2990_vm3, %v2848_v42  ;;  %vm2144_vm6 = vcmp.ge.f32.partialorder %v1771_v43, 0.0  ;;  %v2400_v45 = vmul.f32 0.2, %v1771_v43  ;;  %vm2208_vm7 = vcmp.ge.f32.partialorder %v1931_v44, 0.0  ;;  %v1453_v46 = vpop.f32.mrf.mxu0  ;;  %v1613_v47 = vpop.f32.mrf.mxu1 }
 0x223   :  { %v2464_v48 = vmul.f32 0.2, %v1931_v44  ;;  %vm2017_vm8 = vcmp.ge.f32.partialorder %v1453_v46, 0.0  ;;  %v2273_v49 = vmul.f32 0.2, %v1453_v46  ;;  %vm2081_vm9 = vcmp.ge.f32.partialorder %v1613_v47, 0.0 }
 0x224   :  { %v2656_v50 = vsel %vm2144_vm6, %v1771_v43, %v2400_v45  ;;  %v2337_v51 = vmul.f32 0.2, %v1613_v47 }
 0x225   :  { %v2912_v52 = vpack.c.bf16 %v2656_v50, %v2656_v50  ;;  %v2720_v53 = vsel %vm2208_vm7, %v1931_v44, %v2464_v48  ;;  %v2529_v54 = vsel %vm2017_vm8, %v1453_v46, %v2273_v49 }
 0x226   :  { %v2976_v55 = vpack.c.bf16 %v2720_v53, %v2720_v53  ;;  %v2785_v56 = vpack.c.bf16 %v2529_v54, %v2529_v54  ;;  %v2593_v57 = vsel %vm2081_vm9, %v1613_v47, %v2337_v51 }
 0x227   :  { %3169 = vst.msk [vmem:[%s5605_s2 + $0x2c8] sm:$0xf] %vm2990_vm3, %v2912_v52  ;;  %v2849_v58 = vpack.c.bf16 %v2593_v57, %v2593_v57 }
 0x228   :  { %3233 = vst.msk [vmem:[%s5605_s2 + $0x3c8] sm:$0xf] %vm2990_vm3, %v2976_v55 }
 0x229   :  { %3042 = vst.msk [vmem:[%s5605_s2 + $0xcc] sm:$0xf] %vm2990_vm3, %v2785_v56  ;;  %v1773_v59 = vpop.f32.mrf.mxu2  ;;  %v1933_v60 = vpop.f32.mrf.mxu3 }
 0x22a   :  { %3106 = vst.msk [vmem:[%s5605_s2 + $0x1cc] sm:$0xf] %vm2990_vm3, %v2849_v58  ;;  %vm2145_vm10 = vcmp.ge.f32.partialorder %v1773_v59, 0.0  ;;  %v2401_v61 = vmul.f32 0.2, %v1773_v59  ;;  %vm2209_vm11 = vcmp.ge.f32.partialorder %v1933_v60, 0.0  ;;  %v1456_v62 = vpop.f32.mrf.mxu0  ;;  %v1616_v63 = vpop.f32.mrf.mxu1 }
 0x22b   :  { %v2465_v0 = vmul.f32 0.2, %v1933_v60  ;;  %vm2018_vm12 = vcmp.ge.f32.partialorder %v1456_v62, 0.0  ;;  %v2274_v1 = vmul.f32 0.2, %v1456_v62  ;;  %vm2082_vm13 = vcmp.ge.f32.partialorder %v1616_v63, 0.0 }
 0x22c   :  { %v2657_v2 = vsel %vm2145_vm10, %v1773_v59, %v2401_v61  ;;  %v2338_v3 = vmul.f32 0.2, %v1616_v63 }
 0x22d   :  { %v2913_v4 = vpack.c.bf16 %v2657_v2, %v2657_v2  ;;  %v2721_v5 = vsel %vm2209_vm11, %v1933_v60, %v2465_v0  ;;  %v2530_v6 = vsel %vm2018_vm12, %v1456_v62, %v2274_v1 }
 0x22e   :  { %v2977_v7 = vpack.c.bf16 %v2721_v5, %v2721_v5  ;;  %v2786_v8 = vpack.c.bf16 %v2530_v6, %v2530_v6  ;;  %v2594_v9 = vsel %vm2082_vm13, %v1616_v63, %v2338_v3 }
 0x22f   :  { %3170 = vst.msk [vmem:[%s5605_s2 + $0x2cc] sm:$0xf] %vm2990_vm3, %v2913_v4  ;;  %v2850_v10 = vpack.c.bf16 %v2594_v9, %v2594_v9 }
 0x230   :  { %3234 = vst.msk [vmem:[%s5605_s2 + $0x3cc] sm:$0xf] %vm2990_vm3, %v2977_v7 }
 0x231   :  { %3043 = vst.msk [vmem:[%s5605_s2 + $0xd0] sm:$0xf] %vm2990_vm3, %v2786_v8  ;;  %v1776_v11 = vpop.f32.mrf.mxu2  ;;  %v1936_v12 = vpop.f32.mrf.mxu3 }
 0x232   :  { %3107 = vst.msk [vmem:[%s5605_s2 + $0x1d0] sm:$0xf] %vm2990_vm3, %v2850_v10  ;;  %vm2146_vm14 = vcmp.ge.f32.partialorder %v1776_v11, 0.0  ;;  %v2402_v13 = vmul.f32 0.2, %v1776_v11  ;;  %vm2210_vm15 = vcmp.ge.f32.partialorder %v1936_v12, 0.0  ;;  %v1458_v14 = vpop.f32.mrf.mxu0  ;;  %v1618_v15 = vpop.f32.mrf.mxu1 }
 0x233   :  { %v2466_v16 = vmul.f32 0.2, %v1936_v12  ;;  %vm2019_vm1 = vcmp.ge.f32.partialorder %v1458_v14, 0.0  ;;  %v2275_v17 = vmul.f32 0.2, %v1458_v14  ;;  %vm2083_vm2 = vcmp.ge.f32.partialorder %v1618_v15, 0.0 }
 0x234   :  { %v2658_v18 = vsel %vm2146_vm14, %v1776_v11, %v2402_v13  ;;  %v2339_v19 = vmul.f32 0.2, %v1618_v15 }
 0x235   :  { %v2914_v20 = vpack.c.bf16 %v2658_v18, %v2658_v18  ;;  %v2722_v21 = vsel %vm2210_vm15, %v1936_v12, %v2466_v16  ;;  %v2531_v22 = vsel %vm2019_vm1, %v1458_v14, %v2275_v17 }
 0x236   :  { %v2978_v23 = vpack.c.bf16 %v2722_v21, %v2722_v21  ;;  %v2787_v24 = vpack.c.bf16 %v2531_v22, %v2531_v22  ;;  %v2595_v25 = vsel %vm2083_vm2, %v1618_v15, %v2339_v19 }
 0x237   :  { %3171 = vst.msk [vmem:[%s5605_s2 + $0x2d0] sm:$0xf] %vm2990_vm3, %v2914_v20  ;;  %v2851_v26 = vpack.c.bf16 %v2595_v25, %v2595_v25 }
 0x238   :  { %3235 = vst.msk [vmem:[%s5605_s2 + $0x3d0] sm:$0xf] %vm2990_vm3, %v2978_v23 }
 0x239   :  { %3044 = vst.msk [vmem:[%s5605_s2 + $0xd4] sm:$0xf] %vm2990_vm3, %v2787_v24  ;;  %v1778_v27 = vpop.f32.mrf.mxu2  ;;  %v1938_v28 = vpop.f32.mrf.mxu3 }
 0x23a   :  { %3108 = vst.msk [vmem:[%s5605_s2 + $0x1d4] sm:$0xf] %vm2990_vm3, %v2851_v26  ;;  %vm2147_vm4 = vcmp.ge.f32.partialorder %v1778_v27, 0.0  ;;  %v2403_v29 = vmul.f32 0.2, %v1778_v27  ;;  %vm2211_vm5 = vcmp.ge.f32.partialorder %v1938_v28, 0.0  ;;  %v1461_v30 = vpop.f32.mrf.mxu0  ;;  %v1621_v31 = vpop.f32.mrf.mxu1 }
 0x23b   :  { %v2467_v32 = vmul.f32 0.2, %v1938_v28  ;;  %vm2020_vm0 = vcmp.ge.f32.partialorder %v1461_v30, 0.0  ;;  %v2276_v33 = vmul.f32 0.2, %v1461_v30  ;;  %vm2084_vm6 = vcmp.ge.f32.partialorder %v1621_v31, 0.0 }
 0x23c   :  { %v2659_v34 = vsel %vm2147_vm4, %v1778_v27, %v2403_v29  ;;  %v2340_v35 = vmul.f32 0.2, %v1621_v31 }
 0x23d   :  { %v2915_v36 = vpack.c.bf16 %v2659_v34, %v2659_v34  ;;  %v2723_v37 = vsel %vm2211_vm5, %v1938_v28, %v2467_v32  ;;  %v2532_v38 = vsel %vm2020_vm0, %v1461_v30, %v2276_v33 }
 0x23e   :  { %v2979_v39 = vpack.c.bf16 %v2723_v37, %v2723_v37  ;;  %v2788_v40 = vpack.c.bf16 %v2532_v38, %v2532_v38  ;;  %v2596_v41 = vsel %vm2084_vm6, %v1621_v31, %v2340_v35 }
 0x23f   :  { %3172 = vst.msk [vmem:[%s5605_s2 + $0x2d4] sm:$0xf] %vm2990_vm3, %v2915_v36  ;;  %v2852_v42 = vpack.c.bf16 %v2596_v41, %v2596_v41 }
 0x240   :  { %3236 = vst.msk [vmem:[%s5605_s2 + $0x3d4] sm:$0xf] %vm2990_vm3, %v2979_v39 }
 0x241   :  { %3045 = vst.msk [vmem:[%s5605_s2 + $0xd8] sm:$0xf] %vm2990_vm3, %v2788_v40  ;;  %v1781_v43 = vpop.f32.mrf.mxu2  ;;  %v1941_v44 = vpop.f32.mrf.mxu3 }
 0x242   :  { %3109 = vst.msk [vmem:[%s5605_s2 + $0x1d8] sm:$0xf] %vm2990_vm3, %v2852_v42  ;;  %vm2148_vm7 = vcmp.ge.f32.partialorder %v1781_v43, 0.0  ;;  %v2404_v45 = vmul.f32 0.2, %v1781_v43  ;;  %vm2212_vm8 = vcmp.ge.f32.partialorder %v1941_v44, 0.0  ;;  %v1463_v46 = vpop.f32.mrf.mxu0  ;;  %v1623_v47 = vpop.f32.mrf.mxu1 }
 0x243   :  { %v2468_v48 = vmul.f32 0.2, %v1941_v44  ;;  %vm2021_vm9 = vcmp.ge.f32.partialorder %v1463_v46, 0.0  ;;  %v2277_v49 = vmul.f32 0.2, %v1463_v46  ;;  %vm2085_vm10 = vcmp.ge.f32.partialorder %v1623_v47, 0.0 }
 0x244   :  { %v2660_v50 = vsel %vm2148_vm7, %v1781_v43, %v2404_v45  ;;  %v2341_v51 = vmul.f32 0.2, %v1623_v47 }
 0x245   :  { %v2916_v52 = vpack.c.bf16 %v2660_v50, %v2660_v50  ;;  %v2724_v53 = vsel %vm2212_vm8, %v1941_v44, %v2468_v48  ;;  %v2533_v54 = vsel %vm2021_vm9, %v1463_v46, %v2277_v49 }
 0x246   :  { %v2980_v55 = vpack.c.bf16 %v2724_v53, %v2724_v53  ;;  %v2789_v56 = vpack.c.bf16 %v2533_v54, %v2533_v54  ;;  %v2597_v57 = vsel %vm2085_vm10, %v1623_v47, %v2341_v51 }
 0x247   :  { %3173 = vst.msk [vmem:[%s5605_s2 + $0x2d8] sm:$0xf] %vm2990_vm3, %v2916_v52  ;;  %v2853_v58 = vpack.c.bf16 %v2597_v57, %v2597_v57 }
 0x248   :  { %3237 = vst.msk [vmem:[%s5605_s2 + $0x3d8] sm:$0xf] %vm2990_vm3, %v2980_v55 }
 0x249   :  { %3046 = vst.msk [vmem:[%s5605_s2 + $0xdc] sm:$0xf] %vm2990_vm3, %v2789_v56  ;;  %v1783_v59 = vpop.f32.mrf.mxu2  ;;  %v1943_v60 = vpop.f32.mrf.mxu3 }
 0x24a   :  { %3110 = vst.msk [vmem:[%s5605_s2 + $0x1dc] sm:$0xf] %vm2990_vm3, %v2853_v58  ;;  %vm2149_vm11 = vcmp.ge.f32.partialorder %v1783_v59, 0.0  ;;  %v2405_v61 = vmul.f32 0.2, %v1783_v59  ;;  %vm2213_vm12 = vcmp.ge.f32.partialorder %v1943_v60, 0.0  ;;  %v1466_v62 = vpop.f32.mrf.mxu0  ;;  %v1626_v63 = vpop.f32.mrf.mxu1 }
 0x24b   :  { %v2469_v0 = vmul.f32 0.2, %v1943_v60  ;;  %vm2022_vm13 = vcmp.ge.f32.partialorder %v1466_v62, 0.0  ;;  %v2278_v1 = vmul.f32 0.2, %v1466_v62  ;;  %vm2086_vm14 = vcmp.ge.f32.partialorder %v1626_v63, 0.0 }
 0x24c   :  { %v2661_v2 = vsel %vm2149_vm11, %v1783_v59, %v2405_v61  ;;  %v2342_v3 = vmul.f32 0.2, %v1626_v63 }
 0x24d   :  { %v2917_v4 = vpack.c.bf16 %v2661_v2, %v2661_v2  ;;  %v2725_v5 = vsel %vm2213_vm12, %v1943_v60, %v2469_v0  ;;  %v2534_v6 = vsel %vm2022_vm13, %v1466_v62, %v2278_v1 }
 0x24e   :  { %v2981_v7 = vpack.c.bf16 %v2725_v5, %v2725_v5  ;;  %v2790_v8 = vpack.c.bf16 %v2534_v6, %v2534_v6  ;;  %v2598_v9 = vsel %vm2086_vm14, %v1626_v63, %v2342_v3 }
 0x24f   :  { %3174 = vst.msk [vmem:[%s5605_s2 + $0x2dc] sm:$0xf] %vm2990_vm3, %v2917_v4  ;;  %v2854_v10 = vpack.c.bf16 %v2598_v9, %v2598_v9 }
 0x250   :  { %3238 = vst.msk [vmem:[%s5605_s2 + $0x3dc] sm:$0xf] %vm2990_vm3, %v2981_v7 }
 0x251   :  { %3047 = vst.msk [vmem:[%s5605_s2 + $0xe0] sm:$0xf] %vm2990_vm3, %v2790_v8  ;;  %v1786_v11 = vpop.f32.mrf.mxu2  ;;  %v1946_v12 = vpop.f32.mrf.mxu3 }
 0x252   :  { %3111 = vst.msk [vmem:[%s5605_s2 + $0x1e0] sm:$0xf] %vm2990_vm3, %v2854_v10  ;;  %vm2150_vm15 = vcmp.ge.f32.partialorder %v1786_v11, 0.0  ;;  %v2406_v13 = vmul.f32 0.2, %v1786_v11  ;;  %vm2214_vm1 = vcmp.ge.f32.partialorder %v1946_v12, 0.0  ;;  %v1468_v14 = vpop.f32.mrf.mxu0  ;;  %v1628_v15 = vpop.f32.mrf.mxu1 }
 0x253   :  { %v2470_v16 = vmul.f32 0.2, %v1946_v12  ;;  %vm2023_vm2 = vcmp.ge.f32.partialorder %v1468_v14, 0.0  ;;  %v2279_v17 = vmul.f32 0.2, %v1468_v14  ;;  %vm2087_vm4 = vcmp.ge.f32.partialorder %v1628_v15, 0.0 }
 0x254   :  { %v2662_v18 = vsel %vm2150_vm15, %v1786_v11, %v2406_v13  ;;  %v2343_v19 = vmul.f32 0.2, %v1628_v15 }
 0x255   :  { %v2918_v20 = vpack.c.bf16 %v2662_v18, %v2662_v18  ;;  %v2726_v21 = vsel %vm2214_vm1, %v1946_v12, %v2470_v16  ;;  %v2535_v22 = vsel %vm2023_vm2, %v1468_v14, %v2279_v17 }
 0x256   :  { %v2982_v23 = vpack.c.bf16 %v2726_v21, %v2726_v21  ;;  %v2791_v24 = vpack.c.bf16 %v2535_v22, %v2535_v22  ;;  %v2599_v25 = vsel %vm2087_vm4, %v1628_v15, %v2343_v19 }
 0x257   :  { %3175 = vst.msk [vmem:[%s5605_s2 + $0x2e0] sm:$0xf] %vm2990_vm3, %v2918_v20  ;;  %v2855_v26 = vpack.c.bf16 %v2599_v25, %v2599_v25 }
 0x258   :  { %3239 = vst.msk [vmem:[%s5605_s2 + $0x3e0] sm:$0xf] %vm2990_vm3, %v2982_v23 }
 0x259   :  { %3048 = vst.msk [vmem:[%s5605_s2 + $0xe4] sm:$0xf] %vm2990_vm3, %v2791_v24  ;;  %v1788_v27 = vpop.f32.mrf.mxu2  ;;  %v1948_v28 = vpop.f32.mrf.mxu3 }
 0x25a   :  { %3112 = vst.msk [vmem:[%s5605_s2 + $0x1e4] sm:$0xf] %vm2990_vm3, %v2855_v26  ;;  %vm2151_vm5 = vcmp.ge.f32.partialorder %v1788_v27, 0.0  ;;  %v2407_v29 = vmul.f32 0.2, %v1788_v27  ;;  %vm2215_vm0 = vcmp.ge.f32.partialorder %v1948_v28, 0.0  ;;  %v1471_v30 = vpop.f32.mrf.mxu0  ;;  %v1631_v31 = vpop.f32.mrf.mxu1 }
 0x25b   :  { %v2471_v32 = vmul.f32 0.2, %v1948_v28  ;;  %vm2024_vm6 = vcmp.ge.f32.partialorder %v1471_v30, 0.0  ;;  %v2280_v33 = vmul.f32 0.2, %v1471_v30  ;;  %vm2088_vm7 = vcmp.ge.f32.partialorder %v1631_v31, 0.0 }
 0x25c   :  { %v2663_v34 = vsel %vm2151_vm5, %v1788_v27, %v2407_v29  ;;  %v2344_v35 = vmul.f32 0.2, %v1631_v31 }
 0x25d   :  { %v2919_v36 = vpack.c.bf16 %v2663_v34, %v2663_v34  ;;  %v2727_v37 = vsel %vm2215_vm0, %v1948_v28, %v2471_v32  ;;  %v2536_v38 = vsel %vm2024_vm6, %v1471_v30, %v2280_v33 }
 0x25e   :  { %v2983_v39 = vpack.c.bf16 %v2727_v37, %v2727_v37  ;;  %v2792_v40 = vpack.c.bf16 %v2536_v38, %v2536_v38  ;;  %v2600_v41 = vsel %vm2088_vm7, %v1631_v31, %v2344_v35 }
 0x25f   :  { %3176 = vst.msk [vmem:[%s5605_s2 + $0x2e4] sm:$0xf] %vm2990_vm3, %v2919_v36  ;;  %v2856_v42 = vpack.c.bf16 %v2600_v41, %v2600_v41 }
 0x260   :  { %3240 = vst.msk [vmem:[%s5605_s2 + $0x3e4] sm:$0xf] %vm2990_vm3, %v2983_v39 }
 0x261   :  { %3049 = vst.msk [vmem:[%s5605_s2 + $0xe8] sm:$0xf] %vm2990_vm3, %v2792_v40  ;;  %v1791_v43 = vpop.f32.mrf.mxu2  ;;  %v1951_v44 = vpop.f32.mrf.mxu3 }
 0x262   :  { %3113 = vst.msk [vmem:[%s5605_s2 + $0x1e8] sm:$0xf] %vm2990_vm3, %v2856_v42  ;;  %vm2152_vm8 = vcmp.ge.f32.partialorder %v1791_v43, 0.0  ;;  %v2408_v45 = vmul.f32 0.2, %v1791_v43  ;;  %vm2216_vm9 = vcmp.ge.f32.partialorder %v1951_v44, 0.0  ;;  %v1473_v46 = vpop.f32.mrf.mxu0  ;;  %v1633_v47 = vpop.f32.mrf.mxu1 }
 0x263   :  { %v2472_v48 = vmul.f32 0.2, %v1951_v44  ;;  %vm2025_vm10 = vcmp.ge.f32.partialorder %v1473_v46, 0.0  ;;  %v2281_v49 = vmul.f32 0.2, %v1473_v46  ;;  %vm2089_vm11 = vcmp.ge.f32.partialorder %v1633_v47, 0.0 }
 0x264   :  { %v2664_v50 = vsel %vm2152_vm8, %v1791_v43, %v2408_v45  ;;  %v2345_v51 = vmul.f32 0.2, %v1633_v47 }
 0x265   :  { %v2920_v52 = vpack.c.bf16 %v2664_v50, %v2664_v50  ;;  %v2728_v53 = vsel %vm2216_vm9, %v1951_v44, %v2472_v48  ;;  %v2537_v54 = vsel %vm2025_vm10, %v1473_v46, %v2281_v49 }
 0x266   :  { %v2984_v55 = vpack.c.bf16 %v2728_v53, %v2728_v53  ;;  %v2793_v56 = vpack.c.bf16 %v2537_v54, %v2537_v54  ;;  %v2601_v57 = vsel %vm2089_vm11, %v1633_v47, %v2345_v51 }
 0x267   :  { %3177 = vst.msk [vmem:[%s5605_s2 + $0x2e8] sm:$0xf] %vm2990_vm3, %v2920_v52  ;;  %v2857_v58 = vpack.c.bf16 %v2601_v57, %v2601_v57 }
 0x268   :  { %3241 = vst.msk [vmem:[%s5605_s2 + $0x3e8] sm:$0xf] %vm2990_vm3, %v2984_v55 }
 0x269   :  { %3050 = vst.msk [vmem:[%s5605_s2 + $0xec] sm:$0xf] %vm2990_vm3, %v2793_v56  ;;  %v1793_v59 = vpop.f32.mrf.mxu2  ;;  %v1953_v60 = vpop.f32.mrf.mxu3 }
 0x26a   :  { %3114 = vst.msk [vmem:[%s5605_s2 + $0x1ec] sm:$0xf] %vm2990_vm3, %v2857_v58  ;;  %vm2153_vm12 = vcmp.ge.f32.partialorder %v1793_v59, 0.0  ;;  %v2409_v61 = vmul.f32 0.2, %v1793_v59  ;;  %vm2217_vm13 = vcmp.ge.f32.partialorder %v1953_v60, 0.0  ;;  %v1476_v62 = vpop.f32.mrf.mxu0  ;;  %v1636_v63 = vpop.f32.mrf.mxu1 }
 0x26b   :  { %v2473_v0 = vmul.f32 0.2, %v1953_v60  ;;  %vm2026_vm14 = vcmp.ge.f32.partialorder %v1476_v62, 0.0  ;;  %v2282_v1 = vmul.f32 0.2, %v1476_v62  ;;  %vm2090_vm15 = vcmp.ge.f32.partialorder %v1636_v63, 0.0 }
 0x26c   :  { %v2665_v2 = vsel %vm2153_vm12, %v1793_v59, %v2409_v61  ;;  %v2346_v3 = vmul.f32 0.2, %v1636_v63 }
 0x26d   :  { %v2921_v4 = vpack.c.bf16 %v2665_v2, %v2665_v2  ;;  %v2729_v5 = vsel %vm2217_vm13, %v1953_v60, %v2473_v0  ;;  %v2538_v6 = vsel %vm2026_vm14, %v1476_v62, %v2282_v1 }
 0x26e   :  { %v2985_v7 = vpack.c.bf16 %v2729_v5, %v2729_v5  ;;  %v2794_v8 = vpack.c.bf16 %v2538_v6, %v2538_v6  ;;  %v2602_v9 = vsel %vm2090_vm15, %v1636_v63, %v2346_v3 }
 0x26f   :  { %3178 = vst.msk [vmem:[%s5605_s2 + $0x2ec] sm:$0xf] %vm2990_vm3, %v2921_v4  ;;  %v2858_v10 = vpack.c.bf16 %v2602_v9, %v2602_v9 }
 0x270   :  { %3242 = vst.msk [vmem:[%s5605_s2 + $0x3ec] sm:$0xf] %vm2990_vm3, %v2985_v7 }
 0x271   :  { %3051 = vst.msk [vmem:[%s5605_s2 + $0xf0] sm:$0xf] %vm2990_vm3, %v2794_v8  ;;  %v1796_v11 = vpop.f32.mrf.mxu2  ;;  %v1956_v12 = vpop.f32.mrf.mxu3 }
 0x272   :  { %3115 = vst.msk [vmem:[%s5605_s2 + $0x1f0] sm:$0xf] %vm2990_vm3, %v2858_v10  ;;  %vm2154_vm1 = vcmp.ge.f32.partialorder %v1796_v11, 0.0  ;;  %v2410_v13 = vmul.f32 0.2, %v1796_v11  ;;  %vm2218_vm2 = vcmp.ge.f32.partialorder %v1956_v12, 0.0  ;;  %v1478_v14 = vpop.f32.mrf.mxu0  ;;  %v1638_v15 = vpop.f32.mrf.mxu1 }
 0x273   :  { %v2474_v16 = vmul.f32 0.2, %v1956_v12  ;;  %vm2027_vm4 = vcmp.ge.f32.partialorder %v1478_v14, 0.0  ;;  %v2283_v17 = vmul.f32 0.2, %v1478_v14  ;;  %vm2091_vm5 = vcmp.ge.f32.partialorder %v1638_v15, 0.0 }
 0x274   :  { %v2666_v18 = vsel %vm2154_vm1, %v1796_v11, %v2410_v13  ;;  %v2347_v19 = vmul.f32 0.2, %v1638_v15 }
 0x275   :  { %v2922_v20 = vpack.c.bf16 %v2666_v18, %v2666_v18  ;;  %v2730_v21 = vsel %vm2218_vm2, %v1956_v12, %v2474_v16  ;;  %v2539_v22 = vsel %vm2027_vm4, %v1478_v14, %v2283_v17 }
 0x276   :  { %v2986_v23 = vpack.c.bf16 %v2730_v21, %v2730_v21  ;;  %v2795_v24 = vpack.c.bf16 %v2539_v22, %v2539_v22  ;;  %v2603_v25 = vsel %vm2091_vm5, %v1638_v15, %v2347_v19 }
 0x277   :  { %3179 = vst.msk [vmem:[%s5605_s2 + $0x2f0] sm:$0xf] %vm2990_vm3, %v2922_v20  ;;  %v2859_v26 = vpack.c.bf16 %v2603_v25, %v2603_v25 }
 0x278   :  { %3243 = vst.msk [vmem:[%s5605_s2 + $0x3f0] sm:$0xf] %vm2990_vm3, %v2986_v23 }
 0x279   :  { %3052 = vst.msk [vmem:[%s5605_s2 + $0xf4] sm:$0xf] %vm2990_vm3, %v2795_v24  ;;  %v1798_v27 = vpop.f32.mrf.mxu2  ;;  %v1958_v28 = vpop.f32.mrf.mxu3 }
 0x27a   :  { %3116 = vst.msk [vmem:[%s5605_s2 + $0x1f4] sm:$0xf] %vm2990_vm3, %v2859_v26  ;;  %vm2155_vm0 = vcmp.ge.f32.partialorder %v1798_v27, 0.0  ;;  %v2411_v29 = vmul.f32 0.2, %v1798_v27  ;;  %vm2219_vm6 = vcmp.ge.f32.partialorder %v1958_v28, 0.0  ;;  %v1481_v30 = vpop.f32.mrf.mxu0  ;;  %v1641_v31 = vpop.f32.mrf.mxu1 }
 0x27b   :  { %v2475_v32 = vmul.f32 0.2, %v1958_v28  ;;  %vm2028_vm7 = vcmp.ge.f32.partialorder %v1481_v30, 0.0  ;;  %v2284_v33 = vmul.f32 0.2, %v1481_v30  ;;  %vm2092_vm8 = vcmp.ge.f32.partialorder %v1641_v31, 0.0 }
 0x27c   :  { %v2667_v34 = vsel %vm2155_vm0, %v1798_v27, %v2411_v29  ;;  %v2348_v35 = vmul.f32 0.2, %v1641_v31 }
 0x27d   :  { %v2923_v36 = vpack.c.bf16 %v2667_v34, %v2667_v34  ;;  %v2731_v37 = vsel %vm2219_vm6, %v1958_v28, %v2475_v32  ;;  %v2540_v38 = vsel %vm2028_vm7, %v1481_v30, %v2284_v33 }
 0x27e   :  { %v2987_v39 = vpack.c.bf16 %v2731_v37, %v2731_v37  ;;  %v2796_v40 = vpack.c.bf16 %v2540_v38, %v2540_v38  ;;  %v2604_v41 = vsel %vm2092_vm8, %v1641_v31, %v2348_v35 }
 0x27f   :  { %3180 = vst.msk [vmem:[%s5605_s2 + $0x2f4] sm:$0xf] %vm2990_vm3, %v2923_v36  ;;  %v2860_v42 = vpack.c.bf16 %v2604_v41, %v2604_v41 }
 0x280   :  { %3244 = vst.msk [vmem:[%s5605_s2 + $0x3f4] sm:$0xf] %vm2990_vm3, %v2987_v39 }
 0x281   :  { %3053 = vst.msk [vmem:[%s5605_s2 + $0xf8] sm:$0xf] %vm2990_vm3, %v2796_v40  ;;  %v1801_v43 = vpop.f32.mrf.mxu2  ;;  %v1961_v44 = vpop.f32.mrf.mxu3 }
 0x282   :  { %3117 = vst.msk [vmem:[%s5605_s2 + $0x1f8] sm:$0xf] %vm2990_vm3, %v2860_v42  ;;  %vm2156_vm9 = vcmp.ge.f32.partialorder %v1801_v43, 0.0  ;;  %v2412_v45 = vmul.f32 0.2, %v1801_v43  ;;  %vm2220_vm10 = vcmp.ge.f32.partialorder %v1961_v44, 0.0  ;;  %v1483_v46 = vpop.f32.mrf.mxu0  ;;  %v1643_v47 = vpop.f32.mrf.mxu1 }
 0x283   :  { %v2476_v48 = vmul.f32 0.2, %v1961_v44  ;;  %vm2029_vm11 = vcmp.ge.f32.partialorder %v1483_v46, 0.0  ;;  %v2285_v49 = vmul.f32 0.2, %v1483_v46  ;;  %vm2093_vm12 = vcmp.ge.f32.partialorder %v1643_v47, 0.0 }
 0x284   :  { %v2668_v50 = vsel %vm2156_vm9, %v1801_v43, %v2412_v45  ;;  %v2349_v51 = vmul.f32 0.2, %v1643_v47 }
 0x285   :  { %v2924_v52 = vpack.c.bf16 %v2668_v50, %v2668_v50  ;;  %v2732_v53 = vsel %vm2220_vm10, %v1961_v44, %v2476_v48  ;;  %v2541_v54 = vsel %vm2029_vm11, %v1483_v46, %v2285_v49 }
 0x286   :  { %v2988_v55 = vpack.c.bf16 %v2732_v53, %v2732_v53  ;;  %v2797_v56 = vpack.c.bf16 %v2541_v54, %v2541_v54  ;;  %v2605_v57 = vsel %vm2093_vm12, %v1643_v47, %v2349_v51 }
 0x287   :  { %3181 = vst.msk [vmem:[%s5605_s2 + $0x2f8] sm:$0xf] %vm2990_vm3, %v2924_v52  ;;  %v2861_v58 = vpack.c.bf16 %v2605_v57, %v2605_v57 }
 0x288   :  { %3245 = vst.msk [vmem:[%s5605_s2 + $0x3f8] sm:$0xf] %vm2990_vm3, %v2988_v55 }
 0x289   :  { %3054 = vst.msk [vmem:[%s5605_s2 + $0xfc] sm:$0xf] %vm2990_vm3, %v2797_v56  ;;  %v1803_v59 = vpop.f32.mrf.mxu2  ;;  %v1963_v60 = vpop.f32.mrf.mxu3 }
 0x28a   :  { %3118 = vst.msk [vmem:[%s5605_s2 + $0x1fc] sm:$0xf] %vm2990_vm3, %v2861_v58  ;;  %vm2157_vm13 = vcmp.ge.f32.partialorder %v1803_v59, 0.0  ;;  %v2413_v61 = vmul.f32 0.2, %v1803_v59  ;;  %vm2221_vm14 = vcmp.ge.f32.partialorder %v1963_v60, 0.0 }
 0x28b   :  { %v2477_v62 = vmul.f32 0.2, %v1963_v60 }
 0x28c   :  { %v2669_v63 = vsel %vm2157_vm13, %v1803_v59, %v2413_v61 }
 0x28d   :  { %v2925_v0 = vpack.c.bf16 %v2669_v63, %v2669_v63  ;;  %v2733_v1 = vsel %vm2221_vm14, %v1963_v60, %v2477_v62 }
 0x28e   :  { %v2989_v2 = vpack.c.bf16 %v2733_v1, %v2733_v1 }
 0x28f   :  { %3182 = vst.msk [vmem:[%s5605_s2 + $0x2fc] sm:$0xf] %vm2990_vm3, %v2925_v0 }
 0x290   :  { %3246 = vst.msk [vmem:[%s5605_s2 + $0x3fc] sm:$0xf] %vm2990_vm3, %v2989_v2 }

// kernel: discriminator_forward.5
= control target key start
LH: loop header
LB: loop body
LE: loop exit
PB: predicated region body
PF: predicated region fallthrough
CT: control target
= control target key end

     0   :  { %vm506_vm0 = vcmask 130048   ;;  %vm1310_vm14 = vcmask 125952   ;;  %s3527_s1 = inlined_call_operand.vmem [shape: bf16[128,16], index: 1, kind: input, shape index: {}]   ;;  %s3528_s0 = inlined_call_operand.vmem [shape: bf16[512,128], index: 0, kind: input, shape index: {}]   ;;  %s3529_s3 = inlined_call_operand.vmem [shape: f32[1,16], index: 3, kind: input, shape index: {}]   ;;  %s3530_s2 = inlined_call_operand.vmem [shape: f32[1,16], index: 2, kind: input, shape index: {}]   ;;  %s3531_s4 = inlined_call_operand.vmem [shape: bf16[512,16], index: 4, kind: output, shape index: {}]  }
   0x1   :  { %v1578_v0 = vld [vmem:[%s3527_s1 + $0x38] sm:$0xff]  ;;  %v1577_v1 = vld [vmem:[%s3527_s1 + $0x30] sm:$0xff]  ;;  %v1576_v2 = vld [vmem:[%s3527_s1 + $0x28] sm:$0xff] }
   0x2   :  { %337 = vmatpush.bf16.msra.mxu0 %v1578_v0  ;;  %1579 = vmatpush.bf16.msra.mxu1 %v1578_v0  ;;  %v1575_v3 = vld [vmem:[%s3527_s1 + $0x20] sm:$0xff]  ;;  %v1574_v4 = vld [vmem:[%s3527_s1 + $0x18] sm:$0xff]  ;;  %v1573_v5 = vld [vmem:[%s3527_s1 + $0x10] sm:$0xff] }
   0x3   :  { %1580 = vmatpush.bf16.msra.mxu2 %v1578_v0  ;;  %1581 = vmatpush.bf16.msra.mxu3 %v1578_v0  ;;  %v1572_v6 = vld [vmem:[%s3527_s1 + $0x8] sm:$0xff]  ;;  %v1571_v7 = vld [vmem:[%s3527_s1] sm:$0xff]  ;;  %v1541_v13 = vld [vmem:[%s3528_s0 + $0x10] sm:$0xff] }
   0x4   :  { %v1539_v8 = vld [vmem:[%s3528_s0] sm:$0xff]  ;;  %v1540_v10 = vld [vmem:[%s3528_s0 + $0x8] sm:$0xff]  ;;  %v1549_v14 = vld [vmem:[%s3528_s0 + $0x50] sm:$0xff] }
   0x5   :  { %v1547_v9 = vld [vmem:[%s3528_s0 + $0x40] sm:$0xff]  ;;  %v1548_v11 = vld [vmem:[%s3528_s0 + $0x48] sm:$0xff]  ;;  %v1542_v16 = vld [vmem:[%s3528_s0 + $0x18] sm:$0xff] }
   0x6   :  { %338 = vmatpush.bf16.msra.mxu0 %v1577_v1  ;;  %1582 = vmatpush.bf16.msra.mxu1 %v1577_v1  ;;  %v1555_v12 = vld [vmem:[%s3528_s0 + $0x80] sm:$0xff]  ;;  %v1556_v15 = vld [vmem:[%s3528_s0 + $0x88] sm:$0xff]  ;;  %v1550_v17 = vld [vmem:[%s3528_s0 + $0x58] sm:$0xff] }
   0x7   :  { %1583 = vmatpush.bf16.msra.mxu2 %v1577_v1  ;;  %1584 = vmatpush.bf16.msra.mxu3 %v1577_v1  ;;  %v1557_v18 = vld [vmem:[%s3528_s0 + $0x90] sm:$0xff]  ;;  %v1563_v19 = vld [vmem:[%s3528_s0 + $0xc0] sm:$0xff]  ;;  %v1558_v22 = vld [vmem:[%s3528_s0 + $0x98] sm:$0xff] }
   0x8   :  { %v1543_v20 = vld [vmem:[%s3528_s0 + $0x20] sm:$0xff]  ;;  %v1564_v23 = vld [vmem:[%s3528_s0 + $0xc8] sm:$0xff]  ;;  %v1565_v27 = vld [vmem:[%s3528_s0 + $0xd0] sm:$0xff] }
   0x9   :  { %v1551_v21 = vld [vmem:[%s3528_s0 + $0x60] sm:$0xff]  ;;  %v1544_v24 = vld [vmem:[%s3528_s0 + $0x28] sm:$0xff]  ;;  %v1545_v28 = vld [vmem:[%s3528_s0 + $0x30] sm:$0xff] }
   0xa   :  { %339 = vmatpush.bf16.msra.mxu0 %v1576_v2  ;;  %1585 = vmatpush.bf16.msra.mxu1 %v1576_v2  ;;  %v1552_v25 = vld [vmem:[%s3528_s0 + $0x68] sm:$0xff]  ;;  %v1559_v26 = vld [vmem:[%s3528_s0 + $0xa0] sm:$0xff]  ;;  %v1553_v29 = vld [vmem:[%s3528_s0 + $0x70] sm:$0xff] }
   0xb   :  { %1586 = vmatpush.bf16.msra.mxu2 %v1576_v2  ;;  %1587 = vmatpush.bf16.msra.mxu3 %v1576_v2  ;;  %v1560_v30 = vld [vmem:[%s3528_s0 + $0xa8] sm:$0xff]  ;;  %v1566_v31 = vld [vmem:[%s3528_s0 + $0xd8] sm:$0xff]  ;;  %v1561_v34 = vld [vmem:[%s3528_s0 + $0xb0] sm:$0xff] }
   0xc   :  { %v1546_v32 = vld [vmem:[%s3528_s0 + $0x38] sm:$0xff]  ;;  %v1567_v35 = vld [vmem:[%s3528_s0 + $0xe0] sm:$0xff]  ;;  %v1568_v39 = vld [vmem:[%s3528_s0 + $0xe8] sm:$0xff] }
   0xd   :  { %v1554_v33 = vld [vmem:[%s3528_s0 + $0x78] sm:$0xff]  ;;  %v1569_v44 = vld [vmem:[%s3528_s0 + $0xf0] sm:$0xff] }
   0xe   :  { %340 = vmatpush.bf16.msra.mxu0 %v1575_v3  ;;  %1588 = vmatpush.bf16.msra.mxu1 %v1575_v3  ;;  %v1562_v38 = vld [vmem:[%s3528_s0 + $0xb8] sm:$0xff] }
   0xf   :  { %1589 = vmatpush.bf16.msra.mxu2 %v1575_v3  ;;  %1590 = vmatpush.bf16.msra.mxu3 %v1575_v3  ;;  %v1570_v49 = vld [vmem:[%s3528_s0 + $0xf8] sm:$0xff] }
  0x12   :  { %341 = vmatpush.bf16.msra.mxu0 %v1574_v4  ;;  %1591 = vmatpush.bf16.msra.mxu1 %v1574_v4 }
  0x13   :  { %1592 = vmatpush.bf16.msra.mxu2 %v1574_v4  ;;  %1593 = vmatpush.bf16.msra.mxu3 %v1574_v4 }
  0x16   :  { %342 = vmatpush.bf16.msra.mxu0 %v1573_v5  ;;  %1594 = vmatpush.bf16.msra.mxu1 %v1573_v5 }
  0x17   :  { %1595 = vmatpush.bf16.msra.mxu2 %v1573_v5  ;;  %1596 = vmatpush.bf16.msra.mxu3 %v1573_v5 }
  0x1a   :  { %343 = vmatpush.bf16.msra.mxu0 %v1572_v6  ;;  %1597 = vmatpush.bf16.msra.mxu1 %v1572_v6 }
  0x1b   :  { %1598 = vmatpush.bf16.msra.mxu2 %v1572_v6  ;;  %1599 = vmatpush.bf16.msra.mxu3 %v1572_v6 }
  0x1e   :  { %344 = vmatpush.bf16.msra.mxu0 %v1571_v7  ;;  %1600 = vmatpush.bf16.msra.mxu1 %v1571_v7 }
  0x1f   :  { %1601 = vmatpush.bf16.msra.mxu2 %v1571_v7  ;;  %1602 = vmatpush.bf16.msra.mxu3 %v1571_v7 }
  0x21   :  { %345 = vmatmul.bf16.vlgmr.msra.gmra.mxu0 %v1539_v8  ;;  %385 = vmatmul.bf16.vlgmr.msra.gmra.mxu1 %v1547_v9 }
  0x22   :  { %425 = vmatmul.bf16.vlgmr.msra.gmra.mxu2 %v1555_v12  ;;  %465 = vmatmul.bf16.vlgmr.msra.gmra.mxu3 %v1563_v19 }
  0x31   :  { %350 = vmatmul.bf16.gmra.mxu0 %v1540_v10  ;;  %390 = vmatmul.bf16.gmra.mxu1 %v1548_v11 }
  0x32   :  { %430 = vmatmul.bf16.gmra.mxu2 %v1556_v15  ;;  %470 = vmatmul.bf16.gmra.mxu3 %v1564_v23 }
  0x41   :  { %355 = vmatmul.bf16.gmra.mxu0 %v1541_v13  ;;  %395 = vmatmul.bf16.gmra.mxu1 %v1549_v14 }
  0x42   :  { %435 = vmatmul.bf16.gmra.mxu2 %v1557_v18  ;;  %475 = vmatmul.bf16.gmra.mxu3 %v1565_v27 }
  0x51   :  { %360 = vmatmul.bf16.gmra.mxu0 %v1542_v16  ;;  %400 = vmatmul.bf16.gmra.mxu1 %v1550_v17 }
  0x52   :  { %440 = vmatmul.bf16.gmra.mxu2 %v1558_v22  ;;  %480 = vmatmul.bf16.gmra.mxu3 %v1566_v31 }
  0x61   :  { %365 = vmatmul.bf16.gmra.mxu0 %v1543_v20  ;;  %405 = vmatmul.bf16.gmra.mxu1 %v1551_v21 }
  0x62   :  { %445 = vmatmul.bf16.gmra.mxu2 %v1559_v26  ;;  %485 = vmatmul.bf16.gmra.mxu3 %v1567_v35 }
  0x71   :  { %370 = vmatmul.bf16.gmra.mxu0 %v1544_v24  ;;  %410 = vmatmul.bf16.gmra.mxu1 %v1552_v25 }
  0x72   :  { %450 = vmatmul.bf16.gmra.mxu2 %v1560_v30  ;;  %490 = vmatmul.bf16.gmra.mxu3 %v1568_v39 }
  0x81   :  { %375 = vmatmul.bf16.gmra.mxu0 %v1545_v28  ;;  %415 = vmatmul.bf16.gmra.mxu1 %v1553_v29 }
  0x82   :  { %455 = vmatmul.bf16.gmra.mxu2 %v1561_v34  ;;  %495 = vmatmul.bf16.gmra.mxu3 %v1569_v44 }
  0x91   :  { %380 = vmatmul.bf16.gmra.mxu0 %v1546_v32  ;;  %420 = vmatmul.bf16.gmra.mxu1 %v1554_v33 }
  0x92   :  { %460 = vmatmul.bf16.gmra.mxu2 %v1562_v38  ;;  %500 = vmatmul.bf16.gmra.mxu3 %v1570_v49 }
  0x9e   :  { %v1739_v36 = vpop.f32.mrf.mxu0  ;;  %v1741_v37 = vpop.f32.mrf.mxu1 }
  0x9f   :  { %v640_v9 = vmul.f32 %v1739_v36, %v1739_v36  ;;  %v507_v13 = vsel %vm506_vm0, %v1739_v36, 0.0 }
  0xa1   :  { %v704_v18 = vsel %vm506_vm0, %v640_v9, 0.0 }
  0xa5   :  { %v1764_v47 = vpop.f32.mrf.mxu2  ;;  %v1789_v59 = vpop.f32.mrf.mxu3 }
  0xa6   :  { %v1749_v40 = vpop.f32.mrf.mxu0  ;;  %v1751_v41 = vpop.f32.mrf.mxu1  ;;  %3601 = vst [vmem:[#allocation4_spill] sm:$0xff] %v1789_v59 }
  0xa7   :  { %v641_v7 = vmul.f32 %v1749_v40, %v1749_v40  ;;  %v508_v10 = vsel %vm506_vm0, %v1749_v40, 0.0 }
  0xa8   :  { %v509_v17 = vadd.f32 %v508_v10, %v507_v13 }
  0xa9   :  { %v705_v14 = vsel %vm506_vm0, %v641_v7, 0.0 }
  0xaa   :  { %v706_v22 = vadd.f32 %v705_v14, %v704_v18 }
  0xad   :  { %v1775_v52 = vpop.f32.mrf.mxu2  ;;  %v1799_v0 = vpop.f32.mrf.mxu3 }
  0xae   :  { %v1753_v42 = vpop.f32.mrf.mxu0  ;;  %v1755_v43 = vpop.f32.mrf.mxu1  ;;  %3603 = vst [vmem:[#allocation6_spill] sm:$0xff] %v1799_v0 }
  0xaf   :  { %v642_v11 = vmul.f32 %v1753_v42, %v1753_v42  ;;  %v510_v15 = vsel %vm506_vm0, %v1753_v42, 0.0 }
  0xb0   :  { %v511_v23 = vadd.f32 %v510_v15, %v509_v17 }
  0xb1   :  { %v707_v19 = vsel %vm506_vm0, %v642_v11, 0.0 }
  0xb2   :  { %v708_v28 = vadd.f32 %v707_v19, %v706_v22 }
  0xb5   :  { %v1781_v55 = vpop.f32.mrf.mxu2  ;;  %v1807_v4 = vpop.f32.mrf.mxu3 }
  0xb6   :  { %v1760_v45 = vpop.f32.mrf.mxu0  ;;  %v1762_v46 = vpop.f32.mrf.mxu1  ;;  %3605 = vst [vmem:[#allocation8_spill] sm:$0xff] %v1807_v4 }
  0xb7   :  { %v643_v16 = vmul.f32 %v1760_v45, %v1760_v45  ;;  %v512_v20 = vsel %vm506_vm0, %v1760_v45, 0.0 }
  0xb8   :  { %v513_v29 = vadd.f32 %v512_v20, %v511_v23 }
  0xb9   :  { %v709_v25 = vsel %vm506_vm0, %v643_v16, 0.0 }
  0xba   :  { %v710_v34 = vadd.f32 %v709_v25, %v708_v28 }
  0xbd   :  { %v1787_v58 = vpop.f32.mrf.mxu2  ;;  %v1823_v12 = vpop.f32.mrf.mxu3 }
  0xbe   :  { %v1766_v48 = vpop.f32.mrf.mxu0  ;;  %v1771_v50 = vpop.f32.mrf.mxu1  ;;  %3600 = vst [vmem:[#allocation3_spill] sm:$0xff] %v1787_v58 }
  0xbf   :  { %3607 = vst [vmem:[#allocation10_spill] sm:$0xff] %v1823_v12  ;;  %v644_v21 = vmul.f32 %v1766_v48, %v1766_v48  ;;  %v514_v26 = vsel %vm506_vm0, %v1766_v48, 0.0 }
  0xc0   :  { %v515_v35 = vadd.f32 %v514_v26, %v513_v29 }
  0xc1   :  { %v711_v31 = vsel %vm506_vm0, %v644_v21, 0.0 }
  0xc2   :  { %v712_v7 = vadd.f32 %v711_v31, %v710_v34 }
  0xc5   :  { %v1795_v62 = vpop.f32.mrf.mxu2  ;;  %v1859_v10 = vpop.f32.mrf.mxu3 }
  0xc6   :  { %v1773_v51 = vpop.f32.mrf.mxu0  ;;  %v1779_v54 = vpop.f32.mrf.mxu1  ;;  %3602 = vst [vmem:[#allocation5_spill] sm:$0xff] %v1795_v62 }
  0xc7   :  { %3599 = vst [vmem:[#allocation2_spill] sm:$0xff] %v1779_v54  ;;  %v645_v27 = vmul.f32 %v1773_v51, %v1773_v51  ;;  %v516_v32 = vsel %vm506_vm0, %v1773_v51, 0.0 }
  0xc8   :  { %v517_v9 = vadd.f32 %v516_v32, %v515_v35  ;;  %3609 = vst [vmem:[#allocation12_spill] sm:$0xff] %v1859_v10 }
  0xc9   :  { %v713_v39 = vsel %vm506_vm0, %v645_v27, 0.0 }
  0xca   :  { %v714_v15 = vadd.f32 %v713_v39, %v712_v7 }
  0xcd   :  { %v1805_v3 = vpop.f32.mrf.mxu2 }
  0xce   :  { %v1777_v53 = vpop.f32.mrf.mxu0  ;;  %v1785_v57 = vpop.f32.mrf.mxu1 }
  0xcf   :  { %v646_v33 = vmul.f32 %v1777_v53, %v1777_v53  ;;  %v518_v44 = vsel %vm506_vm0, %v1777_v53, 0.0 }
  0xd0   :  { %v519_v16 = vadd.f32 %v518_v44, %v517_v9 }
  0xd1   :  { %v715_v11 = vsel %vm506_vm0, %v646_v33, 0.0 }
  0xd2   :  { %v716_v21 = vadd.f32 %v715_v11, %v714_v15 }
  0xd5   :  { %v1815_v8 = vpop.f32.mrf.mxu2 }
  0xd6   :  { %v1783_v56 = vpop.f32.mrf.mxu0  ;;  %v1793_v61 = vpop.f32.mrf.mxu1 }
  0xd7   :  { %v647_v49 = vmul.f32 %v1783_v56, %v1783_v56  ;;  %v520_v13 = vsel %vm506_vm0, %v1783_v56, 0.0 }
  0xd8   :  { %v521_v22 = vadd.f32 %v520_v13, %v519_v16 }
  0xd9   :  { %v717_v18 = vsel %vm506_vm0, %v647_v49, 0.0 }
  0xda   :  { %v718_v27 = vadd.f32 %v717_v18, %v716_v21 }
  0xdd   :  { %v1852_v38 = vpop.f32.mrf.mxu2 }
  0xde   :  { %v1791_v60 = vpop.f32.mrf.mxu0  ;;  %v1801_v1 = vpop.f32.mrf.mxu1 }
  0xdf   :  { %3604 = vst [vmem:[#allocation7_spill] sm:$0xff] %v1801_v1  ;;  %v648_v14 = vmul.f32 %v1791_v60, %v1791_v60  ;;  %v522_v19 = vsel %vm506_vm0, %v1791_v60, 0.0 }
  0xe0   :  { %v523_v28 = vadd.f32 %v522_v19, %v521_v22 }
  0xe1   :  { %v719_v23 = vsel %vm506_vm0, %v648_v14, 0.0  ;;  %v1894_v14 = vpop.f32.mrf.mxu3 }
  0xe2   :  { %v720_v34 = vadd.f32 %v719_v23, %v718_v27  ;;  %3611 = vst [vmem:[#allocation14_spill] sm:$0xff] %v1894_v14 }
  0xe5   :  { %v1885_v39 = vpop.f32.mrf.mxu2 }
  0xe6   :  { %v1797_v63 = vpop.f32.mrf.mxu0  ;;  %v1811_v6 = vpop.f32.mrf.mxu1  ;;  %3610 = vst [vmem:[#allocation13_spill] sm:$0xff] %v1885_v39 }
  0xe7   :  { %3606 = vst [vmem:[#allocation9_spill] sm:$0xff] %v1811_v6  ;;  %v649_v20 = vmul.f32 %v1797_v63, %v1797_v63  ;;  %v524_v25 = vsel %vm506_vm0, %v1797_v63, 0.0 }
  0xe8   :  { %v525_v35 = vadd.f32 %v524_v25, %v523_v28 }
  0xe9   :  { %v721_v31 = vsel %vm506_vm0, %v649_v20, 0.0 }
  0xea   :  { %v722_v9 = vadd.f32 %v721_v31, %v720_v34 }
  0xee   :  { %v1803_v2 = vpop.f32.mrf.mxu0  ;;  %v1845_v30 = vpop.f32.mrf.mxu1 }
  0xef   :  { %3608 = vst [vmem:[#allocation11_spill] sm:$0xff] %v1845_v30  ;;  %v650_v26 = vmul.f32 %v1803_v2, %v1803_v2  ;;  %v526_v32 = vsel %vm506_vm0, %v1803_v2, 0.0 }
  0xf0   :  { %v527_v11 = vadd.f32 %v526_v32, %v525_v35 }
  0xf1   :  { %v723_v44 = vsel %vm506_vm0, %v650_v26, 0.0 }
  0xf2   :  { %v724_v19 = vadd.f32 %v723_v44, %v722_v9  ;;  %v656_v9 = vmul.f32 %v1741_v37, %v1741_v37 }
  0xf6   :  { %v1809_v5 = vpop.f32.mrf.mxu0  ;;  %v1878_v29 = vpop.f32.mrf.mxu1 }
  0xf7   :  { %v651_v33 = vmul.f32 %v1809_v5, %v1809_v5  ;;  %v528_v49 = vsel %vm506_vm0, %v1809_v5, 0.0 }
  0xf8   :  { %v529_v20 = vadd.f32 %v528_v49, %v527_v11 }
  0xf9   :  { %v725_v15 = vsel %vm506_vm0, %v651_v33, 0.0 }
  0xfa   :  { %v726_v25 = vadd.f32 %v725_v15, %v724_v19  ;;  %v1922_v19 = vpop.f32.mrf.mxu3 }
  0xfb   :  { %3613 = vst [vmem:[#allocation16_spill] sm:$0xff] %v1922_v19 }
  0xfe   :  { %v1838_v24 = vpop.f32.mrf.mxu0  ;;  %v1909_v33 = vpop.f32.mrf.mxu1 }
  0xff   :  { %v652_v7 = vmul.f32 %v1838_v24, %v1838_v24  ;;  %v530_v16 = vsel %vm506_vm0, %v1838_v24, 0.0 }
 0x100   :  { %v531_v26 = vadd.f32 %v530_v16, %v529_v20  ;;  %v538_v20 = vsel %vm506_vm0, %v1741_v37, 0.0 }
 0x101   :  { %v727_v21 = vsel %vm506_vm0, %v652_v7, 0.0  ;;  %v1914_v7 = vpop.f32.mrf.mxu2 }
 0x102   :  { %v728_v31 = vadd.f32 %v727_v21, %v726_v25  ;;  %3612 = vst [vmem:[#allocation15_spill] sm:$0xff] %v1914_v7  ;;  %v657_v21 = vmul.f32 %v1751_v41, %v1751_v41 }
 0x106   :  { %v1866_v17 = vpop.f32.mrf.mxu0 }
 0x107   :  { %v653_v18 = vmul.f32 %v1866_v17, %v1866_v17  ;;  %v532_v22 = vsel %vm506_vm0, %v1866_v17, 0.0 }
 0x108   :  { %v533_v32 = vadd.f32 %v532_v22, %v531_v26  ;;  %v735_v26 = vsel %vm506_vm0, %v656_v9, 0.0 }
 0x109   :  { %v729_v27 = vsel %vm506_vm0, %v653_v18, 0.0 }
 0x10a   :  { %v730_v35 = vadd.f32 %v729_v27, %v728_v31  ;;  %v540_v27 = vsel %vm506_vm0, %v1751_v41, 0.0 }
 0x10e   :  { %v1892_v13 = vpop.f32.mrf.mxu0 }
 0x10f   :  { %v654_v23 = vmul.f32 %v1892_v13, %v1892_v13  ;;  %v534_v28 = vsel %vm506_vm0, %v1892_v13, 0.0 }
 0x110   :  { %v535_v44 = vadd.f32 %v534_v28, %v533_v32  ;;  %v658_v28 = vmul.f32 %v1755_v43, %v1755_v43 }
 0x111   :  { %v731_v34 = vsel %vm506_vm0, %v654_v23, 0.0 }
 0x112   :  { %v732_v16 = vadd.f32 %v731_v34, %v730_v35  ;;  %v737_v34 = vsel %vm506_vm0, %v657_v21, 0.0  ;;  %v542_v35 = vsel %vm506_vm0, %v1755_v43, 0.0  ;;  %v739_v9 = vsel %vm506_vm0, %v658_v28, 0.0 }
 0x116   :  { %v1912_v49 = vpop.f32.mrf.mxu0 }
 0x117   :  { %v536_v11 = vsel %vm506_vm0, %v1912_v49, 0.0  ;;  %v655_v15 = vmul.f32 %v1912_v49, %v1912_v49 }
 0x118   :  { %v537_v18 = vadd.f32 %v536_v11, %v535_v44  ;;  %v659_v44 = vmul.f32 %v1762_v46, %v1762_v46 }
 0x119   :  { %v733_v22 = vsel %vm506_vm0, %v655_v15, 0.0 }
 0x11a   :  { %v539_v23 = vadd.f32 %v538_v20, %v537_v18  ;;  %v734_v25 = vadd.f32 %v733_v22, %v732_v16  ;;  %v1939_v16 = vpop.f32.mrf.mxu1  ;;  %v544_v18 = vsel %vm506_vm0, %v1762_v46, 0.0  ;;  %v660_v20 = vmul.f32 %v1771_v50, %v1771_v50 }
 0x11b   :  { %3614 = vst [vmem:[#allocation17_spill] sm:$0xff] %v1939_v16 }
 0x11c   :  { %v541_v31 = vadd.f32 %v540_v27, %v539_v23  ;;  %v736_v32 = vadd.f32 %v735_v26, %v734_v25  ;;  %v1946_v23 = vpop.f32.mrf.mxu2  ;;  %v741_v25 = vsel %vm506_vm0, %v659_v44, 0.0  ;;  %v546_v26 = vsel %vm506_vm0, %v1771_v50, 0.0 }
 0x11d   :  { %v661_v27 = vmul.f32 %v1779_v54, %v1779_v54 }
 0x11e   :  { %v543_v11 = vadd.f32 %v542_v35, %v541_v31  ;;  %v738_v15 = vadd.f32 %v737_v34, %v736_v32  ;;  %v1953_v32 = vpop.f32.mrf.mxu3  ;;  %v743_v34 = vsel %vm506_vm0, %v660_v20, 0.0  ;;  %v548_v35 = vsel %vm506_vm0, %v1779_v54, 0.0 }
 0x11f   :  { %3615 = vst [vmem:[#allocation18_spill] sm:$0xff] %v1953_v32  ;;  %v664_v54 = vmul.f32 %v1801_v1, %v1801_v1 }
 0x120   :  { %v545_v22 = vadd.f32 %v544_v18, %v543_v11  ;;  %v740_v21 = vadd.f32 %v739_v9, %v738_v15  ;;  %v662_v11 = vmul.f32 %v1785_v57, %v1785_v57  ;;  %v745_v9 = vsel %vm506_vm0, %v661_v27, 0.0 }
 0x121   :  { %v550_v18 = vsel %vm506_vm0, %v1785_v57, 0.0 }
 0x122   :  { %v547_v31 = vadd.f32 %v546_v26, %v545_v22  ;;  %v742_v28 = vadd.f32 %v741_v25, %v740_v21  ;;  %v663_v22 = vmul.f32 %v1793_v61, %v1793_v61  ;;  %v747_v20 = vsel %vm506_vm0, %v662_v11, 0.0 }
 0x123   :  { %v552_v26 = vsel %vm506_vm0, %v1793_v61, 0.0 }
 0x124   :  { %v549_v15 = vadd.f32 %v548_v35, %v547_v31  ;;  %v744_v44 = vadd.f32 %v743_v34, %v742_v28  ;;  %v1970_v34 = vpop.f32.mrf.mxu1  ;;  %v749_v27 = vsel %vm506_vm0, %v663_v22, 0.0  ;;  %v554_v35 = vsel %vm506_vm0, %v1801_v1, 0.0 }
 0x125   :  { %3616 = vst [vmem:[#allocation19_spill] sm:$0xff] %v1970_v34 }
 0x126   :  { %v746_v21 = vadd.f32 %v745_v9, %v744_v44  ;;  %v551_v25 = vadd.f32 %v550_v18, %v549_v15  ;;  %v665_v15 = vmul.f32 %v1811_v6, %v1811_v6  ;;  %v1977_v9 = vpop.f32.mrf.mxu2  ;;  %v751_v18 = vsel %vm506_vm0, %v664_v54, 0.0 }
 0x128   :  { %v553_v31 = vadd.f32 %v552_v26, %v551_v25  ;;  %v748_v28 = vadd.f32 %v747_v20, %v746_v21  ;;  %v556_v25 = vsel %vm506_vm0, %v1811_v6, 0.0  ;;  %v666_v21 = vmul.f32 %v1845_v30, %v1845_v30  ;;  %v1984_v26 = vpop.f32.mrf.mxu3 }
 0x129   :  { %3617 = vst [vmem:[#allocation20_spill] sm:$0xff] %v1984_v26  ;;  %v753_v1 = vsel %vm506_vm0, %v665_v15, 0.0  ;;  %v560_v6 = vsel %vm506_vm0, %v1878_v29, 0.0 }
 0x12a   :  { %v555_v44 = vadd.f32 %v554_v35, %v553_v31  ;;  %v750_v11 = vadd.f32 %v749_v27, %v748_v28  ;;  %v558_v31 = vsel %vm506_vm0, %v1845_v30, 0.0  ;;  %v667_v28 = vmul.f32 %v1878_v29, %v1878_v29 }
 0x12b   :  { %v755_v35 = vsel %vm506_vm0, %v666_v21, 0.0  ;;  %v669_v30 = vmul.f32 %v1939_v16, %v1939_v16 }
 0x12c   :  { %v557_v20 = vadd.f32 %v556_v25, %v555_v44  ;;  %v752_v22 = vadd.f32 %v751_v18, %v750_v11  ;;  %v668_v44 = vmul.f32 %v1909_v33, %v1909_v33  ;;  %v757_v15 = vsel %vm506_vm0, %v667_v28, 0.0 }
 0x12d   :  { %v562_v25 = vsel %vm506_vm0, %v1909_v33, 0.0 }
 0x12e   :  { %v559_v27 = vadd.f32 %v558_v31, %v557_v20  ;;  %v754_v54 = vadd.f32 %v753_v1, %v752_v22  ;;  %v2001_v22 = vpop.f32.mrf.mxu1  ;;  %v759_v21 = vsel %vm506_vm0, %v668_v44, 0.0  ;;  %v564_v31 = vsel %vm506_vm0, %v1939_v16, 0.0 }
 0x12f   :  { %3618 = vst [vmem:[#allocation21_spill] sm:$0xff] %v2001_v22  ;;  %v672_v16 = vmul.f32 %v1764_v47, %v1764_v47 }
 0x130   :  { %v561_v11 = vadd.f32 %v560_v6, %v559_v27  ;;  %v756_v18 = vadd.f32 %v755_v35, %v754_v54  ;;  %v670_v6 = vmul.f32 %v1970_v34, %v1970_v34  ;;  %v2008_v54 = vpop.f32.mrf.mxu2  ;;  %v761_v35 = vsel %vm506_vm0, %v669_v30, 0.0 }
 0x132   :  { %v563_v20 = vadd.f32 %v562_v25, %v561_v11  ;;  %v758_v1 = vadd.f32 %v757_v15, %v756_v18  ;;  %v566_v11 = vsel %vm506_vm0, %v1970_v34, 0.0  ;;  %v671_v18 = vmul.f32 %v2001_v22, %v2001_v22  ;;  %v2015_v25 = vpop.f32.mrf.mxu3 }
 0x133   :  { %3619 = vst [vmem:[#allocation22_spill] sm:$0xff] %v2015_v25  ;;  %v673_v34 = vmul.f32 %v1775_v52, %v1775_v52 }
 0x134   :  { %v760_v27 = vadd.f32 %v759_v21, %v758_v1  ;;  %v565_v28 = vadd.f32 %v564_v31, %v563_v20  ;;  %v763_v1 = vsel %vm506_vm0, %v670_v6, 0.0  ;;  %v568_v20 = vsel %vm506_vm0, %v2001_v22, 0.0 }
 0x135   :  { %v570_v31 = vsel %vm506_vm0, %v1764_v47, 0.0  ;;  %v572_v6 = vsel %vm506_vm0, %v1775_v52, 0.0  ;;  %v674_v22 = vmul.f32 %v1781_v55, %v1781_v55 }
 0x136   :  { %v762_v15 = vadd.f32 %v761_v35, %v760_v27  ;;  %v567_v44 = vadd.f32 %v566_v11, %v565_v28  ;;  %v765_v27 = vsel %vm506_vm0, %v671_v18, 0.0  ;;  %v767_v11 = vsel %vm506_vm0, %v672_v16, 0.0 }
 0x137   :  { %v675_v18 = vmul.f32 %v1787_v58, %v1787_v58  ;;  %v771_v16 = vsel %vm506_vm0, %v674_v22, 0.0 }
 0x138   :  { %v764_v21 = vadd.f32 %v763_v1, %v762_v15  ;;  %v569_v30 = vadd.f32 %v568_v20, %v567_v44  ;;  %v769_v1 = vsel %vm506_vm0, %v673_v34, 0.0  ;;  %v574_v20 = vsel %vm506_vm0, %v1781_v55, 0.0 }
 0x13a   :  { %v571_v28 = vadd.f32 %v570_v31, %v569_v30  ;;  %v766_v35 = vadd.f32 %v765_v27, %v764_v21  ;;  %v2037_v31 = vpop.f32.mrf.mxu2  ;;  %v576_v27 = vsel %vm506_vm0, %v1787_v58, 0.0  ;;  %v580_v58 = vsel %vm506_vm0, %v1805_v3, 0.0 }
 0x13b   :  { %3620 = vst [vmem:[#allocation23_spill] sm:$0xff] %v2037_v31 }
 0x13c   :  { %v573_v15 = vadd.f32 %v572_v6, %v571_v28  ;;  %v768_v44 = vadd.f32 %v767_v11, %v766_v35  ;;  %v676_v28 = vmul.f32 %v1795_v62, %v1795_v62  ;;  %v2044_v11 = vpop.f32.mrf.mxu3  ;;  %v773_v6 = vsel %vm506_vm0, %v675_v18, 0.0 }
 0x13d   :  { %3621 = vst [vmem:[#allocation24_spill] sm:$0xff] %v2044_v11 }
 0x13e   :  { %v575_v30 = vadd.f32 %v574_v20, %v573_v15  ;;  %v770_v21 = vadd.f32 %v769_v1, %v768_v44  ;;  %v578_v15 = vsel %vm506_vm0, %v1795_v62, 0.0  ;;  %v677_v44 = vmul.f32 %v1805_v3, %v1805_v3 }
 0x13f   :  { %v775_v20 = vsel %vm506_vm0, %v676_v28, 0.0  ;;  %v679_v62 = vmul.f32 %v1852_v38, %v1852_v38 }
 0x140   :  { %v577_v35 = vadd.f32 %v576_v27, %v575_v30  ;;  %v772_v34 = vadd.f32 %v771_v16, %v770_v21  ;;  %v678_v30 = vmul.f32 %v1815_v8, %v1815_v8  ;;  %v777_v18 = vsel %vm506_vm0, %v677_v44, 0.0 }
 0x141   :  { %v582_v27 = vsel %vm506_vm0, %v1815_v8, 0.0  ;;  %v781_v44 = vsel %vm506_vm0, %v679_v62, 0.0 }
 0x142   :  { %v579_v1 = vadd.f32 %v578_v15, %v577_v35  ;;  %v774_v22 = vadd.f32 %v773_v6, %v772_v34  ;;  %v779_v28 = vsel %vm506_vm0, %v678_v30, 0.0  ;;  %v584_v6 = vsel %vm506_vm0, %v1852_v38, 0.0 }
 0x143   :  { %v680_v15 = vmul.f32 %v1885_v39, %v1885_v39 }
 0x144   :  { %v581_v21 = vadd.f32 %v580_v58, %v579_v1  ;;  %v776_v16 = vadd.f32 %v775_v20, %v774_v22  ;;  %v2066_v22 = vpop.f32.mrf.mxu2  ;;  %v586_v20 = vsel %vm506_vm0, %v1885_v39, 0.0  ;;  %v590_v39 = vsel %vm506_vm0, %v1946_v23, 0.0 }
 0x145   :  { %3622 = vst [vmem:[#allocation25_spill] sm:$0xff] %v2066_v22 }
 0x146   :  { %v778_v35 = vadd.f32 %v777_v18, %v776_v16  ;;  %v583_v34 = vadd.f32 %v582_v27, %v581_v21  ;;  %v681_v21 = vmul.f32 %v1914_v7, %v1914_v7  ;;  %v2073_v18 = vpop.f32.mrf.mxu3  ;;  %v783_v27 = vsel %vm506_vm0, %v680_v15, 0.0 }
 0x147   :  { %3623 = vst [vmem:[#allocation26_spill] sm:$0xff] %v2073_v18 }
 0x148   :  { %v585_v58 = vadd.f32 %v584_v6, %v583_v34  ;;  %v780_v1 = vadd.f32 %v779_v28, %v778_v35  ;;  %v588_v34 = vsel %vm506_vm0, %v1914_v7, 0.0  ;;  %v682_v35 = vmul.f32 %v1946_v23, %v1946_v23 }
 0x149   :  { %v785_v6 = vsel %vm506_vm0, %v681_v21, 0.0  ;;  %v684_v7 = vmul.f32 %v2008_v54, %v2008_v54 }
 0x14a   :  { %v587_v16 = vadd.f32 %v586_v20, %v585_v58  ;;  %v782_v30 = vadd.f32 %v781_v44, %v780_v1  ;;  %v683_v58 = vmul.f32 %v1977_v9, %v1977_v9  ;;  %v787_v15 = vsel %vm506_vm0, %v682_v35, 0.0 }
 0x14b   :  { %v592_v20 = vsel %vm506_vm0, %v1977_v9, 0.0  ;;  %v791_v35 = vsel %vm506_vm0, %v684_v7, 0.0 }
 0x14c   :  { %v589_v28 = vadd.f32 %v588_v34, %v587_v16  ;;  %v784_v62 = vadd.f32 %v783_v27, %v782_v30  ;;  %v789_v21 = vsel %vm506_vm0, %v683_v58, 0.0  ;;  %v594_v27 = vsel %vm506_vm0, %v2008_v54, 0.0 }
 0x14d   :  { %v685_v34 = vmul.f32 %v2037_v31, %v2037_v31 }
 0x14e   :  { %v591_v1 = vadd.f32 %v590_v39, %v589_v28  ;;  %v786_v44 = vadd.f32 %v785_v6, %v784_v62  ;;  %v2095_v62 = vpop.f32.mrf.mxu2  ;;  %v596_v6 = vsel %vm506_vm0, %v2037_v31, 0.0 }
 0x150   :  { %v593_v16 = vadd.f32 %v592_v20, %v591_v1  ;;  %v788_v30 = vadd.f32 %v787_v15, %v786_v44  ;;  %v686_v1 = vmul.f32 %v2066_v22, %v2066_v22  ;;  %v2102_v15 = vpop.f32.mrf.mxu3  ;;  %v793_v20 = vsel %vm506_vm0, %v685_v34, 0.0 }
 0x151   :  { %3624 = vst [vmem:[#allocation27_spill] sm:$0xff] %v2102_v15  ;;  %v602_v34 = vsel %vm506_vm0, %v1789_v59, 0.0 }
 0x152   :  { %v790_v39 = vadd.f32 %v789_v21, %v788_v30  ;;  %v595_v28 = vadd.f32 %v594_v27, %v593_v16  ;;  %v598_v30 = vsel %vm506_vm0, %v2066_v22, 0.0  ;;  %v687_v16 = vmul.f32 %v2095_v62, %v2095_v62 }
 0x153   :  { %v688_v27 = vmul.f32 %v1789_v59, %v1789_v59  ;;  %v795_v31 = vsel %vm506_vm0, %v686_v1, 0.0  ;;  %v604_v1 = vsel %vm506_vm0, %v1799_v0, 0.0 }
 0x154   :  { %v792_v44 = vadd.f32 %v791_v35, %v790_v39  ;;  %v597_v58 = vadd.f32 %v596_v6, %v595_v28  ;;  %v600_v39 = vsel %vm506_vm0, %v2095_v62, 0.0  ;;  %v689_v6 = vmul.f32 %v1799_v0, %v1799_v0 }
 0x155   :  { %v797_v22 = vsel %vm506_vm0, %v687_v16, 0.0  ;;  %v691_v16 = vmul.f32 %v1823_v12, %v1823_v12 }
 0x156   :  { %v794_v21 = vadd.f32 %v793_v20, %v792_v44  ;;  %v599_v7 = vadd.f32 %v598_v30, %v597_v58  ;;  %v799_v20 = vsel %vm506_vm0, %v688_v27, 0.0  ;;  %v690_v30 = vmul.f32 %v1807_v4, %v1807_v4 }
 0x158   :  { %v796_v28 = vadd.f32 %v795_v31, %v794_v21  ;;  %v601_v35 = vadd.f32 %v600_v39, %v599_v7  ;;  %v801_v7 = vsel %vm506_vm0, %v689_v6, 0.0  ;;  %v606_v39 = vsel %vm506_vm0, %v1807_v4, 0.0 }
 0x159   :  { %v803_v27 = vsel %vm506_vm0, %v690_v30, 0.0 }
 0x15a   :  { %v603_v44 = vadd.f32 %v602_v34, %v601_v35  ;;  %v798_v58 = vadd.f32 %v797_v22, %v796_v28  ;;  %v2129_v28 = vpop.f32.mrf.mxu3  ;;  %v608_v34 = vsel %vm506_vm0, %v1823_v12, 0.0  ;;  %v694_v12 = vmul.f32 %v1922_v19, %v1922_v19 }
 0x15b   :  { %3625 = vst [vmem:[#allocation28_spill] sm:$0xff] %v2129_v28 }
 0x15c   :  { %v605_v31 = vadd.f32 %v604_v1, %v603_v44  ;;  %v800_v21 = vadd.f32 %v799_v20, %v798_v58  ;;  %v692_v44 = vmul.f32 %v1859_v10, %v1859_v10  ;;  %v805_v20 = vsel %vm506_vm0, %v691_v16, 0.0 }
 0x15d   :  { %v610_v1 = vsel %vm506_vm0, %v1859_v10, 0.0 }
 0x15e   :  { %v607_v35 = vadd.f32 %v606_v39, %v605_v31  ;;  %v802_v22 = vadd.f32 %v801_v7, %v800_v21  ;;  %v693_v31 = vmul.f32 %v1894_v14, %v1894_v14  ;;  %v807_v30 = vsel %vm506_vm0, %v692_v44, 0.0 }
 0x15f   :  { %v612_v39 = vsel %vm506_vm0, %v1894_v14, 0.0  ;;  %v811_v44 = vsel %vm506_vm0, %v694_v12, 0.0 }
 0x160   :  { %v609_v58 = vadd.f32 %v608_v34, %v607_v35  ;;  %v804_v6 = vadd.f32 %v803_v27, %v802_v22  ;;  %v809_v16 = vsel %vm506_vm0, %v693_v31, 0.0  ;;  %v614_v27 = vsel %vm506_vm0, %v1922_v19, 0.0 }
 0x161   :  { %v695_v34 = vmul.f32 %v1953_v32, %v1953_v32 }
 0x162   :  { %v611_v21 = vadd.f32 %v610_v1, %v609_v58  ;;  %v806_v7 = vadd.f32 %v805_v20, %v804_v6  ;;  %v616_v20 = vsel %vm506_vm0, %v1953_v32, 0.0  ;;  %v696_v1 = vmul.f32 %v1984_v26, %v1984_v26 }
 0x163   :  { %v813_v31 = vsel %vm506_vm0, %v695_v34, 0.0 }
 0x164   :  { %v613_v35 = vadd.f32 %v612_v39, %v611_v21  ;;  %v808_v22 = vadd.f32 %v807_v30, %v806_v7  ;;  %v2156_v30 = vpop.f32.mrf.mxu3  ;;  %v618_v39 = vsel %vm506_vm0, %v1984_v26, 0.0  ;;  %v699_v26 = vmul.f32 %v2073_v18, %v2073_v18 }
 0x165   :  { %3626 = vst [vmem:[#allocation29_spill] sm:$0xff] %v2156_v30 }
 0x166   :  { %v810_v58 = vadd.f32 %v809_v16, %v808_v22  ;;  %v615_v6 = vadd.f32 %v614_v27, %v613_v35  ;;  %v697_v35 = vmul.f32 %v2015_v25, %v2015_v25  ;;  %v815_v16 = vsel %vm506_vm0, %v696_v1, 0.0 }
 0x167   :  { %v620_v27 = vsel %vm506_vm0, %v2015_v25, 0.0 }
 0x168   :  { %v617_v21 = vadd.f32 %v616_v20, %v615_v6  ;;  %v812_v7 = vadd.f32 %v811_v44, %v810_v58  ;;  %v698_v58 = vmul.f32 %v2044_v11, %v2044_v11  ;;  %v817_v34 = vsel %vm506_vm0, %v697_v35, 0.0 }
 0x169   :  { %v622_v20 = vsel %vm506_vm0, %v2044_v11, 0.0  ;;  %v821_v35 = vsel %vm506_vm0, %v699_v26, 0.0 }
 0x16a   :  { %v619_v22 = vadd.f32 %v618_v39, %v617_v21  ;;  %v814_v12 = vadd.f32 %v813_v31, %v812_v7  ;;  %v819_v1 = vsel %vm506_vm0, %v698_v58, 0.0  ;;  %v624_v31 = vsel %vm506_vm0, %v2073_v18, 0.0 }
 0x16b   :  { %v700_v39 = vmul.f32 %v2102_v15, %v2102_v15 }
 0x16c   :  { %v621_v6 = vadd.f32 %v620_v27, %v619_v22  ;;  %v816_v44 = vadd.f32 %v815_v16, %v814_v12  ;;  %v626_v16 = vsel %vm506_vm0, %v2102_v15, 0.0  ;;  %v701_v27 = vmul.f32 %v2129_v28, %v2129_v28  ;;  %v3651_v59 = vld [vmem:[#allocation29_spill] sm:$0xff] }
 0x16d   :  { %v823_v58 = vsel %vm506_vm0, %v700_v39, 0.0 }
 0x16e   :  { %v623_v21 = vadd.f32 %v622_v20, %v621_v6  ;;  %v818_v7 = vadd.f32 %v817_v34, %v816_v44  ;;  %v503_v34 = vpop.f32.mrf.mxu3  ;;  %v628_v20 = vsel %vm506_vm0, %v2129_v28, 0.0  ;;  %v825_v26 = vsel %vm506_vm0, %v701_v27, 0.0 }
 0x16f   :  { %v703_v15 = vmul.f32 %v503_v34, %v503_v34  ;;  %v632_v39 = vsel %vm506_vm0, %v503_v34, 0.0 }
 0x170   :  { %v625_v22 = vadd.f32 %v624_v31, %v623_v21  ;;  %v820_v12 = vadd.f32 %v819_v1, %v818_v7  ;;  %v702_v21 = vmul.f32 %v2156_v30, %v2156_v30  ;;  %v630_v31 = vsel %vm506_vm0, %v2156_v30, 0.0 }
 0x171   :  { %v829_v28 = vsel %vm506_vm0, %v703_v15, 0.0 }
 0x172   :  { %v822_v6 = vadd.f32 %v821_v35, %v820_v12  ;;  %v627_v44 = vadd.f32 %v626_v16, %v625_v22  ;;  %v827_v22 = vsel %vm506_vm0, %v702_v21, 0.0 }
 0x174   :  { %v824_v7 = vadd.f32 %v823_v58, %v822_v6  ;;  %v629_v1 = vadd.f32 %v628_v20, %v627_v44 }
 0x176   :  { %v826_v18 = vadd.f32 %v825_v26, %v824_v7  ;;  %v631_v12 = vadd.f32 %v630_v31, %v629_v1 }
 0x178   :  { %v828_v35 = vadd.f32 %v827_v22, %v826_v18  ;;  %v633_v16 = vadd.f32 %v632_v39, %v631_v12 }
 0x17a   :  { %v634_v11 = vrot.slane %v633_v16, 4  ;;  %v830_v25 = vadd.f32 %v829_v28, %v828_v35 }
 0x17c   :  { %v635_v6 = vadd.f32 %v634_v11, %v633_v16  ;;  %v831_v44 = vrot.slane %v830_v25, 4 }
 0x17e   :  { %v636_v58 = vrot.slane %v635_v6, 2  ;;  %v832_v27 = vadd.f32 %v831_v44, %v830_v25 }
 0x180   :  { %v637_v20 = vadd.f32 %v636_v58, %v635_v6  ;;  %v833_v32 = vrot.slane %v832_v27, 2 }
 0x182   :  { %v638_v30 = vrot.slane %v637_v20, 1  ;;  %v834_v19 = vadd.f32 %v833_v32, %v832_v27  ;;  %v2208_v27 = vld [vmem:[%s3529_s3] ss:$0 sm:$0xff] }
 0x183   :  { %3627 = vst [vmem:[#allocation30_spill] sm:$0xff] %v2208_v27 }
 0x184   :  { %v639_v7 = vadd.f32 %v638_v30, %v637_v20  ;;  %v835_v1 = vrot.slane %v834_v19, 1 }
 0x186   :  { %v836_v26 = vadd.f32 %v835_v1, %v834_v19  ;;  %v2194_v21 = vmul.f32 0.001953125, %v639_v7  ;;  %v906_v19 = vld [vmem:[%s3530_s2] sm:$0x1]  ;;  %v3649_v7 = vld [vmem:[#allocation27_spill] sm:$0xff] }
 0x187   :  { %v3648_v1 = vld [vmem:[#allocation26_spill] sm:$0xff] }
 0x188   :  { %v838_v31 = vmul.f32 0.001953125, %v836_v26  ;;  %v839_v18 = vmul.f32 %v2194_v21, %v2194_v21  ;;  %v905_v44 = vsub.f32 %v503_v34, %v2194_v21  ;;  %v3652_v0 = vsub.f32 %v1739_v36, %v2194_v21 }
 0x189   :  { %v3654_v14 = vsub.f32 %v1753_v42, %v2194_v21  ;;  %v3655_v26 = vsub.f32 %v1760_v45, %v2194_v21 }
 0x18a   :  { %v840_v15 = vsub.f32 %v838_v31, %v839_v18  ;;  %v3645_v18 = vld [vmem:[#allocation20_spill] sm:$0xff]  ;;  %v3646_v31 = vld [vmem:[#allocation22_spill] sm:$0xff] }
 0x18c   :  { %v841_v12 = vmax.f32 %v840_v15, 0.0  ;;  %v3640_v15 = vld [vmem:[#allocation23_spill] sm:$0xff] }
 0x18e   :  { %v907_v28 = vadd.f32 1e-05, %v841_v12  ;;  %v3653_v12 = vsub.f32 %v1749_v40, %v2194_v21 }
 0x190   :  { %1604 = vrsqrt.f32 %v907_v28  ;;  %vm914_vm2 = vweird.f32 %v907_v28 }
 0x196   :  { %v1605_v11 = vpop.eup %1604 }
 0x197   :  { %v909_v22 = vmul.f32 %v1605_v11, %v907_v28  ;;  %vm915_vm1 = vweird.f32 %v1605_v11  ;;  %v3637_v28 = vld [vmem:[#allocation5_spill] sm:$0xff] }
 0x198   :  { %vm916_vm3 = vmor %vm914_vm2, %vm915_vm1 }
 0x199   :  { %v910_v25 = vmul.f32 %v1605_v11, %v909_v22  ;;  %v3641_v22 = vld [vmem:[#allocation25_spill] sm:$0xff] }
 0x19b   :  { %v911_v39 = vmul.f32 0.5, %v910_v25  ;;  %v3635_v25 = vld [vmem:[#allocation21_spill] sm:$0xff] }
 0x19d   :  { %v912_v35 = vsub.f32 1.5, %v911_v39  ;;  %v3636_v39 = vld [vmem:[#allocation3_spill] sm:$0xff] }
 0x19f   :  { %v913_v16 = vmul.f32 %v1605_v11, %v912_v35  ;;  %v3639_v35 = vld [vmem:[#allocation15_spill] sm:$0xff] }
 0x1a1   :  { %v917_v32 = vsel %vm916_vm3, %v1605_v11, %v913_v16  ;;  %v3629_v16 = vld [vmem:[#allocation2_spill] sm:$0xff]  ;;  %v3638_v11 = vld [vmem:[#allocation13_spill] sm:$0xff] }
 0x1a2   :  { %v918_v30 = vmul.f32 %v917_v32, %v906_v19  ;;  %v3633_v19 = vld [vmem:[#allocation17_spill] sm:$0xff]  ;;  %v3634_v32 = vld [vmem:[#allocation19_spill] sm:$0xff] }
 0x1a4   :  { %v2201_v6 = vperm.slane %v918_v30, 0  ;;  %v3630_v30 = vld [vmem:[#allocation7_spill] sm:$0xff] }
 0x1a6   :  { %v985_v58 = vmul.f32 %v2201_v6, %v905_v44  ;;  %v3631_v44 = vld [vmem:[#allocation9_spill] sm:$0xff]  ;;  %v2343_v4 = vmul.f32 %v2201_v6, %v3652_v0  ;;  %v2349_v10 = vmul.f32 %v2201_v6, %v3653_v12  ;;  %v2355_v34 = vmul.f32 %v2201_v6, %v3654_v14 }
 0x1a7   :  { %v2361_v36 = vmul.f32 %v2201_v6, %v3655_v26  ;;  %v3656_v0 = vsub.f32 %v1766_v48, %v2194_v21  ;;  %v3657_v12 = vsub.f32 %v1773_v51, %v2194_v21  ;;  %v3658_v14 = vsub.f32 %v1777_v53, %v2194_v21 }
 0x1a8   :  { %v2211_v20 = vadd.f32 %v2208_v27, %v985_v58  ;;  %v3632_v58 = vld [vmem:[#allocation11_spill] sm:$0xff]  ;;  %v3650_v27 = vld [vmem:[#allocation28_spill] sm:$0xff]  ;;  %v3659_v26 = vsub.f32 %v1783_v56, %v2194_v21 }
 0x1a9   :  { %v2367_v40 = vmul.f32 %v2201_v6, %v3656_v0  ;;  %v2373_v42 = vmul.f32 %v2201_v6, %v3657_v12  ;;  %v2379_v45 = vmul.f32 %v2201_v6, %v3658_v14  ;;  %v3660_v0 = vsub.f32 %v1791_v60, %v2194_v21 }
 0x1aa   :  { %3628 = vst [vmem:[#allocation31_spill] sm:$0xff] %v2211_v20  ;;  %v3647_v20 = vld [vmem:[#allocation24_spill] sm:$0xff]  ;;  %v2385_v48 = vmul.f32 %v2201_v6, %v3659_v26  ;;  %v3661_v12 = vsub.f32 %v1797_v63, %v2194_v21  ;;  %v3662_v14 = vsub.f32 %v1803_v2, %v2194_v21  ;;  %v3663_v26 = vsub.f32 %v1809_v5, %v2194_v21 }
 0x1ab   :  { %v2391_v51 = vmul.f32 %v2201_v6, %v3660_v0  ;;  %v3664_v0 = vsub.f32 %v1838_v24, %v2194_v21 }
 0x1ac   :  { %v2397_v53 = vmul.f32 %v2201_v6, %v3661_v12  ;;  %v2403_v56 = vmul.f32 %v2201_v6, %v3662_v14  ;;  %v2409_v60 = vmul.f32 %v2201_v6, %v3663_v26  ;;  %v3665_v12 = vsub.f32 %v1866_v17, %v2194_v21 }
 0x1ad   :  { %v2415_v63 = vmul.f32 %v2201_v6, %v3664_v0  ;;  %v3666_v14 = vsub.f32 %v1892_v13, %v2194_v21  ;;  %v3667_v26 = vsub.f32 %v1912_v49, %v2194_v21  ;;  %v3668_v0 = vsub.f32 %v1741_v37, %v2194_v21 }
 0x1ae   :  { %v2421_v2 = vmul.f32 %v2201_v6, %v3665_v12  ;;  %v3669_v12 = vsub.f32 %v1751_v41, %v2194_v21 }
 0x1af   :  { %v2427_v5 = vmul.f32 %v2201_v6, %v3666_v14  ;;  %v2433_v24 = vmul.f32 %v2201_v6, %v3667_v26  ;;  %v2439_v17 = vmul.f32 %v2201_v6, %v3668_v0  ;;  %v3670_v14 = vsub.f32 %v1755_v43, %v2194_v21 }
 0x1b0   :  { %v2445_v13 = vmul.f32 %v2201_v6, %v3669_v12  ;;  %v3671_v26 = vsub.f32 %v1762_v46, %v2194_v21  ;;  %v3672_v0 = vsub.f32 %v1771_v50, %v2194_v21  ;;  %v3673_v12 = vsub.f32 %v3629_v16, %v2194_v21 }
 0x1b1   :  { %v2451_v49 = vmul.f32 %v2201_v6, %v3670_v14  ;;  %v3674_v14 = vsub.f32 %v1785_v57, %v2194_v21 }
 0x1b2   :  { %v2457_v37 = vmul.f32 %v2201_v6, %v3671_v26  ;;  %v2463_v41 = vmul.f32 %v2201_v6, %v3672_v0  ;;  %v2469_v43 = vmul.f32 %v2201_v6, %v3673_v12  ;;  %v3675_v26 = vsub.f32 %v1793_v61, %v2194_v21 }
 0x1b3   :  { %v2475_v46 = vmul.f32 %v2201_v6, %v3674_v14  ;;  %v3676_v0 = vsub.f32 %v3630_v30, %v2194_v21  ;;  %v3677_v12 = vsub.f32 %v3631_v44, %v2194_v21  ;;  %v3678_v14 = vsub.f32 %v3632_v58, %v2194_v21 }
 0x1b4   :  { %v2481_v50 = vmul.f32 %v2201_v6, %v3675_v26  ;;  %v3679_v26 = vsub.f32 %v1878_v29, %v2194_v21 }
 0x1b5   :  { %v2487_v16 = vmul.f32 %v2201_v6, %v3676_v0  ;;  %v2493_v57 = vmul.f32 %v2201_v6, %v3677_v12  ;;  %v2499_v61 = vmul.f32 %v2201_v6, %v3678_v14  ;;  %v3680_v0 = vsub.f32 %v1909_v33, %v2194_v21 }
 0x1b6   :  { %v2505_v30 = vmul.f32 %v2201_v6, %v3679_v26  ;;  %v3681_v12 = vsub.f32 %v3633_v19, %v2194_v21  ;;  %v3682_v14 = vsub.f32 %v3634_v32, %v2194_v21  ;;  %v3683_v26 = vsub.f32 %v3635_v25, %v2194_v21 }
 0x1b7   :  { %v2511_v44 = vmul.f32 %v2201_v6, %v3680_v0  ;;  %v3684_v0 = vsub.f32 %v1764_v47, %v2194_v21 }
 0x1b8   :  { %v2517_v58 = vmul.f32 %v2201_v6, %v3681_v12  ;;  %v2523_v29 = vmul.f32 %v2201_v6, %v3682_v14  ;;  %v2529_v33 = vmul.f32 %v2201_v6, %v3683_v26  ;;  %v3685_v12 = vsub.f32 %v1775_v52, %v2194_v21 }
 0x1b9   :  { %v2535_v19 = vmul.f32 %v2201_v6, %v3684_v0  ;;  %v3686_v14 = vsub.f32 %v1781_v55, %v2194_v21  ;;  %v3687_v26 = vsub.f32 %v3636_v39, %v2194_v21  ;;  %v3688_v0 = vsub.f32 %v3637_v28, %v2194_v21 }
 0x1ba   :  { %v2541_v32 = vmul.f32 %v2201_v6, %v3685_v12  ;;  %v3689_v12 = vsub.f32 %v1805_v3, %v2194_v21 }
 0x1bb   :  { %v2547_v25 = vmul.f32 %v2201_v6, %v3686_v14  ;;  %v2553_v47 = vmul.f32 %v2201_v6, %v3687_v26  ;;  %v2559_v52 = vmul.f32 %v2201_v6, %v3688_v0  ;;  %v3690_v14 = vsub.f32 %v1815_v8, %v2194_v21 }
 0x1bc   :  { %v2565_v55 = vmul.f32 %v2201_v6, %v3689_v12  ;;  %v3691_v26 = vsub.f32 %v1852_v38, %v2194_v21  ;;  %v3692_v0 = vsub.f32 %v3638_v11, %v2194_v21  ;;  %v3693_v12 = vsub.f32 %v3639_v35, %v2194_v21 }
 0x1bd   :  { %v2571_v39 = vmul.f32 %v2201_v6, %v3690_v14  ;;  %v3694_v14 = vsub.f32 %v1946_v23, %v2194_v21 }
 0x1be   :  { %v2577_v28 = vmul.f32 %v2201_v6, %v3691_v26  ;;  %v2583_v3 = vmul.f32 %v2201_v6, %v3692_v0  ;;  %v2589_v8 = vmul.f32 %v2201_v6, %v3693_v12  ;;  %v3695_v26 = vsub.f32 %v1977_v9, %v2194_v21 }
 0x1bf   :  { %v2595_v38 = vmul.f32 %v2201_v6, %v3694_v14  ;;  %v3696_v0 = vsub.f32 %v2008_v54, %v2194_v21  ;;  %v3698_v12 = vsub.f32 %v3640_v15, %v2194_v21  ;;  %v3700_v14 = vsub.f32 %v3641_v22, %v2194_v21 }
 0x1c0   :  { %v2601_v11 = vmul.f32 %v2201_v6, %v3695_v26  ;;  %v3702_v26 = vsub.f32 %v2095_v62, %v2194_v21 }
 0x1c1   :  { %v2607_v35 = vmul.f32 %v2201_v6, %v3696_v0  ;;  %v2613_v23 = vmul.f32 %v2201_v6, %v3698_v12  ;;  %v2619_v9 = vmul.f32 %v2201_v6, %v3700_v14  ;;  %v3704_v0 = vld [vmem:[#allocation4_spill] sm:$0xff]  ;;  %v3707_v12 = vld [vmem:[#allocation6_spill] sm:$0xff] }
 0x1c2   :  { %v2625_v54 = vmul.f32 %v2201_v6, %v3702_v26  ;;  %v3710_v14 = vld [vmem:[#allocation8_spill] sm:$0xff]  ;;  %v3713_v26 = vld [vmem:[#allocation10_spill] sm:$0xff] }
 0x1c3   :  { %3697 = vst [vmem:[#allocation2_spill] sm:$0xff] %v2607_v35  ;;  %v3705_v35 = vsub.f32 %v3704_v0, %v2194_v21 }
 0x1c4   :  { %3699 = vst [vmem:[#allocation7_spill] sm:$0xff] %v2613_v23  ;;  %v3708_v23 = vsub.f32 %v3707_v12, %v2194_v21 }
 0x1c5   :  { %3701 = vst [vmem:[#allocation9_spill] sm:$0xff] %v2619_v9  ;;  %v2631_v15 = vmul.f32 %v2201_v6, %v3705_v35  ;;  %v3711_v9 = vsub.f32 %v3710_v14, %v2194_v21  ;;  %v3716_v35 = vld [vmem:[#allocation12_spill] sm:$0xff] }
 0x1c6   :  { %3703 = vst [vmem:[#allocation11_spill] sm:$0xff] %v2625_v54  ;;  %v2637_v22 = vmul.f32 %v2201_v6, %v3708_v23  ;;  %v3714_v54 = vsub.f32 %v3713_v26, %v2194_v21  ;;  %v3718_v23 = vld [vmem:[#allocation14_spill] sm:$0xff] }
 0x1c7   :  { %3706 = vst [vmem:[#allocation17_spill] sm:$0xff] %v2631_v15  ;;  %v2643_v62 = vmul.f32 %v2201_v6, %v3711_v9  ;;  %v3717_v15 = vsub.f32 %v3716_v35, %v2194_v21  ;;  %v3720_v9 = vld [vmem:[#allocation16_spill] sm:$0xff] }
 0x1c8   :  { %3709 = vst [vmem:[#allocation19_spill] sm:$0xff] %v2637_v22  ;;  %v2649_v0 = vmul.f32 %v2201_v6, %v3714_v54  ;;  %v3719_v22 = vsub.f32 %v3718_v23, %v2194_v21  ;;  %v3722_v54 = vld [vmem:[#allocation18_spill] sm:$0xff] }
 0x1c9   :  { %3712 = vst [vmem:[#allocation21_spill] sm:$0xff] %v2643_v62  ;;  %v2655_v12 = vmul.f32 %v2201_v6, %v3717_v15  ;;  %v3721_v62 = vsub.f32 %v3720_v9, %v2194_v21  ;;  %v3724_v15 = vsub.f32 %v3645_v18, %v2194_v21 }
 0x1ca   :  { %3715 = vst [vmem:[#allocation3_spill] sm:$0xff] %v2649_v0  ;;  %v2661_v14 = vmul.f32 %v2201_v6, %v3719_v22  ;;  %v3723_v0 = vsub.f32 %v3722_v54, %v2194_v21  ;;  %v3725_v22 = vsub.f32 %v3646_v31, %v2194_v21 }
 0x1cb   :  { %v2667_v26 = vmul.f32 %v2201_v6, %v3721_v62  ;;  %v2679_v23 = vmul.f32 %v2201_v6, %v3724_v15  ;;  %v3726_v62 = vsub.f32 %v3647_v20, %v2194_v21  ;;  %v3729_v15 = vsub.f32 %v3649_v7, %v2194_v21 }
 0x1cc   :  { %v2673_v35 = vmul.f32 %v2201_v6, %v3723_v0  ;;  %v2685_v9 = vmul.f32 %v2201_v6, %v3725_v22  ;;  %v3727_v0 = vsub.f32 %v3648_v1, %v2194_v21  ;;  %v3730_v22 = vsub.f32 %v3650_v27, %v2194_v21 }
 0x1cd   :  { %v2691_v54 = vmul.f32 %v2201_v6, %v3726_v62  ;;  %v2703_v31 = vmul.f32 %v2201_v6, %v3729_v15  ;;  %v3731_v62 = vsub.f32 %v3651_v59, %v2194_v21 }
 0x1ce   :  { %v2697_v18 = vmul.f32 %v2201_v6, %v3727_v0  ;;  %v2709_v20 = vmul.f32 %v2201_v6, %v3730_v22  ;;  %v3732_v0 = vld [vmem:[#allocation30_spill] sm:$0xff]  ;;  %v3739_v22 = vld [vmem:[#allocation9_spill] sm:$0xff] }
 0x1cf   :  { %v2715_v1 = vmul.f32 %v2201_v6, %v3731_v62  ;;  %v2723_v7 = vadd.f32 %v3732_v0, %v2349_v10  ;;  %v2727_v27 = vadd.f32 %v3732_v0, %v2355_v34  ;;  %v2731_v15 = vadd.f32 %v3732_v0, %v2361_v36  ;;  %v3740_v62 = vld [vmem:[#allocation11_spill] sm:$0xff] }
 0x1d0   :  { %3728 = vst [vmem:[#allocation5_spill] sm:$0xff] %v2697_v18  ;;  %v2719_v18 = vadd.f32 %v3732_v0, %v2343_v4  ;;  %v2735_v59 = vadd.f32 %v3732_v0, %v2367_v40  ;;  %v2739_v4 = vadd.f32 %v3732_v0, %v2373_v42  ;;  %v2743_v10 = vadd.f32 %v3732_v0, %v2379_v45 }
 0x1d1   :  { %v2747_v21 = vadd.f32 %v3732_v0, %v2385_v48  ;;  %v2751_v6 = vadd.f32 %v3732_v0, %v2391_v51  ;;  %v2755_v34 = vadd.f32 %v3732_v0, %v2397_v53  ;;  %v2759_v36 = vadd.f32 %v3732_v0, %v2403_v56 }
 0x1d2   :  { %v2763_v40 = vadd.f32 %v3732_v0, %v2409_v60  ;;  %v2767_v42 = vadd.f32 %v3732_v0, %v2415_v63  ;;  %v2771_v45 = vadd.f32 %v3732_v0, %v2421_v2  ;;  %v2775_v48 = vadd.f32 %v3732_v0, %v2427_v5 }
 0x1d3   :  { %v2779_v51 = vadd.f32 %v3732_v0, %v2433_v24  ;;  %v2783_v53 = vadd.f32 %v3732_v0, %v2439_v17  ;;  %v2787_v56 = vadd.f32 %v3732_v0, %v2445_v13  ;;  %v2791_v60 = vadd.f32 %v3732_v0, %v2451_v49 }
 0x1d4   :  { %v2795_v63 = vadd.f32 %v3732_v0, %v2457_v37  ;;  %v2799_v2 = vadd.f32 %v3732_v0, %v2463_v41  ;;  %v2803_v5 = vadd.f32 %v3732_v0, %v2469_v43  ;;  %v2807_v24 = vadd.f32 %v3732_v0, %v2475_v46 }
 0x1d5   :  { %v2811_v17 = vadd.f32 %v3732_v0, %v2481_v50  ;;  %v2815_v13 = vadd.f32 %v3732_v0, %v2487_v16  ;;  %v2819_v49 = vadd.f32 %v3732_v0, %v2493_v57  ;;  %v2823_v37 = vadd.f32 %v3732_v0, %v2499_v61 }
 0x1d6   :  { %v2827_v41 = vadd.f32 %v3732_v0, %v2505_v30  ;;  %v2831_v43 = vadd.f32 %v3732_v0, %v2511_v44  ;;  %v2835_v46 = vadd.f32 %v3732_v0, %v2517_v58  ;;  %v2839_v50 = vadd.f32 %v3732_v0, %v2523_v29 }
 0x1d7   :  { %v2843_v16 = vadd.f32 %v3732_v0, %v2529_v33  ;;  %v2847_v57 = vadd.f32 %v3732_v0, %v2535_v19  ;;  %v2851_v61 = vadd.f32 %v3732_v0, %v2541_v32  ;;  %v2855_v30 = vadd.f32 %v3732_v0, %v2547_v25 }
 0x1d8   :  { %v2859_v44 = vadd.f32 %v3732_v0, %v2553_v47  ;;  %v2863_v58 = vadd.f32 %v3732_v0, %v2559_v52  ;;  %v2867_v29 = vadd.f32 %v3732_v0, %v2565_v55  ;;  %v2871_v33 = vadd.f32 %v3732_v0, %v2571_v39  ;;  %v3735_v55 = vld [vmem:[#allocation2_spill] sm:$0xff] }
 0x1d9   :  { %v2875_v19 = vadd.f32 %v3732_v0, %v2577_v28  ;;  %v2879_v32 = vadd.f32 %v3732_v0, %v2583_v3  ;;  %v2883_v25 = vadd.f32 %v3732_v0, %v2589_v8  ;;  %v2887_v47 = vadd.f32 %v3732_v0, %v2595_v38  ;;  %v3737_v28 = vld [vmem:[#allocation7_spill] sm:$0xff] }
 0x1da   :  { %v2891_v52 = vadd.f32 %v3732_v0, %v2601_v11  ;;  %v2895_v39 = vadd.f32 %v3732_v0, %v3735_v55  ;;  %v2899_v3 = vadd.f32 %v3732_v0, %v3737_v28  ;;  %v2903_v8 = vadd.f32 %v3732_v0, %v3739_v22 }
 0x1db   :  { %3733 = vst [vmem:[#allocation13_spill] sm:$0xff] %v2887_v47  ;;  %v2907_v38 = vadd.f32 %v3732_v0, %v3740_v62  ;;  %v3741_v47 = vld [vmem:[#allocation17_spill] sm:$0xff]  ;;  %v2927_v62 = vadd.f32 %v3732_v0, %v2655_v12  ;;  %vm1054_vm4 = vcmp.ge.f32.partialorder %v2719_v18, 0.0  ;;  %v1119_v12 = vmul.f32 0.2, %v2723_v7 }
 0x1dc   :  { %3734 = vst [vmem:[#allocation15_spill] sm:$0xff] %v2891_v52  ;;  %v2911_v11 = vadd.f32 %v3732_v0, %v3741_v47  ;;  %v3742_v52 = vld [vmem:[#allocation19_spill] sm:$0xff]  ;;  %v2931_v47 = vadd.f32 %v3732_v0, %v2661_v14  ;;  %v2950_v14 = vadd.f32 %v3732_v0, %v2685_v9  ;;  %vm1055_vm5 = vcmp.ge.f32.partialorder %v2723_v7, 0.0 }
 0x1dd   :  { %3736 = vst [vmem:[#allocation23_spill] sm:$0xff] %v2895_v39  ;;  %v2915_v55 = vadd.f32 %v3732_v0, %v3742_v52  ;;  %v3744_v39 = vld [vmem:[#allocation21_spill] sm:$0xff]  ;;  %v2935_v52 = vadd.f32 %v3732_v0, %v2667_v26  ;;  %v2954_v26 = vadd.f32 %v3732_v0, %v2691_v54  ;;  %vm1056_vm6 = vcmp.ge.f32.partialorder %v2727_v27, 0.0 }
 0x1de   :  { %3738 = vst [vmem:[#allocation25_spill] sm:$0xff] %v2899_v3  ;;  %v2919_v28 = vadd.f32 %v3732_v0, %v3744_v39  ;;  %v3745_v3 = vld [vmem:[#allocation3_spill] sm:$0xff]  ;;  %v2940_v39 = vadd.f32 %v3732_v0, %v2673_v35  ;;  %v1120_v35 = vmul.f32 0.2, %v2727_v27  ;;  %v1121_v9 = vmul.f32 0.2, %v2731_v15 }
 0x1df   :  { %3743 = vst [vmem:[#allocation20_spill] sm:$0xff] %v2915_v55  ;;  %v2923_v22 = vadd.f32 %v3732_v0, %v3745_v3  ;;  %v1118_v55 = vmul.f32 0.2, %v2719_v18  ;;  %v2944_v3 = vadd.f32 %v3732_v0, %v2679_v23  ;;  %v2970_v54 = vadd.f32 %v3732_v0, %v2709_v20 }
 0x1e0   :  { %3746 = vst [vmem:[#allocation22_spill] sm:$0xff] %v2940_v39  ;;  %v3750_v39 = vld [vmem:[#allocation5_spill] sm:$0xff]  ;;  %vm1057_vm7 = vcmp.ge.f32.partialorder %v2731_v15, 0.0  ;;  %vm1058_vm8 = vcmp.ge.f32.partialorder %v2735_v59, 0.0  ;;  %vm1059_vm9 = vcmp.ge.f32.partialorder %v2739_v4, 0.0  ;;  %vm1060_vm10 = vcmp.ge.f32.partialorder %v2743_v10, 0.0 }
 0x1e1   :  { %3747 = vst [vmem:[#allocation24_spill] sm:$0xff] %v2944_v3  ;;  %v2960_v23 = vadd.f32 %v3732_v0, %v3750_v39  ;;  %v2964_v3 = vadd.f32 %v3732_v0, %v2703_v31  ;;  %v2977_v39 = vadd.f32 %v3732_v0, %v2715_v1  ;;  %v1123_v31 = vmul.f32 0.2, %v2739_v4 }
 0x1e2   :  { %3748 = vst [vmem:[#allocation26_spill] sm:$0xff] %v2950_v14  ;;  %v1182_v14 = vsel %vm1054_vm4, %v2719_v18, %v1118_v55  ;;  %v1124_v20 = vmul.f32 0.2, %v2743_v10  ;;  %vm1061_vm11 = vcmp.ge.f32.partialorder %v2747_v21, 0.0  ;;  %v1125_v18 = vmul.f32 0.2, %v2747_v21 }
 0x1e3   :  { %3749 = vst [vmem:[#allocation27_spill] sm:$0xff] %v2954_v26  ;;  %v1122_v26 = vmul.f32 0.2, %v2735_v59  ;;  %v1185_v1 = vsel %vm1057_vm7, %v2731_v15, %v1121_v9  ;;  %v1246_v0 = vpack.c.bf16 %v1182_v14, %v1182_v14  ;;  %vm1062_vm12 = vcmp.ge.f32.partialorder %v2751_v6, 0.0 }
 0x1e4   :  { %3751 = vst [vmem:[#allocation28_spill] sm:$0xff] %v2960_v23  ;;  %v1126_v55 = vmul.f32 0.2, %v2751_v6  ;;  %vm1063_vm13 = vcmp.ge.f32.partialorder %v2755_v34, 0.0  ;;  %v1128_v23 = vmul.f32 0.2, %v2759_v36  ;;  %v1188_v15 = vsel %vm1060_vm10, %v2743_v10, %v1124_v20 }
 0x1e5   :  { %3752 = vst [vmem:[#allocation29_spill] sm:$0xff] %v2964_v3  ;;  %v1183_v3 = vsel %vm1055_vm5, %v2723_v7, %v1119_v12  ;;  %v1186_v7 = vsel %vm1058_vm8, %v2735_v59, %v1122_v26  ;;  %v1249_v14 = vpack.c.bf16 %v1185_v1, %v1185_v1  ;;  %vm1064_vm15 = vcmp.ge.f32.partialorder %v2759_v36, 0.0 }
 0x1e6   :  { %3753 = vst [vmem:[#allocation4_spill] sm:$0xff] %v2970_v54  ;;  %v1184_v54 = vsel %vm1056_vm6, %v2727_v27, %v1120_v35  ;;  %v1247_v12 = vpack.c.bf16 %v1183_v3, %v1183_v3  ;;  %v1187_v27 = vsel %vm1059_vm9, %v2739_v4, %v1123_v31  ;;  %v1129_v59 = vmul.f32 0.2, %v2763_v40 }
 0x1e7   :  { %3754 = vst [vmem:[#allocation6_spill] sm:$0xff] %v2977_v39  ;;  %v1127_v39 = vmul.f32 0.2, %v2755_v34  ;;  %v1248_v35 = vpack.c.bf16 %v1184_v54, %v1184_v54  ;;  %v1189_v3 = vsel %vm1061_vm11, %v2747_v21, %v1125_v18  ;;  %v1250_v26 = vpack.c.bf16 %v1186_v7, %v1186_v7 }
 0x1e8   :  { %1311 = vst.msk [vmem:[%s3531_s4] sm:$0xf] %vm1310_vm14, %v1246_v0  ;;  %vm1065_vm0 = vcmp.ge.f32.partialorder %v2763_v40, 0.0  ;;  %v1130_v4 = vmul.f32 0.2, %v2767_v42  ;;  %v1190_v10 = vsel %vm1062_vm12, %v2751_v6, %v1126_v55  ;;  %v1251_v9 = vpack.c.bf16 %v1187_v27, %v1187_v27 }
 0x1e9   :  { %1312 = vst.msk [vmem:[%s3531_s4 + $0x4] sm:$0xf] %vm1310_vm14, %v1247_v12  ;;  %vm1066_vm1 = vcmp.ge.f32.partialorder %v2767_v42, 0.0  ;;  %v1131_v21 = vmul.f32 0.2, %v2771_v45  ;;  %v1191_v54 = vsel %vm1063_vm13, %v2755_v34, %v1127_v39  ;;  %v1252_v31 = vpack.c.bf16 %v1188_v15, %v1188_v15 }
 0x1ea   :  { %1313 = vst.msk [vmem:[%s3531_s4 + $0x8] sm:$0xf] %vm1310_vm14, %v1248_v35  ;;  %vm1067_vm2 = vcmp.ge.f32.partialorder %v2771_v45, 0.0  ;;  %v1132_v6 = vmul.f32 0.2, %v2775_v48  ;;  %v1192_v20 = vsel %vm1064_vm15, %v2759_v36, %v1128_v23  ;;  %v1253_v18 = vpack.c.bf16 %v1189_v3, %v1189_v3 }
 0x1eb   :  { %1314 = vst.msk [vmem:[%s3531_s4 + $0xc] sm:$0xf] %vm1310_vm14, %v1249_v14  ;;  %vm1068_vm3 = vcmp.ge.f32.partialorder %v2775_v48, 0.0  ;;  %v1133_v34 = vmul.f32 0.2, %v2779_v51  ;;  %v1193_v39 = vsel %vm1065_vm0, %v2763_v40, %v1129_v59  ;;  %v1254_v1 = vpack.c.bf16 %v1190_v10, %v1190_v10 }
 0x1ec   :  { %1315 = vst.msk [vmem:[%s3531_s4 + $0x10] sm:$0xf] %vm1310_vm14, %v1250_v26  ;;  %vm1069_vm4 = vcmp.ge.f32.partialorder %v2779_v51, 0.0  ;;  %v1134_v36 = vmul.f32 0.2, %v2783_v53  ;;  %v1194_v23 = vsel %vm1066_vm1, %v2767_v42, %v1130_v4  ;;  %v1255_v0 = vpack.c.bf16 %v1191_v54, %v1191_v54 }
 0x1ed   :  { %1316 = vst.msk [vmem:[%s3531_s4 + $0x14] sm:$0xf] %vm1310_vm14, %v1251_v9  ;;  %vm1070_vm5 = vcmp.ge.f32.partialorder %v2783_v53, 0.0  ;;  %v1135_v40 = vmul.f32 0.2, %v2787_v56  ;;  %v1195_v55 = vsel %vm1067_vm2, %v2771_v45, %v1131_v21  ;;  %v1256_v7 = vpack.c.bf16 %v1192_v20, %v1192_v20 }
 0x1ee   :  { %1317 = vst.msk [vmem:[%s3531_s4 + $0x18] sm:$0xf] %vm1310_vm14, %v1252_v31  ;;  %vm1071_vm6 = vcmp.ge.f32.partialorder %v2787_v56, 0.0  ;;  %v1136_v42 = vmul.f32 0.2, %v2791_v60  ;;  %v1196_v12 = vsel %vm1068_vm3, %v2775_v48, %v1132_v6  ;;  %v1257_v27 = vpack.c.bf16 %v1193_v39, %v1193_v39 }
 0x1ef   :  { %1318 = vst.msk [vmem:[%s3531_s4 + $0x1c] sm:$0xf] %vm1310_vm14, %v1253_v18  ;;  %vm1072_vm7 = vcmp.ge.f32.partialorder %v2791_v60, 0.0  ;;  %v1137_v45 = vmul.f32 0.2, %v2795_v63  ;;  %v1197_v35 = vsel %vm1069_vm4, %v2779_v51, %v1133_v34  ;;  %v1258_v15 = vpack.c.bf16 %v1194_v23, %v1194_v23 }
 0x1f0   :  { %1319 = vst.msk [vmem:[%s3531_s4 + $0x20] sm:$0xf] %vm1310_vm14, %v1254_v1  ;;  %vm1073_vm8 = vcmp.ge.f32.partialorder %v2795_v63, 0.0  ;;  %v1138_v48 = vmul.f32 0.2, %v2799_v2  ;;  %v1198_v14 = vsel %vm1070_vm5, %v2783_v53, %v1134_v36  ;;  %v1259_v59 = vpack.c.bf16 %v1195_v55, %v1195_v55 }
 0x1f1   :  { %1320 = vst.msk [vmem:[%s3531_s4 + $0x24] sm:$0xf] %vm1310_vm14, %v1255_v0  ;;  %vm1074_vm9 = vcmp.ge.f32.partialorder %v2799_v2, 0.0  ;;  %v1139_v51 = vmul.f32 0.2, %v2803_v5  ;;  %v1199_v3 = vsel %vm1071_vm6, %v2787_v56, %v1135_v40  ;;  %v1260_v26 = vpack.c.bf16 %v1196_v12, %v1196_v12 }
 0x1f2   :  { %1321 = vst.msk [vmem:[%s3531_s4 + $0x28] sm:$0xf] %vm1310_vm14, %v1256_v7  ;;  %vm1075_vm10 = vcmp.ge.f32.partialorder %v2803_v5, 0.0  ;;  %v1140_v53 = vmul.f32 0.2, %v2807_v24  ;;  %v1200_v4 = vsel %vm1072_vm7, %v2791_v60, %v1136_v42  ;;  %v1261_v10 = vpack.c.bf16 %v1197_v35, %v1197_v35 }
 0x1f3   :  { %1322 = vst.msk [vmem:[%s3531_s4 + $0x2c] sm:$0xf] %vm1310_vm14, %v1257_v27  ;;  %vm1076_vm11 = vcmp.ge.f32.partialorder %v2807_v24, 0.0  ;;  %v1141_v56 = vmul.f32 0.2, %v2811_v17  ;;  %v1201_v9 = vsel %vm1073_vm8, %v2795_v63, %v1137_v45  ;;  %v1262_v21 = vpack.c.bf16 %v1198_v14, %v1198_v14 }
 0x1f4   :  { %1323 = vst.msk [vmem:[%s3531_s4 + $0x30] sm:$0xf] %vm1310_vm14, %v1258_v15  ;;  %vm1077_vm12 = vcmp.ge.f32.partialorder %v2811_v17, 0.0  ;;  %v1142_v60 = vmul.f32 0.2, %v2815_v13  ;;  %v1202_v54 = vsel %vm1074_vm9, %v2799_v2, %v1138_v48  ;;  %v1263_v31 = vpack.c.bf16 %v1199_v3, %v1199_v3 }
 0x1f5   :  { %1324 = vst.msk [vmem:[%s3531_s4 + $0x34] sm:$0xf] %vm1310_vm14, %v1259_v59  ;;  %vm1078_vm13 = vcmp.ge.f32.partialorder %v2815_v13, 0.0  ;;  %v1143_v63 = vmul.f32 0.2, %v2819_v49  ;;  %v1203_v6 = vsel %vm1075_vm10, %v2803_v5, %v1139_v51  ;;  %v1264_v20 = vpack.c.bf16 %v1200_v4, %v1200_v4 }
 0x1f6   :  { %1325 = vst.msk [vmem:[%s3531_s4 + $0x38] sm:$0xf] %vm1310_vm14, %v1260_v26  ;;  %vm1079_vm15 = vcmp.ge.f32.partialorder %v2819_v49, 0.0  ;;  %v1144_v2 = vmul.f32 0.2, %v2823_v37  ;;  %v1204_v18 = vsel %vm1076_vm11, %v2807_v24, %v1140_v53  ;;  %v1265_v34 = vpack.c.bf16 %v1201_v9, %v1201_v9 }
 0x1f7   :  { %1326 = vst.msk [vmem:[%s3531_s4 + $0x3c] sm:$0xf] %vm1310_vm14, %v1261_v10  ;;  %vm1080_vm0 = vcmp.ge.f32.partialorder %v2823_v37, 0.0  ;;  %v1145_v5 = vmul.f32 0.2, %v2827_v41  ;;  %v1205_v39 = vsel %vm1077_vm12, %v2811_v17, %v1141_v56  ;;  %v1266_v1 = vpack.c.bf16 %v1202_v54, %v1202_v54 }
 0x1f8   :  { %1327 = vst.msk [vmem:[%s3531_s4 + $0x40] sm:$0xf] %vm1310_vm14, %v1262_v21  ;;  %vm1081_vm1 = vcmp.ge.f32.partialorder %v2827_v41, 0.0  ;;  %v1146_v24 = vmul.f32 0.2, %v2831_v43  ;;  %v1206_v36 = vsel %vm1078_vm13, %v2815_v13, %v1142_v60  ;;  %v1267_v23 = vpack.c.bf16 %v1203_v6, %v1203_v6 }
 0x1f9   :  { %1328 = vst.msk [vmem:[%s3531_s4 + $0x44] sm:$0xf] %vm1310_vm14, %v1263_v31  ;;  %vm1082_vm2 = vcmp.ge.f32.partialorder %v2831_v43, 0.0  ;;  %v1147_v17 = vmul.f32 0.2, %v2835_v46  ;;  %v1207_v0 = vsel %vm1079_vm15, %v2819_v49, %v1143_v63  ;;  %v1268_v40 = vpack.c.bf16 %v1204_v18, %v1204_v18 }
 0x1fa   :  { %1329 = vst.msk [vmem:[%s3531_s4 + $0x48] sm:$0xf] %vm1310_vm14, %v1264_v20  ;;  %vm1083_vm3 = vcmp.ge.f32.partialorder %v2835_v46, 0.0  ;;  %v1148_v13 = vmul.f32 0.2, %v2839_v50  ;;  %v1208_v55 = vsel %vm1080_vm0, %v2823_v37, %v1144_v2  ;;  %v1269_v7 = vpack.c.bf16 %v1205_v39, %v1205_v39 }
 0x1fb   :  { %1330 = vst.msk [vmem:[%s3531_s4 + $0x4c] sm:$0xf] %vm1310_vm14, %v1265_v34  ;;  %vm1084_vm4 = vcmp.ge.f32.partialorder %v2839_v50, 0.0  ;;  %v1149_v49 = vmul.f32 0.2, %v2843_v16  ;;  %v1209_v42 = vsel %vm1081_vm1, %v2827_v41, %v1145_v5  ;;  %v1270_v12 = vpack.c.bf16 %v1206_v36, %v1206_v36 }
 0x1fc   :  { %1331 = vst.msk [vmem:[%s3531_s4 + $0x50] sm:$0xf] %vm1310_vm14, %v1266_v1  ;;  %vm1085_vm5 = vcmp.ge.f32.partialorder %v2843_v16, 0.0  ;;  %v1150_v37 = vmul.f32 0.2, %v2847_v57  ;;  %v1210_v27 = vsel %vm1082_vm2, %v2831_v43, %v1146_v24  ;;  %v1271_v45 = vpack.c.bf16 %v1207_v0, %v1207_v0 }
 0x1fd   :  { %1332 = vst.msk [vmem:[%s3531_s4 + $0x54] sm:$0xf] %vm1310_vm14, %v1267_v23  ;;  %vm1086_vm6 = vcmp.ge.f32.partialorder %v2847_v57, 0.0  ;;  %v1151_v41 = vmul.f32 0.2, %v2851_v61  ;;  %v1211_v35 = vsel %vm1083_vm3, %v2835_v46, %v1147_v17  ;;  %v1272_v15 = vpack.c.bf16 %v1208_v55, %v1208_v55 }
 0x1fe   :  { %1333 = vst.msk [vmem:[%s3531_s4 + $0x58] sm:$0xf] %vm1310_vm14, %v1268_v40  ;;  %vm1087_vm7 = vcmp.ge.f32.partialorder %v2851_v61, 0.0  ;;  %v1152_v43 = vmul.f32 0.2, %v2855_v30  ;;  %v1212_v48 = vsel %vm1084_vm4, %v2839_v50, %v1148_v13  ;;  %v1273_v14 = vpack.c.bf16 %v1209_v42, %v1209_v42 }
 0x1ff   :  { %1334 = vst.msk [vmem:[%s3531_s4 + $0x5c] sm:$0xf] %vm1310_vm14, %v1269_v7  ;;  %vm1088_vm8 = vcmp.ge.f32.partialorder %v2855_v30, 0.0  ;;  %v1153_v46 = vmul.f32 0.2, %v2859_v44  ;;  %v1213_v59 = vsel %vm1085_vm5, %v2843_v16, %v1149_v49  ;;  %v1274_v51 = vpack.c.bf16 %v1210_v27, %v1210_v27 }
 0x200   :  { %1335 = vst.msk [vmem:[%s3531_s4 + $0x60] sm:$0xf] %vm1310_vm14, %v1270_v12  ;;  %vm1089_vm9 = vcmp.ge.f32.partialorder %v2859_v44, 0.0  ;;  %v1154_v50 = vmul.f32 0.2, %v2863_v58  ;;  %v1214_v3 = vsel %vm1086_vm6, %v2847_v57, %v1150_v37  ;;  %v1275_v26 = vpack.c.bf16 %v1211_v35, %v1211_v35  ;;  %v3759_v12 = vld [vmem:[#allocation20_spill] sm:$0xff] }
 0x201   :  { %1336 = vst.msk [vmem:[%s3531_s4 + $0x64] sm:$0xf] %vm1310_vm14, %v1271_v45  ;;  %vm1090_vm10 = vcmp.ge.f32.partialorder %v2863_v58, 0.0  ;;  %v1155_v16 = vmul.f32 0.2, %v2867_v29  ;;  %v1215_v53 = vsel %vm1087_vm7, %v2851_v61, %v1151_v41  ;;  %v1276_v4 = vpack.c.bf16 %v1212_v48, %v1212_v48 }
 0x202   :  { %1337 = vst.msk [vmem:[%s3531_s4 + $0x68] sm:$0xf] %vm1310_vm14, %v1272_v15  ;;  %vm1091_vm11 = vcmp.ge.f32.partialorder %v2867_v29, 0.0  ;;  %v1156_v57 = vmul.f32 0.2, %v2871_v33  ;;  %v1216_v10 = vsel %vm1088_vm8, %v2855_v30, %v1152_v43  ;;  %v1277_v56 = vpack.c.bf16 %v1213_v59, %v1213_v59 }
 0x203   :  { %1338 = vst.msk [vmem:[%s3531_s4 + $0x6c] sm:$0xf] %vm1310_vm14, %v1273_v14  ;;  %vm1092_vm12 = vcmp.ge.f32.partialorder %v2871_v33, 0.0  ;;  %v1157_v61 = vmul.f32 0.2, %v2875_v19  ;;  %v1217_v9 = vsel %vm1089_vm9, %v2859_v44, %v1153_v46  ;;  %v1278_v21 = vpack.c.bf16 %v1214_v3, %v1214_v3 }
 0x204   :  { %1339 = vst.msk [vmem:[%s3531_s4 + $0x70] sm:$0xf] %vm1310_vm14, %v1274_v51  ;;  %vm1093_vm13 = vcmp.ge.f32.partialorder %v2875_v19, 0.0  ;;  %v1158_v30 = vmul.f32 0.2, %v2879_v32  ;;  %v1218_v60 = vsel %vm1090_vm10, %v2863_v58, %v1154_v50  ;;  %v1279_v54 = vpack.c.bf16 %v1215_v53, %v1215_v53  ;;  %v3755_v58 = vld [vmem:[#allocation13_spill] sm:$0xff] }
 0x205   :  { %1340 = vst.msk [vmem:[%s3531_s4 + $0x74] sm:$0xf] %vm1310_vm14, %v1275_v26  ;;  %vm1094_vm15 = vcmp.ge.f32.partialorder %v2879_v32, 0.0  ;;  %v1159_v44 = vmul.f32 0.2, %v2883_v25  ;;  %v1219_v31 = vsel %vm1091_vm11, %v2867_v29, %v1155_v16  ;;  %v1280_v63 = vpack.c.bf16 %v1216_v10, %v1216_v10  ;;  %v3756_v29 = vld [vmem:[#allocation15_spill] sm:$0xff] }
 0x206   :  { %1341 = vst.msk [vmem:[%s3531_s4 + $0x78] sm:$0xf] %vm1310_vm14, %v1276_v4  ;;  %vm1095_vm0 = vcmp.ge.f32.partialorder %v2883_v25, 0.0  ;;  %v1160_v6 = vmul.f32 0.2, %v3755_v58  ;;  %v1220_v20 = vsel %vm1092_vm12, %v2871_v33, %v1156_v57  ;;  %v1281_v2 = vpack.c.bf16 %v1217_v9, %v1217_v9  ;;  %v3757_v33 = vld [vmem:[#allocation23_spill] sm:$0xff] }
 0x207   :  { %1342 = vst.msk [vmem:[%s3531_s4 + $0x7c] sm:$0xf] %vm1310_vm14, %v1277_v56  ;;  %vm1096_vm1 = vcmp.ge.f32.partialorder %v3755_v58, 0.0  ;;  %v1161_v18 = vmul.f32 0.2, %v3756_v29  ;;  %v1221_v34 = vsel %vm1093_vm13, %v2875_v19, %v1157_v61  ;;  %v1282_v5 = vpack.c.bf16 %v1218_v60, %v1218_v60  ;;  %v3758_v19 = vld [vmem:[#allocation25_spill] sm:$0xff] }
 0x208   :  { %1343 = vst.msk [vmem:[%s3531_s4 + $0x80] sm:$0xf] %vm1310_vm14, %v1278_v21  ;;  %vm1097_vm2 = vcmp.ge.f32.partialorder %v3756_v29, 0.0  ;;  %v1162_v39 = vmul.f32 0.2, %v3757_v33  ;;  %v1222_v1 = vsel %vm1094_vm15, %v2879_v32, %v1158_v30  ;;  %v1283_v24 = vpack.c.bf16 %v1219_v31, %v1219_v31  ;;  %v3760_v16 = vld [vmem:[#allocation22_spill] sm:$0xff] }
 0x209   :  { %1344 = vst.msk [vmem:[%s3531_s4 + $0x84] sm:$0xf] %vm1310_vm14, %v1279_v54  ;;  %vm1098_vm3 = vcmp.ge.f32.partialorder %v3757_v33, 0.0  ;;  %v1163_v36 = vmul.f32 0.2, %v3758_v19  ;;  %v1223_v23 = vsel %vm1095_vm0, %v2883_v25, %v1159_v44  ;;  %v1284_v17 = vpack.c.bf16 %v1220_v20, %v1220_v20 }
 0x20a   :  { %1345 = vst.msk [vmem:[%s3531_s4 + $0x88] sm:$0xf] %vm1310_vm14, %v1280_v63  ;;  %vm1099_vm4 = vcmp.ge.f32.partialorder %v3758_v19, 0.0  ;;  %v1164_v32 = vmul.f32 0.2, %v2903_v8  ;;  %v1224_v0 = vsel %vm1096_vm1, %v3755_v58, %v1160_v6  ;;  %v1285_v40 = vpack.c.bf16 %v1221_v34, %v1221_v34 }
 0x20b   :  { %1346 = vst.msk [vmem:[%s3531_s4 + $0x8c] sm:$0xf] %vm1310_vm14, %v1281_v2  ;;  %vm1100_vm5 = vcmp.ge.f32.partialorder %v2903_v8, 0.0  ;;  %v1165_v25 = vmul.f32 0.2, %v2907_v38  ;;  %v1225_v13 = vsel %vm1097_vm2, %v3756_v29, %v1161_v18  ;;  %v1286_v55 = vpack.c.bf16 %v1222_v1, %v1222_v1  ;;  %v3766_v29 = vld [vmem:[#allocation4_spill] sm:$0xff] }
 0x20c   :  { %1347 = vst.msk [vmem:[%s3531_s4 + $0x90] sm:$0xf] %vm1310_vm14, %v1282_v5  ;;  %vm1101_vm6 = vcmp.ge.f32.partialorder %v2907_v38, 0.0  ;;  %v1166_v7 = vmul.f32 0.2, %v2911_v11  ;;  %v1226_v49 = vsel %vm1098_vm3, %v3757_v33, %v1162_v39  ;;  %v1287_v42 = vpack.c.bf16 %v1223_v23, %v1223_v23  ;;  %v3767_v33 = vld [vmem:[#allocation6_spill] sm:$0xff] }
 0x20d   :  { %1348 = vst.msk [vmem:[%s3531_s4 + $0x94] sm:$0xf] %vm1310_vm14, %v1283_v24  ;;  %vm1102_vm7 = vcmp.ge.f32.partialorder %v2911_v11, 0.0  ;;  %v1167_v37 = vmul.f32 0.2, %v3759_v12  ;;  %v1227_v27 = vsel %vm1099_vm4, %v3758_v19, %v1163_v36  ;;  %v1288_v45 = vpack.c.bf16 %v1224_v0, %v1224_v0  ;;  %v3768_v19 = vld [vmem:[#allocation31_spill] sm:$0xff] }
 0x20e   :  { %1349 = vst.msk [vmem:[%s3531_s4 + $0x98] sm:$0xf] %vm1310_vm14, %v1284_v17  ;;  %vm1103_vm8 = vcmp.ge.f32.partialorder %v3759_v12, 0.0  ;;  %v1168_v41 = vmul.f32 0.2, %v2919_v28  ;;  %v1228_v35 = vsel %vm1100_vm5, %v2903_v8, %v1164_v32  ;;  %v1289_v15 = vpack.c.bf16 %v1225_v13, %v1225_v13 }
 0x20f   :  { %1350 = vst.msk [vmem:[%s3531_s4 + $0x9c] sm:$0xf] %vm1310_vm14, %v1285_v40  ;;  %vm1104_vm9 = vcmp.ge.f32.partialorder %v2919_v28, 0.0  ;;  %v1169_v43 = vmul.f32 0.2, %v2923_v22  ;;  %v1229_v48 = vsel %vm1101_vm6, %v2907_v38, %v1165_v25  ;;  %v1290_v14 = vpack.c.bf16 %v1226_v49, %v1226_v49 }
 0x210   :  { %1351 = vst.msk [vmem:[%s3531_s4 + $0xa0] sm:$0xf] %vm1310_vm14, %v1286_v55  ;;  %vm1105_vm10 = vcmp.ge.f32.partialorder %v2923_v22, 0.0  ;;  %v1170_v8 = vmul.f32 0.2, %v2927_v62  ;;  %v1230_v46 = vsel %vm1102_vm7, %v2911_v11, %v1166_v7  ;;  %v1291_v59 = vpack.c.bf16 %v1227_v27, %v1227_v27 }
 0x211   :  { %1352 = vst.msk [vmem:[%s3531_s4 + $0xa4] sm:$0xf] %vm1310_vm14, %v1287_v42  ;;  %vm1106_vm11 = vcmp.ge.f32.partialorder %v2927_v62, 0.0  ;;  %v1171_v38 = vmul.f32 0.2, %v2931_v47  ;;  %v1231_v51 = vsel %vm1103_vm8, %v3759_v12, %v1167_v37  ;;  %v1292_v50 = vpack.c.bf16 %v1228_v35, %v1228_v35 }
 0x212   :  { %1353 = vst.msk [vmem:[%s3531_s4 + $0xa8] sm:$0xf] %vm1310_vm14, %v1288_v45  ;;  %vm1107_vm12 = vcmp.ge.f32.partialorder %v2931_v47, 0.0  ;;  %v1172_v11 = vmul.f32 0.2, %v2935_v52  ;;  %v1232_v3 = vsel %vm1104_vm9, %v2919_v28, %v1168_v41  ;;  %v1293_v26 = vpack.c.bf16 %v1229_v48, %v1229_v48  ;;  %v3761_v28 = vld [vmem:[#allocation24_spill] sm:$0xff] }
 0x213   :  { %1354 = vst.msk [vmem:[%s3531_s4 + $0xac] sm:$0xf] %vm1310_vm14, %v1289_v15  ;;  %vm1108_vm13 = vcmp.ge.f32.partialorder %v2935_v52, 0.0  ;;  %v1173_v53 = vmul.f32 0.2, %v3760_v16  ;;  %v1233_v4 = vsel %vm1105_vm10, %v2923_v22, %v1169_v43  ;;  %v1294_v57 = vpack.c.bf16 %v1230_v46, %v1230_v46  ;;  %v3762_v22 = vld [vmem:[#allocation26_spill] sm:$0xff] }
 0x214   :  { %1355 = vst.msk [vmem:[%s3531_s4 + $0xb0] sm:$0xf] %vm1310_vm14, %v1290_v14  ;;  %vm1109_vm15 = vcmp.ge.f32.partialorder %v3760_v16, 0.0  ;;  %v1174_v10 = vmul.f32 0.2, %v3761_v28  ;;  %v1234_v56 = vsel %vm1106_vm11, %v2927_v62, %v1170_v8  ;;  %v1295_v61 = vpack.c.bf16 %v1231_v51, %v1231_v51  ;;  %v3763_v62 = vld [vmem:[#allocation27_spill] sm:$0xff] }
 0x215   :  { %1356 = vst.msk [vmem:[%s3531_s4 + $0xb4] sm:$0xf] %vm1310_vm14, %v1291_v59  ;;  %vm1110_vm0 = vcmp.ge.f32.partialorder %v3761_v28, 0.0  ;;  %v1175_v9 = vmul.f32 0.2, %v3762_v22  ;;  %v1235_v21 = vsel %vm1107_vm12, %v2931_v47, %v1171_v38  ;;  %v1296_v30 = vpack.c.bf16 %v1232_v3, %v1232_v3  ;;  %v3764_v47 = vld [vmem:[#allocation28_spill] sm:$0xff] }
 0x216   :  { %1357 = vst.msk [vmem:[%s3531_s4 + $0xb8] sm:$0xf] %vm1310_vm14, %v1292_v50  ;;  %vm1111_vm1 = vcmp.ge.f32.partialorder %v3762_v22, 0.0  ;;  %v1176_v60 = vmul.f32 0.2, %v3763_v62  ;;  %v1236_v54 = vsel %vm1108_vm13, %v2935_v52, %v1172_v11  ;;  %v1297_v44 = vpack.c.bf16 %v1233_v4, %v1233_v4  ;;  %v3765_v52 = vld [vmem:[#allocation29_spill] sm:$0xff] }
 0x217   :  { %1358 = vst.msk [vmem:[%s3531_s4 + $0xbc] sm:$0xf] %vm1310_vm14, %v1293_v26  ;;  %vm1112_vm2 = vcmp.ge.f32.partialorder %v3763_v62, 0.0  ;;  %v1177_v31 = vmul.f32 0.2, %v3764_v47  ;;  %v1237_v63 = vsel %vm1109_vm15, %v3760_v16, %v1173_v53  ;;  %v1298_v58 = vpack.c.bf16 %v1234_v56, %v1234_v56 }
 0x218   :  { %1359 = vst.msk [vmem:[%s3531_s4 + $0xc0] sm:$0xf] %vm1310_vm14, %v1294_v57  ;;  %vm1113_vm3 = vcmp.ge.f32.partialorder %v3764_v47, 0.0  ;;  %v1178_v6 = vmul.f32 0.2, %v3765_v52  ;;  %v1238_v20 = vsel %vm1110_vm0, %v3761_v28, %v1174_v10  ;;  %v1299_v2 = vpack.c.bf16 %v1235_v21, %v1235_v21 }
 0x219   :  { %1360 = vst.msk [vmem:[%s3531_s4 + $0xc4] sm:$0xf] %vm1310_vm14, %v1295_v61  ;;  %vm1114_vm4 = vcmp.ge.f32.partialorder %v3765_v52, 0.0  ;;  %v1179_v18 = vmul.f32 0.2, %v3766_v29  ;;  %v1239_v34 = vsel %vm1111_vm1, %v3762_v22, %v1175_v9  ;;  %v1300_v5 = vpack.c.bf16 %v1236_v54, %v1236_v54 }
 0x21a   :  { %1361 = vst.msk [vmem:[%s3531_s4 + $0xc8] sm:$0xf] %vm1310_vm14, %v1296_v30  ;;  %vm1115_vm5 = vcmp.ge.f32.partialorder %v3766_v29, 0.0  ;;  %v1180_v39 = vmul.f32 0.2, %v3767_v33  ;;  %v1240_v1 = vsel %vm1112_vm2, %v3763_v62, %v1176_v60  ;;  %v1301_v24 = vpack.c.bf16 %v1237_v63, %v1237_v63 }
 0x21b   :  { %1362 = vst.msk [vmem:[%s3531_s4 + $0xcc] sm:$0xf] %vm1310_vm14, %v1297_v44  ;;  %vm1116_vm6 = vcmp.ge.f32.partialorder %v3767_v33, 0.0  ;;  %v1181_v36 = vmul.f32 0.2, %v3768_v19  ;;  %v1241_v23 = vsel %vm1113_vm3, %v3764_v47, %v1177_v31  ;;  %v1302_v17 = vpack.c.bf16 %v1238_v20, %v1238_v20 }
 0x21c   :  { %1363 = vst.msk [vmem:[%s3531_s4 + $0xd0] sm:$0xf] %vm1310_vm14, %v1298_v58  ;;  %vm1117_vm7 = vcmp.ge.f32.partialorder %v3768_v19, 0.0  ;;  %v1242_v32 = vsel %vm1114_vm4, %v3765_v52, %v1178_v6  ;;  %v1303_v0 = vpack.c.bf16 %v1239_v34, %v1239_v34  ;;  %v1243_v40 = vsel %vm1115_vm5, %v3766_v29, %v1179_v18 }
 0x21d   :  { %1364 = vst.msk [vmem:[%s3531_s4 + $0xd4] sm:$0xf] %vm1310_vm14, %v1299_v2  ;;  %v1304_v25 = vpack.c.bf16 %v1240_v1, %v1240_v1  ;;  %v1244_v13 = vsel %vm1116_vm6, %v3767_v33, %v1180_v39  ;;  %v1305_v55 = vpack.c.bf16 %v1241_v23, %v1241_v23  ;;  %v1245_v7 = vsel %vm1117_vm7, %v3768_v19, %v1181_v36 }
 0x21e   :  { %1365 = vst.msk [vmem:[%s3531_s4 + $0xd8] sm:$0xf] %vm1310_vm14, %v1300_v5  ;;  %v1306_v49 = vpack.c.bf16 %v1242_v32, %v1242_v32  ;;  %v1307_v42 = vpack.c.bf16 %v1243_v40, %v1243_v40  ;;  %v1308_v12 = vpack.c.bf16 %v1244_v13, %v1244_v13  ;;  %v1309_v37 = vpack.c.bf16 %v1245_v7, %v1245_v7 }
 0x21f   :  { %1366 = vst.msk [vmem:[%s3531_s4 + $0xdc] sm:$0xf] %vm1310_vm14, %v1301_v24 }
 0x220   :  { %1367 = vst.msk [vmem:[%s3531_s4 + $0xe0] sm:$0xf] %vm1310_vm14, %v1302_v17 }
 0x221   :  { %1368 = vst.msk [vmem:[%s3531_s4 + $0xe4] sm:$0xf] %vm1310_vm14, %v1303_v0 }
 0x222   :  { %1369 = vst.msk [vmem:[%s3531_s4 + $0xe8] sm:$0xf] %vm1310_vm14, %v1304_v25 }
 0x223   :  { %1370 = vst.msk [vmem:[%s3531_s4 + $0xec] sm:$0xf] %vm1310_vm14, %v1305_v55 }
 0x224   :  { %1371 = vst.msk [vmem:[%s3531_s4 + $0xf0] sm:$0xf] %vm1310_vm14, %v1306_v49 }
 0x225   :  { %1372 = vst.msk [vmem:[%s3531_s4 + $0xf4] sm:$0xf] %vm1310_vm14, %v1307_v42 }
 0x226   :  { %1373 = vst.msk [vmem:[%s3531_s4 + $0xf8] sm:$0xf] %vm1310_vm14, %v1308_v12 }
 0x227   :  { %1374 = vst.msk [vmem:[%s3531_s4 + $0xfc] sm:$0xf] %vm1310_vm14, %v1309_v37 }

// kernel: discriminator_forward.6
= control target key start
LH: loop header
LB: loop body
LE: loop exit
PB: predicated region body
PF: predicated region fallthrough
CT: control target
= control target key end

     0   :  { %vm339_vm0 = vcmask 261120   ;;  %vm567_vm4 = vcmask 257024   ;;  %s1171_s1 = inlined_call_operand.vmem [shape: bf16[256,32], index: 1, kind: input, shape index: {}]   ;;  %s1172_s0 = inlined_call_operand.vmem [shape: bf16[128,256], index: 0, kind: input, shape index: {}]   ;;  %s1173_s3 = inlined_call_operand.vmem [shape: f32[1,32], index: 3, kind: input, shape index: {}]   ;;  %s1174_s2 = inlined_call_operand.vmem [shape: f32[1,32], index: 2, kind: input, shape index: {}]   ;;  %s1175_s4 = inlined_call_operand.vmem [shape: bf16[128,32], index: 4, kind: output, shape index: {}]  }
   0x1   :  { %v739_v0 = vld [vmem:[%s1171_s1 + $0x38] sm:$0xff]  ;;  %v738_v2 = vld [vmem:[%s1171_s1 + $0x30] sm:$0xff]  ;;  %v737_v4 = vld [vmem:[%s1171_s1 + $0x28] sm:$0xff] }
   0x2   :  { %v747_v1 = vld [vmem:[%s1171_s1 + $0x78] sm:$0xff]  ;;  %241 = vmatpush.bf16.msra.mxu0 %v739_v0  ;;  %v746_v3 = vld [vmem:[%s1171_s1 + $0x70] sm:$0xff]  ;;  %748 = vmatpush.bf16.msra.mxu2 %v739_v0  ;;  %v745_v5 = vld [vmem:[%s1171_s1 + $0x68] sm:$0xff] }
   0x3   :  { %290 = vmatpush.bf16.msra.mxu1 %v747_v1  ;;  %756 = vmatpush.bf16.msra.mxu3 %v747_v1  ;;  %v736_v6 = vld [vmem:[%s1171_s1 + $0x20] sm:$0xff]  ;;  %v735_v8 = vld [vmem:[%s1171_s1 + $0x18] sm:$0xff]  ;;  %v734_v10 = vld [vmem:[%s1171_s1 + $0x10] sm:$0xff] }
   0x4   :  { %v744_v7 = vld [vmem:[%s1171_s1 + $0x60] sm:$0xff]  ;;  %v743_v9 = vld [vmem:[%s1171_s1 + $0x58] sm:$0xff]  ;;  %v742_v11 = vld [vmem:[%s1171_s1 + $0x50] sm:$0xff] }
   0x5   :  { %v733_v12 = vld [vmem:[%s1171_s1 + $0x8] sm:$0xff]  ;;  %v732_v14 = vld [vmem:[%s1171_s1] sm:$0xff]  ;;  %v598_v28 = vld [vmem:[%s1172_s0 + $0x10] sm:$0xf] }
   0x6   :  { %242 = vmatpush.bf16.msra.mxu0 %v738_v2  ;;  %749 = vmatpush.bf16.msra.mxu2 %v738_v2  ;;  %v741_v13 = vld [vmem:[%s1171_s1 + $0x48] sm:$0xff]  ;;  %v740_v15 = vld [vmem:[%s1171_s1 + $0x40] sm:$0xff]  ;;  %v719_v29 = vld [vmem:[%s1172_s0 + $0x14] sm:$0xf0] }
   0x7   :  { %291 = vmatpush.bf16.msra.mxu1 %v746_v3  ;;  %757 = vmatpush.bf16.msra.mxu3 %v746_v3  ;;  %v590_v16 = vld [vmem:[%s1172_s0] sm:$0xf]  ;;  %v717_v17 = vld [vmem:[%s1172_s0 + $0x4] sm:$0xf0]  ;;  %v716_v18 = vld [vmem:[%s1172_s0 + $0x4] sm:$0xf]  ;;  %v599_v36 = vor.u32 %v719_v29, %v598_v28 }
   0x8   :  { %v592_v19 = vld [vmem:[%s1172_s0 + $0x8] sm:$0xf0]  ;;  %v622_v20 = vld [vmem:[%s1172_s0 + $0x40] sm:$0xf]  ;;  %v725_v21 = vld [vmem:[%s1172_s0 + $0x44] sm:$0xf0]  ;;  %v591_v24 = vor.u32 %v717_v17, %v590_v16 }
   0x9   :  { %v724_v22 = vld [vmem:[%s1172_s0 + $0x44] sm:$0xf]  ;;  %v624_v23 = vld [vmem:[%s1172_s0 + $0x48] sm:$0xf0]  ;;  %v595_v25 = vor.u32 %v716_v18, %v592_v19  ;;  %v623_v26 = vor.u32 %v725_v21, %v622_v20  ;;  %v718_v30 = vld [vmem:[%s1172_s0 + $0x14] sm:$0xf] }
   0xa   :  { %243 = vmatpush.bf16.msra.mxu0 %v737_v4  ;;  %750 = vmatpush.bf16.msra.mxu2 %v737_v4  ;;  %v627_v27 = vor.u32 %v724_v22, %v624_v23  ;;  %v600_v31 = vld [vmem:[%s1172_s0 + $0x18] sm:$0xf0]  ;;  %v630_v32 = vld [vmem:[%s1172_s0 + $0x50] sm:$0xf]  ;;  %v727_v33 = vld [vmem:[%s1172_s0 + $0x54] sm:$0xf0] }
   0xb   :  { %292 = vmatpush.bf16.msra.mxu1 %v745_v5  ;;  %758 = vmatpush.bf16.msra.mxu3 %v745_v5  ;;  %v726_v34 = vld [vmem:[%s1172_s0 + $0x54] sm:$0xf]  ;;  %v632_v35 = vld [vmem:[%s1172_s0 + $0x58] sm:$0xf0]  ;;  %v603_v37 = vor.u32 %v718_v30, %v600_v31  ;;  %v631_v38 = vor.u32 %v727_v33, %v630_v32  ;;  %v606_v40 = vld [vmem:[%s1172_s0 + $0x20] sm:$0xf] }
   0xc   :  { %v635_v39 = vor.u32 %v726_v34, %v632_v35  ;;  %v721_v41 = vld [vmem:[%s1172_s0 + $0x24] sm:$0xf0]  ;;  %v720_v42 = vld [vmem:[%s1172_s0 + $0x24] sm:$0xf]  ;;  %v608_v43 = vld [vmem:[%s1172_s0 + $0x28] sm:$0xf0] }
   0xd   :  { %v638_v44 = vld [vmem:[%s1172_s0 + $0x60] sm:$0xf]  ;;  %v729_v45 = vld [vmem:[%s1172_s0 + $0x64] sm:$0xf0]  ;;  %v728_v46 = vld [vmem:[%s1172_s0 + $0x64] sm:$0xf]  ;;  %v607_v48 = vor.u32 %v721_v41, %v606_v40  ;;  %v611_v49 = vor.u32 %v720_v42, %v608_v43 }
   0xe   :  { %244 = vmatpush.bf16.msra.mxu0 %v736_v6  ;;  %751 = vmatpush.bf16.msra.mxu2 %v736_v6  ;;  %v640_v47 = vld [vmem:[%s1172_s0 + $0x68] sm:$0xf0]  ;;  %v639_v50 = vor.u32 %v729_v45, %v638_v44  ;;  %v614_v52 = vld [vmem:[%s1172_s0 + $0x30] sm:$0xf]  ;;  %v723_v53 = vld [vmem:[%s1172_s0 + $0x34] sm:$0xf0] }
   0xf   :  { %293 = vmatpush.bf16.msra.mxu1 %v744_v7  ;;  %759 = vmatpush.bf16.msra.mxu3 %v744_v7  ;;  %v643_v51 = vor.u32 %v728_v46, %v640_v47  ;;  %v722_v54 = vld [vmem:[%s1172_s0 + $0x34] sm:$0xf]  ;;  %v616_v55 = vld [vmem:[%s1172_s0 + $0x38] sm:$0xf0]  ;;  %v646_v56 = vld [vmem:[%s1172_s0 + $0x70] sm:$0xf]  ;;  %v615_v60 = vor.u32 %v723_v53, %v614_v52 }
  0x10   :  { %v731_v57 = vld [vmem:[%s1172_s0 + $0x74] sm:$0xf0]  ;;  %v730_v58 = vld [vmem:[%s1172_s0 + $0x74] sm:$0xf]  ;;  %v648_v59 = vld [vmem:[%s1172_s0 + $0x78] sm:$0xf0]  ;;  %v619_v61 = vor.u32 %v722_v54, %v616_v55 }
  0x11   :  { %v647_v62 = vor.u32 %v731_v57, %v646_v56  ;;  %v651_v63 = vor.u32 %v730_v58, %v648_v59 }
  0x12   :  { %245 = vmatpush.bf16.msra.mxu0 %v735_v8  ;;  %752 = vmatpush.bf16.msra.mxu2 %v735_v8 }
  0x13   :  { %294 = vmatpush.bf16.msra.mxu1 %v743_v9  ;;  %760 = vmatpush.bf16.msra.mxu3 %v743_v9 }
  0x16   :  { %246 = vmatpush.bf16.msra.mxu0 %v734_v10  ;;  %753 = vmatpush.bf16.msra.mxu2 %v734_v10 }
  0x17   :  { %295 = vmatpush.bf16.msra.mxu1 %v742_v11  ;;  %761 = vmatpush.bf16.msra.mxu3 %v742_v11 }
  0x1a   :  { %247 = vmatpush.bf16.msra.mxu0 %v733_v12  ;;  %754 = vmatpush.bf16.msra.mxu2 %v733_v12 }
  0x1b   :  { %296 = vmatpush.bf16.msra.mxu1 %v741_v13  ;;  %762 = vmatpush.bf16.msra.mxu3 %v741_v13 }
  0x1e   :  { %248 = vmatpush.bf16.msra.mxu0 %v732_v14  ;;  %755 = vmatpush.bf16.msra.mxu2 %v732_v14 }
  0x1f   :  { %297 = vmatpush.bf16.msra.mxu1 %v740_v15  ;;  %763 = vmatpush.bf16.msra.mxu3 %v740_v15 }
  0x21   :  { %249 = vmatmul.bf16.vlgmr.msra.gmra.mxu0 %v591_v24  ;;  %269 = vmatmul.bf16.vlgmr.msra.gmra.mxu2 %v623_v26 }
  0x22   :  { %298 = vmatmul.bf16.vlgmr.msra.gmra.mxu1 %v595_v25  ;;  %318 = vmatmul.bf16.vlgmr.msra.gmra.mxu3 %v627_v27 }
  0x31   :  { %254 = vmatmul.bf16.gmra.mxu0 %v599_v36  ;;  %274 = vmatmul.bf16.gmra.mxu2 %v631_v38 }
  0x32   :  { %303 = vmatmul.bf16.gmra.mxu1 %v603_v37  ;;  %323 = vmatmul.bf16.gmra.mxu3 %v635_v39 }
  0x41   :  { %259 = vmatmul.bf16.gmra.mxu0 %v607_v48  ;;  %279 = vmatmul.bf16.gmra.mxu2 %v639_v50 }
  0x42   :  { %308 = vmatmul.bf16.gmra.mxu1 %v611_v49  ;;  %328 = vmatmul.bf16.gmra.mxu3 %v643_v51 }
  0x51   :  { %264 = vmatmul.bf16.gmra.mxu0 %v615_v60  ;;  %284 = vmatmul.bf16.gmra.mxu2 %v647_v62 }
  0x52   :  { %313 = vmatmul.bf16.gmra.mxu1 %v619_v61  ;;  %333 = vmatmul.bf16.gmra.mxu3 %v651_v63 }
  0x9e   :  { %v250_v0 = vpop.f32.mrf.mxu0 }
  0x9f   :  { %v299_v1 = vpop.f32.mrf.mxu1 }
  0xa0   :  { %v950_v21 = vadd.f32 %v299_v1, %v250_v0 }
  0xa2   :  { %v377_v27 = vmul.f32 %v950_v21, %v950_v21  ;;  %v340_v31 = vsel %vm339_vm0, %v950_v21, 0.0 }
  0xa4   :  { %v270_v2 = vpop.f32.mrf.mxu2  ;;  %v393_v38 = vsel %vm339_vm0, %v377_v27, 0.0 }
  0xa5   :  { %v319_v3 = vpop.f32.mrf.mxu3 }
  0xa6   :  { %v252_v4 = vpop.f32.mrf.mxu0  ;;  %v993_v58 = vadd.f32 %v319_v3, %v270_v2 }
  0xa7   :  { %v301_v5 = vpop.f32.mrf.mxu1 }
  0xa8   :  { %v944_v18 = vadd.f32 %v301_v5, %v252_v4  ;;  %v385_v3 = vmul.f32 %v993_v58, %v993_v58 }
  0xaa   :  { %v378_v25 = vmul.f32 %v944_v18, %v944_v18  ;;  %v341_v28 = vsel %vm339_vm0, %v944_v18, 0.0 }
  0xab   :  { %v342_v39 = vadd.f32 %v341_v28, %v340_v31  ;;  %v408_v28 = vsel %vm339_vm0, %v385_v3, 0.0 }
  0xac   :  { %v272_v6 = vpop.f32.mrf.mxu2  ;;  %v394_v32 = vsel %vm339_vm0, %v378_v25, 0.0 }
  0xad   :  { %v321_v7 = vpop.f32.mrf.mxu3  ;;  %v395_v46 = vadd.f32 %v394_v32, %v393_v38 }
  0xae   :  { %v255_v8 = vpop.f32.mrf.mxu0  ;;  %v998_v5 = vadd.f32 %v321_v7, %v272_v6 }
  0xaf   :  { %v304_v9 = vpop.f32.mrf.mxu1 }
  0xb0   :  { %v952_v24 = vadd.f32 %v304_v9, %v255_v8 }
  0xb2   :  { %v379_v29 = vmul.f32 %v952_v24, %v952_v24  ;;  %v343_v33 = vsel %vm339_vm0, %v952_v24, 0.0 }
  0xb3   :  { %v344_v47 = vadd.f32 %v343_v33, %v342_v39 }
  0xb4   :  { %v936_v10 = vpop.f32.mrf.mxu2  ;;  %v396_v42 = vsel %vm339_vm0, %v379_v29, 0.0  ;;  %v357_v29 = vsel %vm339_vm0, %v998_v5, 0.0 }
  0xb5   :  { %v938_v11 = vpop.f32.mrf.mxu3  ;;  %v397_v51 = vadd.f32 %v396_v42, %v395_v46 }
  0xb6   :  { %v257_v12 = vpop.f32.mrf.mxu0 }
  0xb7   :  { %v306_v13 = vpop.f32.mrf.mxu1 }
  0xb8   :  { %v956_v26 = vadd.f32 %v306_v13, %v257_v12  ;;  %v1007_v13 = vadd.f32 %v938_v11, %v936_v10 }
  0xba   :  { %v380_v34 = vmul.f32 %v956_v26, %v956_v26  ;;  %v345_v43 = vsel %vm339_vm0, %v956_v26, 0.0  ;;  %v387_v31 = vmul.f32 %v1007_v13, %v1007_v13 }
  0xbb   :  { %v346_v52 = vadd.f32 %v345_v43, %v344_v47 }
  0xbc   :  { %v940_v14 = vpop.f32.mrf.mxu2  ;;  %v398_v48 = vsel %vm339_vm0, %v380_v34, 0.0 }
  0xbd   :  { %v942_v15 = vpop.f32.mrf.mxu3  ;;  %v399_v56 = vadd.f32 %v398_v48, %v397_v51 }
  0xbe   :  { %v260_v16 = vpop.f32.mrf.mxu0  ;;  %v1019_v25 = vadd.f32 %v942_v15, %v940_v14  ;;  %v359_v15 = vsel %vm339_vm0, %v1007_v13, 0.0 }
  0xbf   :  { %v309_v17 = vpop.f32.mrf.mxu1 }
  0xc0   :  { %v964_v30 = vadd.f32 %v309_v17, %v260_v16  ;;  %v388_v38 = vmul.f32 %v1019_v25, %v1019_v25 }
  0xc2   :  { %v381_v44 = vmul.f32 %v964_v30, %v964_v30  ;;  %v347_v49 = vsel %vm339_vm0, %v964_v30, 0.0 }
  0xc3   :  { %v348_v57 = vadd.f32 %v347_v49, %v346_v52  ;;  %v414_v49 = vsel %vm339_vm0, %v388_v38, 0.0 }
  0xc4   :  { %v946_v19 = vpop.f32.mrf.mxu2  ;;  %v400_v53 = vsel %vm339_vm0, %v381_v44, 0.0  ;;  %v412_v44 = vsel %vm339_vm0, %v387_v31, 0.0 }
  0xc5   :  { %v948_v20 = vpop.f32.mrf.mxu3  ;;  %v401_v63 = vadd.f32 %v400_v53, %v399_v56 }
  0xc6   :  { %v262_v22 = vpop.f32.mrf.mxu0  ;;  %v1029_v32 = vadd.f32 %v948_v20, %v946_v19  ;;  %v361_v19 = vsel %vm339_vm0, %v1019_v25, 0.0 }
  0xc7   :  { %v311_v23 = vpop.f32.mrf.mxu1 }
  0xc8   :  { %v973_v35 = vadd.f32 %v311_v23, %v262_v22  ;;  %v355_v22 = vsel %vm339_vm0, %v993_v58, 0.0  ;;  %v386_v23 = vmul.f32 %v998_v5, %v998_v5  ;;  %v389_v20 = vmul.f32 %v1029_v32, %v1029_v32 }
  0xca   :  { %v382_v50 = vmul.f32 %v973_v35, %v973_v35  ;;  %v349_v54 = vsel %vm339_vm0, %v973_v35, 0.0  ;;  %v410_v14 = vsel %vm339_vm0, %v386_v23, 0.0  ;;  %v416_v53 = vsel %vm339_vm0, %v389_v20, 0.0  ;;  %v451_v20 = vld [vmem:[%s1174_s2] sm:$0x1] }
  0xcb   :  { %v350_v0 = vadd.f32 %v349_v54, %v348_v57 }
  0xcc   :  { %v282_v36 = vpop.f32.mrf.mxu2  ;;  %v402_v59 = vsel %vm339_vm0, %v382_v50, 0.0 }
  0xcd   :  { %v331_v37 = vpop.f32.mrf.mxu3  ;;  %v403_v12 = vadd.f32 %v402_v59, %v401_v63 }
  0xce   :  { %v265_v40 = vpop.f32.mrf.mxu0  ;;  %v1036_v39 = vadd.f32 %v331_v37, %v282_v36  ;;  %v363_v36 = vsel %vm339_vm0, %v1029_v32, 0.0 }
  0xcf   :  { %v314_v41 = vpop.f32.mrf.mxu1 }
  0xd0   :  { %v981_v45 = vadd.f32 %v314_v41, %v265_v40  ;;  %v390_v37 = vmul.f32 %v1036_v39, %v1036_v39  ;;  %v365_v54 = vsel %vm339_vm0, %v1036_v39, 0.0 }
  0xd2   :  { %v383_v55 = vmul.f32 %v981_v45, %v981_v45  ;;  %v351_v60 = vsel %vm339_vm0, %v981_v45, 0.0  ;;  %v418_v59 = vsel %vm339_vm0, %v390_v37, 0.0 }
  0xd3   :  { %v352_v2 = vadd.f32 %v351_v60, %v350_v0 }
  0xd4   :  { %v285_v61 = vpop.f32.mrf.mxu2  ;;  %v404_v8 = vsel %vm339_vm0, %v383_v55, 0.0 }
  0xd5   :  { %v334_v62 = vpop.f32.mrf.mxu3  ;;  %v405_v7 = vadd.f32 %v404_v8, %v403_v12 }
  0xd6   :  { %v267_v1 = vpop.f32.mrf.mxu0  ;;  %v1043_v46 = vadd.f32 %v334_v62, %v285_v61 }
  0xd7   :  { %v316_v4 = vpop.f32.mrf.mxu1 }
  0xd8   :  { %v1001_v9 = vadd.f32 %v316_v4, %v267_v1  ;;  %v391_v55 = vmul.f32 %v1043_v46, %v1043_v46  ;;  %v367_v60 = vsel %vm339_vm0, %v1043_v46, 0.0 }
  0xda   :  { %v353_v16 = vsel %vm339_vm0, %v1001_v9, 0.0  ;;  %v384_v6 = vmul.f32 %v1001_v9, %v1001_v9  ;;  %v420_v0 = vsel %vm339_vm0, %v391_v55, 0.0 }
  0xdb   :  { %v354_v17 = vadd.f32 %v353_v16, %v352_v2 }
  0xdc   :  { %v406_v10 = vsel %vm339_vm0, %v384_v6, 0.0  ;;  %v287_v42 = vpop.f32.mrf.mxu2 }
  0xdd   :  { %v356_v11 = vadd.f32 %v355_v22, %v354_v17  ;;  %v407_v27 = vadd.f32 %v406_v10, %v405_v7  ;;  %v336_v43 = vpop.f32.mrf.mxu3 }
  0xde   :  { %v1050_v50 = vadd.f32 %v336_v43, %v287_v42 }
  0xdf   :  { %v358_v33 = vadd.f32 %v357_v29, %v356_v11  ;;  %v409_v34 = vadd.f32 %v408_v28, %v407_v27 }
  0xe0   :  { %v392_v61 = vmul.f32 %v1050_v50, %v1050_v50  ;;  %v369_v1 = vsel %vm339_vm0, %v1050_v50, 0.0 }
  0xe1   :  { %v360_v40 = vadd.f32 %v359_v15, %v358_v33  ;;  %v411_v41 = vadd.f32 %v410_v14, %v409_v34 }
  0xe2   :  { %v422_v12 = vsel %vm339_vm0, %v392_v61, 0.0 }
  0xe3   :  { %v413_v47 = vadd.f32 %v412_v44, %v411_v41  ;;  %v362_v48 = vadd.f32 %v361_v19, %v360_v40 }
  0xe5   :  { %v364_v51 = vadd.f32 %v363_v36, %v362_v48  ;;  %v415_v52 = vadd.f32 %v414_v49, %v413_v47 }
  0xe7   :  { %v366_v56 = vadd.f32 %v365_v54, %v364_v51  ;;  %v417_v57 = vadd.f32 %v416_v53, %v415_v52 }
  0xe9   :  { %v368_v62 = vadd.f32 %v367_v60, %v366_v56  ;;  %v419_v63 = vadd.f32 %v418_v59, %v417_v57 }
  0xeb   :  { %v421_v4 = vadd.f32 %v420_v0, %v419_v63  ;;  %v370_v8 = vadd.f32 %v369_v1, %v368_v62 }
  0xed   :  { %v371_v2 = vrot.slane %v370_v8, 4  ;;  %v423_v3 = vadd.f32 %v422_v12, %v421_v4 }
  0xef   :  { %v372_v16 = vadd.f32 %v371_v2, %v370_v8  ;;  %v424_v6 = vrot.slane %v423_v3, 4 }
  0xf1   :  { %v373_v7 = vrot.slane %v372_v16, 2  ;;  %v425_v17 = vadd.f32 %v424_v6, %v423_v3 }
  0xf3   :  { %v374_v22 = vadd.f32 %v373_v7, %v372_v16  ;;  %v426_v23 = vrot.slane %v425_v17, 2 }
  0xf5   :  { %v375_v10 = vrot.slane %v374_v22, 1  ;;  %v427_v11 = vadd.f32 %v426_v23, %v425_v17 }
  0xf7   :  { %v376_v27 = vadd.f32 %v375_v10, %v374_v22  ;;  %v428_v28 = vrot.slane %v427_v11, 1 }
  0xf9   :  { %v429_v29 = vadd.f32 %v428_v28, %v427_v11  ;;  %v430_v31 = vmul.f32 0.0078125, %v376_v27 }
  0xfb   :  { %v431_v33 = vmul.f32 0.0078125, %v429_v29  ;;  %v432_v34 = vmul.f32 %v430_v31, %v430_v31  ;;  %v435_v36 = vsub.f32 %v950_v21, %v430_v31  ;;  %v436_v37 = vsub.f32 %v944_v18, %v430_v31 }
  0xfc   :  { %v437_v51 = vsub.f32 %v952_v24, %v430_v31  ;;  %v438_v52 = vsub.f32 %v956_v26, %v430_v31  ;;  %v439_v53 = vsub.f32 %v964_v30, %v430_v31  ;;  %v440_v54 = vsub.f32 %v973_v35, %v430_v31  ;;  %v764_v35 = vld [vmem:[%s1173_s3] ss:$0 sm:$0xff] }
  0xfd   :  { %v433_v14 = vsub.f32 %v431_v33, %v432_v34  ;;  %v441_v55 = vsub.f32 %v981_v45, %v430_v31  ;;  %v442_v56 = vsub.f32 %v1001_v9, %v430_v31  ;;  %v443_v57 = vsub.f32 %v993_v58, %v430_v31 }
  0xfe   :  { %v444_v59 = vsub.f32 %v998_v5, %v430_v31  ;;  %v445_v21 = vsub.f32 %v1007_v13, %v430_v31  ;;  %v446_v18 = vsub.f32 %v1019_v25, %v430_v31  ;;  %v447_v24 = vsub.f32 %v1029_v32, %v430_v31 }
  0xff   :  { %v434_v15 = vmax.f32 %v433_v14, 0.0  ;;  %v448_v26 = vsub.f32 %v1036_v39, %v430_v31  ;;  %v449_v45 = vsub.f32 %v1043_v46, %v430_v31  ;;  %v450_v58 = vsub.f32 %v1050_v50, %v430_v31 }
 0x101   :  { %v452_v38 = vadd.f32 1e-05, %v434_v15 }
 0x103   :  { %765 = vrsqrt.f32 %v452_v38  ;;  %vm459_vm2 = vweird.f32 %v452_v38 }
 0x109   :  { %v766_v40 = vpop.eup %765 }
 0x10a   :  { %v454_v41 = vmul.f32 %v766_v40, %v452_v38  ;;  %vm460_vm1 = vweird.f32 %v766_v40 }
 0x10b   :  { %vm461_vm3 = vmor %vm459_vm2, %vm460_vm1 }
 0x10c   :  { %v455_v42 = vmul.f32 %v766_v40, %v454_v41 }
 0x10e   :  { %v456_v43 = vmul.f32 0.5, %v455_v42 }
 0x110   :  { %v457_v44 = vsub.f32 1.5, %v456_v43 }
 0x112   :  { %v458_v19 = vmul.f32 %v766_v40, %v457_v44 }
 0x114   :  { %v462_v47 = vsel %vm461_vm3, %v766_v40, %v458_v19 }
 0x115   :  { %v463_v48 = vmul.f32 %v462_v47, %v451_v20 }
 0x117   :  { %v465_v49 = vperm.slane %v463_v48, 0 }
 0x119   :  { %v467_v60 = vmul.f32 %v465_v49, %v435_v36  ;;  %v468_v30 = vmul.f32 %v465_v49, %v436_v37  ;;  %v469_v9 = vmul.f32 %v465_v49, %v437_v51  ;;  %v470_v5 = vmul.f32 %v465_v49, %v438_v52 }
 0x11a   :  { %v471_v61 = vmul.f32 %v465_v49, %v439_v53  ;;  %v472_v13 = vmul.f32 %v465_v49, %v440_v54  ;;  %v473_v62 = vmul.f32 %v465_v49, %v441_v55  ;;  %v474_v25 = vmul.f32 %v465_v49, %v442_v56 }
 0x11b   :  { %v475_v63 = vmul.f32 %v465_v49, %v443_v57  ;;  %v476_v32 = vmul.f32 %v465_v49, %v444_v59  ;;  %v477_v0 = vmul.f32 %v465_v49, %v445_v21  ;;  %v478_v39 = vmul.f32 %v465_v49, %v446_v18 }
 0x11c   :  { %v479_v1 = vmul.f32 %v465_v49, %v447_v24  ;;  %v480_v4 = vmul.f32 %v465_v49, %v448_v26  ;;  %v487_v8 = vadd.f32 %v764_v35, %v467_v60  ;;  %v488_v12 = vadd.f32 %v764_v35, %v468_v30 }
 0x11d   :  { %v481_v2 = vmul.f32 %v465_v49, %v449_v45  ;;  %v482_v3 = vmul.f32 %v465_v49, %v450_v58  ;;  %v489_v16 = vadd.f32 %v764_v35, %v469_v9  ;;  %v490_v46 = vadd.f32 %v764_v35, %v470_v5 }
 0x11e   :  { %v491_v6 = vadd.f32 %v764_v35, %v471_v61  ;;  %v492_v50 = vadd.f32 %v764_v35, %v472_v13  ;;  %v493_v7 = vadd.f32 %v764_v35, %v473_v62  ;;  %v494_v17 = vadd.f32 %v764_v35, %v474_v25 }
 0x11f   :  { %v495_v22 = vadd.f32 %v764_v35, %v475_v63  ;;  %v496_v23 = vadd.f32 %v764_v35, %v476_v32  ;;  %v497_v10 = vadd.f32 %v764_v35, %v477_v0  ;;  %v498_v11 = vadd.f32 %v764_v35, %v478_v39 }
 0x120   :  { %v1088_v27 = vadd.f32 %v764_v35, %v479_v1  ;;  %v1090_v28 = vadd.f32 %v764_v35, %v480_v4  ;;  %v519_v29 = vmul.f32 0.2, %v487_v8  ;;  %v520_v31 = vmul.f32 0.2, %v488_v12 }
 0x121   :  { %vm503_vm5 = vcmp.ge.f32.partialorder %v487_v8, 0.0  ;;  %vm504_vm6 = vcmp.ge.f32.partialorder %v488_v12, 0.0  ;;  %v521_v33 = vmul.f32 0.2, %v489_v16  ;;  %v522_v34 = vmul.f32 0.2, %v490_v46 }
 0x122   :  { %v501_v14 = vadd.f32 %v764_v35, %v481_v2  ;;  %vm505_vm7 = vcmp.ge.f32.partialorder %v489_v16, 0.0  ;;  %vm506_vm8 = vcmp.ge.f32.partialorder %v490_v46, 0.0  ;;  %v523_v15 = vmul.f32 0.2, %v491_v6 }
 0x123   :  { %v502_v38 = vadd.f32 %v764_v35, %v482_v3  ;;  %vm507_vm9 = vcmp.ge.f32.partialorder %v491_v6, 0.0  ;;  %vm508_vm10 = vcmp.ge.f32.partialorder %v492_v50, 0.0  ;;  %v524_v40 = vmul.f32 0.2, %v492_v50 }
 0x124   :  { %vm509_vm11 = vcmp.ge.f32.partialorder %v493_v7, 0.0  ;;  %v525_v41 = vmul.f32 0.2, %v493_v7  ;;  %v535_v42 = vsel %vm503_vm5, %v487_v8, %v519_v29  ;;  %v536_v43 = vsel %vm504_vm6, %v488_v12, %v520_v31 }
 0x125   :  { %vm510_vm12 = vcmp.ge.f32.partialorder %v494_v17, 0.0  ;;  %v526_v44 = vmul.f32 0.2, %v494_v17  ;;  %v537_v19 = vsel %vm505_vm7, %v489_v16, %v521_v33  ;;  %v538_v20 = vsel %vm506_vm8, %v490_v46, %v522_v34 }
 0x126   :  { %vm511_vm13 = vcmp.ge.f32.partialorder %v495_v22, 0.0  ;;  %vm512_vm14 = vcmp.ge.f32.partialorder %v496_v23, 0.0  ;;  %v527_v47 = vmul.f32 0.2, %v495_v22  ;;  %v539_v48 = vsel %vm507_vm9, %v491_v6, %v523_v15 }
 0x127   :  { %v528_v49 = vmul.f32 0.2, %v496_v23  ;;  %v540_v36 = vsel %vm508_vm10, %v492_v50, %v524_v40  ;;  %v551_v37 = vpack.c.bf16 %v535_v42, %v535_v42  ;;  %v552_v51 = vpack.c.bf16 %v536_v43, %v536_v43 }
 0x128   :  { %v529_v52 = vmul.f32 0.2, %v497_v10  ;;  %v541_v53 = vsel %vm509_vm11, %v493_v7, %v525_v41  ;;  %v553_v54 = vpack.c.bf16 %v537_v19, %v537_v19  ;;  %v554_v55 = vpack.c.bf16 %v538_v20, %v538_v20 }
 0x129   :  { %vm513_vm15 = vcmp.ge.f32.partialorder %v497_v10, 0.0  ;;  %v530_v56 = vmul.f32 0.2, %v498_v11  ;;  %v542_v57 = vsel %vm510_vm12, %v494_v17, %v526_v44  ;;  %v555_v59 = vpack.c.bf16 %v539_v48, %v539_v48  ;;  %568 = vst.msk [vmem:[%s1175_s4] sm:$0xf] %vm567_vm4, %v551_v37 }
 0x12a   :  { %vm514_vm0 = vcmp.ge.f32.partialorder %v498_v11, 0.0  ;;  %v531_v21 = vmul.f32 0.2, %v1088_v27  ;;  %v543_v18 = vsel %vm511_vm13, %v495_v22, %v527_v47  ;;  %v556_v24 = vpack.c.bf16 %v540_v36, %v540_v36  ;;  %569 = vst.msk [vmem:[%s1175_s4 + $0x4] sm:$0xf] %vm567_vm4, %v552_v51 }
 0x12b   :  { %vm515_vm1 = vcmp.ge.f32.partialorder %v1088_v27, 0.0  ;;  %v532_v26 = vmul.f32 0.2, %v1090_v28  ;;  %v544_v60 = vsel %vm512_vm14, %v496_v23, %v528_v49  ;;  %v557_v30 = vpack.c.bf16 %v541_v53, %v541_v53  ;;  %570 = vst.msk [vmem:[%s1175_s4 + $0x8] sm:$0xf] %vm567_vm4, %v553_v54 }
 0x12c   :  { %vm516_vm2 = vcmp.ge.f32.partialorder %v1090_v28, 0.0  ;;  %v533_v35 = vmul.f32 0.2, %v501_v14  ;;  %v545_v45 = vsel %vm513_vm15, %v497_v10, %v529_v52  ;;  %v558_v58 = vpack.c.bf16 %v542_v57, %v542_v57  ;;  %571 = vst.msk [vmem:[%s1175_s4 + $0xc] sm:$0xf] %vm567_vm4, %v554_v55 }
 0x12d   :  { %vm517_vm3 = vcmp.ge.f32.partialorder %v501_v14, 0.0  ;;  %v534_v9 = vmul.f32 0.2, %v502_v38  ;;  %v546_v5 = vsel %vm514_vm0, %v498_v11, %v530_v56  ;;  %v559_v61 = vpack.c.bf16 %v543_v18, %v543_v18  ;;  %572 = vst.msk [vmem:[%s1175_s4 + $0x10] sm:$0xf] %vm567_vm4, %v555_v59 }
 0x12e   :  { %vm518_vm5 = vcmp.ge.f32.partialorder %v502_v38, 0.0  ;;  %v547_v13 = vsel %vm515_vm1, %v1088_v27, %v531_v21  ;;  %v560_v62 = vpack.c.bf16 %v544_v60, %v544_v60  ;;  %573 = vst.msk [vmem:[%s1175_s4 + $0x14] sm:$0xf] %vm567_vm4, %v556_v24  ;;  %v548_v25 = vsel %vm516_vm2, %v1090_v28, %v532_v26 }
 0x12f   :  { %v561_v63 = vpack.c.bf16 %v545_v45, %v545_v45  ;;  %574 = vst.msk [vmem:[%s1175_s4 + $0x18] sm:$0xf] %vm567_vm4, %v557_v30  ;;  %v549_v32 = vsel %vm517_vm3, %v501_v14, %v533_v35  ;;  %v562_v0 = vpack.c.bf16 %v546_v5, %v546_v5  ;;  %v550_v39 = vsel %vm518_vm5, %v502_v38, %v534_v9 }
 0x130   :  { %575 = vst.msk [vmem:[%s1175_s4 + $0x1c] sm:$0xf] %vm567_vm4, %v558_v58  ;;  %v563_v1 = vpack.c.bf16 %v547_v13, %v547_v13  ;;  %v564_v4 = vpack.c.bf16 %v548_v25, %v548_v25  ;;  %v565_v8 = vpack.c.bf16 %v549_v32, %v549_v32  ;;  %v566_v12 = vpack.c.bf16 %v550_v39, %v550_v39 }
 0x131   :  { %576 = vst.msk [vmem:[%s1175_s4 + $0x20] sm:$0xf] %vm567_vm4, %v559_v61 }
 0x132   :  { %577 = vst.msk [vmem:[%s1175_s4 + $0x24] sm:$0xf] %vm567_vm4, %v560_v62 }
 0x133   :  { %578 = vst.msk [vmem:[%s1175_s4 + $0x28] sm:$0xf] %vm567_vm4, %v561_v63 }
 0x134   :  { %579 = vst.msk [vmem:[%s1175_s4 + $0x2c] sm:$0xf] %vm567_vm4, %v562_v0 }
 0x135   :  { %580 = vst.msk [vmem:[%s1175_s4 + $0x30] sm:$0xf] %vm567_vm4, %v563_v1 }
 0x136   :  { %581 = vst.msk [vmem:[%s1175_s4 + $0x34] sm:$0xf] %vm567_vm4, %v564_v4 }
 0x137   :  { %582 = vst.msk [vmem:[%s1175_s4 + $0x38] sm:$0xf] %vm567_vm4, %v565_v8 }
 0x138   :  { %583 = vst.msk [vmem:[%s1175_s4 + $0x3c] sm:$0xf] %vm567_vm4, %v566_v12 }

// kernel: discriminator_forward.7
= control target key start
LH: loop header
LB: loop body
LE: loop exit
PB: predicated region body
PF: predicated region fallthrough
CT: control target
= control target key end

     0   :  { %vm403_vm0 = vcmask 523264   ;;  %vm492_vm8 = vcmask 261120   ;;  %vm516_vm9 = vcmask 517120   ;;  %vm539_vm13 = vcmask 1024   ;;  %s983_s1 = inlined_call_operand.vmem [shape: bf16[512,64], index: 1, kind: input, shape index: {}]   ;;  %s984_s0 = inlined_call_operand.vmem [shape: bf16[32,512], index: 0, kind: input, shape index: {}]   ;;  %s985_s3 = inlined_call_operand.vmem [shape: f32[1,64], index: 3, kind: input, shape index: {}]   ;;  %s986_s2 = inlined_call_operand.vmem [shape: f32[1,64], index: 2, kind: input, shape index: {}]   ;;  %s987_s4 = inlined_call_operand.vmem [shape: f32[32,64], index: 4, kind: input, shape index: {}]   ;;  %s988_s5 = inlined_call_operand.vmem [shape: f32[2,32], index: 5, kind: input, shape index: {}]   ;;  %s989_s6 = inlined_call_operand.vmem [shape: f32[2,1], index: 6, kind: output, shape index: {}]  }
   0x1   :  { %v722_v0 = vld [vmem:[%s983_s1 + $0x38] sm:$0xff]  ;;  %v721_v4 = vld [vmem:[%s983_s1 + $0x30] sm:$0xff]  ;;  %v720_v8 = vld [vmem:[%s983_s1 + $0x28] sm:$0xff] }
   0x2   :  { %v730_v1 = vld [vmem:[%s983_s1 + $0x78] sm:$0xff]  ;;  %327 = vmatpush.bf16.msra.mxu0 %v722_v0  ;;  %v729_v5 = vld [vmem:[%s983_s1 + $0x70] sm:$0xff]  ;;  %v728_v9 = vld [vmem:[%s983_s1 + $0x68] sm:$0xff] }
   0x3   :  { %v738_v2 = vld [vmem:[%s983_s1 + $0xb8] sm:$0xff]  ;;  %346 = vmatpush.bf16.msra.mxu1 %v730_v1  ;;  %v737_v6 = vld [vmem:[%s983_s1 + $0xb0] sm:$0xff]  ;;  %v736_v10 = vld [vmem:[%s983_s1 + $0xa8] sm:$0xff] }
   0x4   :  { %v746_v3 = vld [vmem:[%s983_s1 + $0xf8] sm:$0xff]  ;;  %365 = vmatpush.bf16.msra.mxu2 %v738_v2  ;;  %v745_v7 = vld [vmem:[%s983_s1 + $0xf0] sm:$0xff]  ;;  %v744_v11 = vld [vmem:[%s983_s1 + $0xe8] sm:$0xff] }
   0x5   :  { %384 = vmatpush.bf16.msra.mxu3 %v746_v3  ;;  %v719_v12 = vld [vmem:[%s983_s1 + $0x20] sm:$0xff]  ;;  %v718_v16 = vld [vmem:[%s983_s1 + $0x18] sm:$0xff]  ;;  %v717_v20 = vld [vmem:[%s983_s1 + $0x10] sm:$0xff] }
   0x6   :  { %328 = vmatpush.bf16.msra.mxu0 %v721_v4  ;;  %v727_v13 = vld [vmem:[%s983_s1 + $0x60] sm:$0xff]  ;;  %v726_v17 = vld [vmem:[%s983_s1 + $0x58] sm:$0xff]  ;;  %v725_v21 = vld [vmem:[%s983_s1 + $0x50] sm:$0xff] }
   0x7   :  { %347 = vmatpush.bf16.msra.mxu1 %v729_v5  ;;  %v735_v14 = vld [vmem:[%s983_s1 + $0xa0] sm:$0xff]  ;;  %v734_v18 = vld [vmem:[%s983_s1 + $0x98] sm:$0xff]  ;;  %v733_v22 = vld [vmem:[%s983_s1 + $0x90] sm:$0xff] }
   0x8   :  { %366 = vmatpush.bf16.msra.mxu2 %v737_v6  ;;  %v743_v15 = vld [vmem:[%s983_s1 + $0xe0] sm:$0xff]  ;;  %v742_v19 = vld [vmem:[%s983_s1 + $0xd8] sm:$0xff]  ;;  %v741_v23 = vld [vmem:[%s983_s1 + $0xd0] sm:$0xff] }
   0x9   :  { %385 = vmatpush.bf16.msra.mxu3 %v745_v7  ;;  %v716_v24 = vld [vmem:[%s983_s1 + $0x8] sm:$0xff]  ;;  %v715_v28 = vld [vmem:[%s983_s1] sm:$0xff]  ;;  %v709_v33 = vld [vmem:[%s984_s0 + $0xc] sm:$0xf0] }
   0xa   :  { %329 = vmatpush.bf16.msra.mxu0 %v720_v8  ;;  %v724_v25 = vld [vmem:[%s983_s1 + $0x48] sm:$0xff]  ;;  %v723_v29 = vld [vmem:[%s983_s1 + $0x40] sm:$0xff]  ;;  %v549_v35 = vld [vmem:[%s984_s0 + $0x10] sm:$0xf0] }
   0xb   :  { %348 = vmatpush.bf16.msra.mxu1 %v728_v9  ;;  %v732_v26 = vld [vmem:[%s983_s1 + $0x88] sm:$0xff]  ;;  %v731_v30 = vld [vmem:[%s983_s1 + $0x80] sm:$0xff]  ;;  %v710_v37 = vld [vmem:[%s984_s0 + $0x14] sm:$0xf0] }
   0xc   :  { %367 = vmatpush.bf16.msra.mxu2 %v736_v10  ;;  %v740_v27 = vld [vmem:[%s983_s1 + $0xc8] sm:$0xff]  ;;  %v739_v31 = vld [vmem:[%s983_s1 + $0xc0] sm:$0xff]  ;;  %v557_v39 = vld [vmem:[%s984_s0 + $0x18] sm:$0xf0] }
   0xd   :  { %386 = vmatpush.bf16.msra.mxu3 %v744_v11  ;;  %v547_v32 = vld [vmem:[%s984_s0] sm:$0xf]  ;;  %v707_v34 = vld [vmem:[%s984_s0 + $0x4] sm:$0xf]  ;;  %v555_v36 = vld [vmem:[%s984_s0 + $0x8] sm:$0xf] }
   0xe   :  { %330 = vmatpush.bf16.msra.mxu0 %v719_v12  ;;  %v708_v38 = vld [vmem:[%s984_s0 + $0xc] sm:$0xf]  ;;  %v548_v40 = vor.u32 %v709_v33, %v547_v32  ;;  %v552_v41 = vor.u32 %v707_v34, %v549_v35  ;;  %v556_v42 = vor.u32 %v710_v37, %v555_v36  ;;  %v563_v44 = vld [vmem:[%s984_s0 + $0x20] sm:$0xf]  ;;  %v713_v45 = vld [vmem:[%s984_s0 + $0x2c] sm:$0xf0] }
   0xf   :  { %349 = vmatpush.bf16.msra.mxu1 %v727_v13  ;;  %v560_v43 = vor.u32 %v708_v38, %v557_v39  ;;  %v711_v46 = vld [vmem:[%s984_s0 + $0x24] sm:$0xf]  ;;  %v565_v47 = vld [vmem:[%s984_s0 + $0x30] sm:$0xf0]  ;;  %v571_v48 = vld [vmem:[%s984_s0 + $0x28] sm:$0xf]  ;;  %v564_v52 = vor.u32 %v713_v45, %v563_v44 }
  0x10   :  { %368 = vmatpush.bf16.msra.mxu2 %v735_v14  ;;  %v714_v49 = vld [vmem:[%s984_s0 + $0x34] sm:$0xf0]  ;;  %v712_v50 = vld [vmem:[%s984_s0 + $0x2c] sm:$0xf]  ;;  %v573_v51 = vld [vmem:[%s984_s0 + $0x38] sm:$0xf0]  ;;  %v568_v53 = vor.u32 %v711_v46, %v565_v47 }
  0x11   :  { %387 = vmatpush.bf16.msra.mxu3 %v743_v15  ;;  %v572_v54 = vor.u32 %v714_v49, %v571_v48  ;;  %v576_v55 = vor.u32 %v712_v50, %v573_v51 }
  0x12   :  { %331 = vmatpush.bf16.msra.mxu0 %v718_v16 }
  0x13   :  { %350 = vmatpush.bf16.msra.mxu1 %v726_v17 }
  0x14   :  { %369 = vmatpush.bf16.msra.mxu2 %v734_v18 }
  0x15   :  { %388 = vmatpush.bf16.msra.mxu3 %v742_v19 }
  0x16   :  { %332 = vmatpush.bf16.msra.mxu0 %v717_v20 }
  0x17   :  { %351 = vmatpush.bf16.msra.mxu1 %v725_v21 }
  0x18   :  { %370 = vmatpush.bf16.msra.mxu2 %v733_v22 }
  0x19   :  { %389 = vmatpush.bf16.msra.mxu3 %v741_v23 }
  0x1a   :  { %333 = vmatpush.bf16.msra.mxu0 %v716_v24 }
  0x1b   :  { %352 = vmatpush.bf16.msra.mxu1 %v724_v25 }
  0x1c   :  { %371 = vmatpush.bf16.msra.mxu2 %v732_v26 }
  0x1d   :  { %390 = vmatpush.bf16.msra.mxu3 %v740_v27 }
  0x1e   :  { %334 = vmatpush.bf16.msra.mxu0 %v715_v28 }
  0x1f   :  { %353 = vmatpush.bf16.msra.mxu1 %v723_v29 }
  0x20   :  { %372 = vmatpush.bf16.msra.mxu2 %v731_v30 }
  0x21   :  { %391 = vmatpush.bf16.msra.mxu3 %v739_v31  ;;  %335 = vmatmul.bf16.vlgmr.msra.gmra.mxu0 %v548_v40 }
  0x22   :  { %354 = vmatmul.bf16.vlgmr.msra.gmra.mxu1 %v552_v41 }
  0x23   :  { %373 = vmatmul.bf16.vlgmr.msra.gmra.mxu2 %v556_v42 }
  0x24   :  { %392 = vmatmul.bf16.vlgmr.msra.gmra.mxu3 %v560_v43 }
  0x31   :  { %340 = vmatmul.bf16.gmra.mxu0 %v564_v52 }
  0x32   :  { %359 = vmatmul.bf16.gmra.mxu1 %v568_v53 }
  0x33   :  { %378 = vmatmul.bf16.gmra.mxu2 %v572_v54 }
  0x34   :  { %397 = vmatmul.bf16.gmra.mxu3 %v576_v55 }
  0x9e   :  { %v336_v56 = vpop.f32.mrf.mxu0 }
  0x9f   :  { %v355_v57 = vpop.f32.mrf.mxu1 }
  0xa0   :  { %v356_v2 = vadd.f32 %v355_v57, %v336_v56 }
  0xa6   :  { %v374_v58 = vpop.f32.mrf.mxu2  ;;  %v338_v60 = vpop.f32.mrf.mxu0 }
  0xa7   :  { %v393_v59 = vpop.f32.mrf.mxu3  ;;  %v357_v61 = vpop.f32.mrf.mxu1  ;;  %v375_v6 = vadd.f32 %v374_v58, %v356_v2 }
  0xa8   :  { %v358_v3 = vadd.f32 %v357_v61, %v338_v60  ;;  %v443_v61 = vld [vmem:[%s986_s2] sm:$0x1] }
  0xa9   :  { %v935_v11 = vadd.f32 %v393_v59, %v375_v6 }
  0xab   :  { %v417_v16 = vmul.f32 %v935_v11, %v935_v11  ;;  %v404_v21 = vsel %vm403_vm0, %v935_v11, 0.0 }
  0xad   :  { %v421_v27 = vsel %vm403_vm0, %v417_v16, 0.0 }
  0xae   :  { %v376_v62 = vpop.f32.mrf.mxu2  ;;  %v341_v0 = vpop.f32.mrf.mxu0 }
  0xaf   :  { %v395_v63 = vpop.f32.mrf.mxu3  ;;  %v360_v1 = vpop.f32.mrf.mxu1  ;;  %v377_v4 = vadd.f32 %v376_v62, %v358_v3  ;;  %v747_v3 = vld [vmem:[%s985_s3] ss:$0 sm:$0xff] }
  0xb0   :  { %v361_v5 = vadd.f32 %v360_v1, %v341_v0 }
  0xb1   :  { %v933_v9 = vadd.f32 %v395_v63, %v377_v4 }
  0xb3   :  { %v418_v15 = vmul.f32 %v933_v9, %v933_v9  ;;  %v405_v17 = vsel %vm403_vm0, %v933_v9, 0.0 }
  0xb4   :  { %v406_v25 = vadd.f32 %v405_v17, %v404_v21  ;;  %v486_v21 = vld [vmem:[%s987_s4 + $0x10] sm:$0xff] }
  0xb5   :  { %v422_v22 = vsel %vm403_vm0, %v418_v15, 0.0 }
  0xb6   :  { %v379_v7 = vpop.f32.mrf.mxu2  ;;  %v343_v13 = vpop.f32.mrf.mxu0  ;;  %v423_v30 = vadd.f32 %v422_v22, %v421_v27 }
  0xb7   :  { %v398_v8 = vpop.f32.mrf.mxu3  ;;  %v380_v10 = vadd.f32 %v379_v7, %v361_v5  ;;  %v362_v14 = vpop.f32.mrf.mxu1 }
  0xb8   :  { %v363_v19 = vadd.f32 %v362_v14, %v343_v13 }
  0xb9   :  { %v937_v12 = vadd.f32 %v398_v8, %v380_v10 }
  0xbb   :  { %v419_v18 = vmul.f32 %v937_v12, %v937_v12  ;;  %v407_v23 = vsel %vm403_vm0, %v937_v12, 0.0 }
  0xbc   :  { %v408_v31 = vadd.f32 %v407_v23, %v406_v25  ;;  %v485_v25 = vld [vmem:[%s987_s4 + $0x8] sm:$0xff] }
  0xbd   :  { %v424_v28 = vsel %vm403_vm0, %v419_v18, 0.0  ;;  %v487_v18 = vld [vmem:[%s987_s4 + $0x18] sm:$0xff] }
  0xbe   :  { %v381_v20 = vpop.f32.mrf.mxu2  ;;  %v425_v34 = vadd.f32 %v424_v28, %v423_v30  ;;  %v484_v28 = vld [vmem:[%s987_s4] sm:$0xff] }
  0xbf   :  { %v382_v24 = vadd.f32 %v381_v20, %v363_v19  ;;  %v400_v26 = vpop.f32.mrf.mxu3 }
  0xc1   :  { %v401_v29 = vadd.f32 %v400_v26, %v382_v24 }
  0xc3   :  { %v409_v32 = vsel %vm403_vm0, %v401_v29, 0.0  ;;  %v420_v33 = vmul.f32 %v401_v29, %v401_v29 }
  0xc4   :  { %v410_v35 = vadd.f32 %v409_v32, %v408_v31  ;;  %v483_v31 = vld [vmem:[%s988_s5] sm:$0x3] }
  0xc5   :  { %v426_v36 = vsel %vm403_vm0, %v420_v33, 0.0 }
  0xc6   :  { %v411_v37 = vrot.slane %v410_v35, 4  ;;  %v427_v38 = vadd.f32 %v426_v36, %v425_v34 }
  0xc8   :  { %v412_v39 = vadd.f32 %v411_v37, %v410_v35  ;;  %v428_v40 = vrot.slane %v427_v38, 4 }
  0xca   :  { %v413_v41 = vrot.slane %v412_v39, 2  ;;  %v429_v42 = vadd.f32 %v428_v40, %v427_v38 }
  0xcc   :  { %v414_v43 = vadd.f32 %v413_v41, %v412_v39  ;;  %v430_v44 = vrot.slane %v429_v42, 2 }
  0xce   :  { %v415_v45 = vrot.slane %v414_v43, 1  ;;  %v431_v46 = vadd.f32 %v430_v44, %v429_v42 }
  0xd0   :  { %v416_v47 = vadd.f32 %v415_v45, %v414_v43  ;;  %v432_v48 = vrot.slane %v431_v46, 1 }
  0xd2   :  { %v433_v49 = vadd.f32 %v432_v48, %v431_v46  ;;  %v434_v50 = vmul.f32 0.03125, %v416_v47 }
  0xd4   :  { %v435_v51 = vmul.f32 0.03125, %v433_v49  ;;  %v436_v52 = vmul.f32 %v434_v50, %v434_v50  ;;  %v442_v1 = vsub.f32 %v401_v29, %v434_v50  ;;  %v441_v4 = vsub.f32 %v937_v12, %v434_v50 }
  0xd5   :  { %v440_v5 = vsub.f32 %v933_v9, %v434_v50  ;;  %v439_v6 = vsub.f32 %v935_v11, %v434_v50 }
  0xd6   :  { %v437_v53 = vsub.f32 %v435_v51, %v436_v52 }
  0xd8   :  { %v438_v54 = vmax.f32 %v437_v53, 0.0 }
  0xda   :  { %v444_v55 = vadd.f32 1e-05, %v438_v54 }
  0xdc   :  { %748 = vrsqrt.f32 %v444_v55  ;;  %vm451_vm2 = vweird.f32 %v444_v55 }
  0xe2   :  { %v749_v56 = vpop.eup %748 }
  0xe3   :  { %v446_v57 = vmul.f32 %v749_v56, %v444_v55  ;;  %vm452_vm1 = vweird.f32 %v749_v56 }
  0xe4   :  { %vm453_vm3 = vmor %vm451_vm2, %vm452_vm1 }
  0xe5   :  { %v447_v58 = vmul.f32 %v749_v56, %v446_v57 }
  0xe7   :  { %v448_v59 = vmul.f32 0.5, %v447_v58 }
  0xe9   :  { %v449_v60 = vsub.f32 1.5, %v448_v59 }
  0xeb   :  { %v450_v62 = vmul.f32 %v749_v56, %v449_v60 }
  0xed   :  { %v454_v63 = vsel %vm453_vm3, %v749_v56, %v450_v62 }
  0xee   :  { %v455_v0 = vmul.f32 %v454_v63, %v443_v61 }
  0xf0   :  { %v457_v2 = vperm.slane %v455_v0, 0 }
  0xf2   :  { %v462_v7 = vmul.f32 %v457_v2, %v442_v1  ;;  %v461_v8 = vmul.f32 %v457_v2, %v441_v4  ;;  %v460_v10 = vmul.f32 %v457_v2, %v440_v5  ;;  %v459_v13 = vmul.f32 %v457_v2, %v439_v6 }
  0xf4   :  { %v470_v14 = vadd.f32 %v747_v3, %v462_v7  ;;  %v469_v15 = vadd.f32 %v747_v3, %v461_v8  ;;  %v468_v16 = vadd.f32 %v747_v3, %v460_v10  ;;  %v467_v17 = vadd.f32 %v747_v3, %v459_v13 }
  0xf6   :  { %vm474_vm4 = vcmp.ge.f32.partialorder %v470_v14, 0.0  ;;  %v478_v19 = vmul.f32 0.2, %v470_v14  ;;  %vm473_vm5 = vcmp.ge.f32.partialorder %v469_v15, 0.0  ;;  %v477_v12 = vmul.f32 0.2, %v469_v15 }
  0xf7   :  { %vm472_vm6 = vcmp.ge.f32.partialorder %v468_v16, 0.0  ;;  %v476_v9 = vmul.f32 0.2, %v468_v16  ;;  %v475_v22 = vmul.f32 0.2, %v467_v17  ;;  %vm471_vm7 = vcmp.ge.f32.partialorder %v467_v17, 0.0 }
  0xf8   :  { %v482_v20 = vsel %vm474_vm4, %v470_v14, %v478_v19  ;;  %v481_v11 = vsel %vm473_vm5, %v469_v15, %v477_v12 }
  0xf9   :  { %v491_v23 = vmul.f32 %v487_v18, %v482_v20  ;;  %v480_v24 = vsel %vm472_vm6, %v468_v16, %v476_v9  ;;  %v490_v26 = vmul.f32 %v486_v21, %v481_v11  ;;  %v479_v27 = vsel %vm471_vm7, %v467_v17, %v475_v22 }
  0xfa   :  { %v489_v29 = vmul.f32 %v485_v25, %v480_v24  ;;  %v488_v30 = vmul.f32 %v484_v28, %v479_v27 }
  0xfb   :  { %508 = vmatpush.msrb.mxu0 %v491_v23 }
  0xfd   :  { %509 = vmatpush.msrb.mxu0 %v490_v26 }
  0xff   :  { %510 = vmatpush.msrb.mxu0 %v489_v29 }
 0x101   :  { %511 = vmatpush.msrb.mxu0 %v488_v30 }
 0x102   :  { %705 = vmatmul.msk.f32.vlgmr.msrb.gmra.mxu0 %vm492_vm8, %v483_v31 }
 0x17f   :  { %v513_v32 = vpop.f32.mrf.mxu0 }
 0x180   :  { %v517_v33 = vsel %vm516_vm9, %v513_v32, 0.0 }
 0x181   :  { %518 = vadd.xlane.f32.xlu0 %v517_v33 }
 0x1f4   :  { %v519_v34 = vpop.xlane.xlu0 %518 }
 0x1f5   :  { %v706_v35 = vmul.f32 -1.442695, %v519_v34 }
 0x1f7   :  { %750 = vpow2.f32 %v706_v35 }
 0x1fd   :  { %v751_v36 = vpop.eup %750 }
 0x1fe   :  { %v523_v37 = vadd.f32 1.0, %v751_v36 }
 0x200   :  { %752 = vrcp.f32 %v523_v37  ;;  %v535_v41 = vand.u32 2147483648, %v523_v37  ;;  %v533_v43 = vand.u32 2147483647, %v523_v37  ;;  %vm529_vm11 = vweird.f32 %v523_v37 }
 0x202   :  { %v536_v45 = vor.u32 1.1754944e-38, %v535_v41  ;;  %vm534_vm14 = vcmp.eq.f32.partialorder %v533_v43, 8.507059e+37 }
 0x206   :  { %v753_v38 = vpop.eup %752 }
 0x207   :  { %v525_v39 = vmul.f32 %v753_v38, %v523_v37  ;;  %vm530_vm10 = vweird.f32 %v753_v38 }
 0x208   :  { %vm531_vm12 = vmor %vm529_vm11, %vm530_vm10 }
 0x209   :  { %v526_v40 = vsub.f32 1.0, %v525_v39 }
 0x20b   :  { %v527_v42 = vmul.f32 %v753_v38, %v526_v40 }
 0x20d   :  { %v528_v44 = vadd.f32 %v753_v38, %v527_v42 }
 0x20f   :  { %v532_v46 = vsel %vm531_vm12, %v753_v38, %v528_v44 }
 0x210   :  { %v537_v47 = vsel %vm534_vm14, %v536_v45, %v532_v46 }
 0x211   :  { %540 = vst.msk [vmem:[%s989_s6] sm:$0x3] %vm539_vm13, %v537_v47 }

</bundles_post_ra>
